<compile_context>
chip_gen: v5e
topology: v5e:2x2
jax: 0.10.0
libtpu: 0.0.40
codegen_flags: <defaults>
</compile_context>

<pallas_src>
import jax
import jax.numpy as jnp
from jax.experimental import pallas as pl
from jax.experimental.pallas import tpu as pltpu


# ----------------------------------------------------------------------------
# Kernel 1: shared MLP (3 -> 64 -> 128 -> 1024) + max over points
# ----------------------------------------------------------------------------
def _shared_mlp_max_kernel(x_ref, w1t, b1, w2t, b2, w3t, b3, o_ref):
    n = pl.program_id(1)

    # (3, TN) f32 block, channels on sublanes, points on lanes; cast to bf16
    # for the MXU, accumulate in f32.
    x = x_ref[0].astype(jnp.bfloat16)

    h = jnp.dot(w1t[...], x, preferred_element_type=jnp.float32) + b1[...]
    h = jnp.maximum(h, 0.0).astype(jnp.bfloat16)               # (64, TN)
    h = jnp.dot(w2t[...], h, preferred_element_type=jnp.float32) + b2[...]
    h = jnp.maximum(h, 0.0).astype(jnp.bfloat16)               # (128, TN)
    h = jnp.dot(w3t[...], h, preferred_element_type=jnp.float32) + b3[...]
    h = jnp.maximum(h, 0.0)                                    # (1024, TN) f32

    tile_max = jnp.max(h, axis=1, keepdims=True)               # (1024, 1)

    @pl.when(n == 0)
    def _():
        o_ref[0] = tile_max

    @pl.when(n > 0)
    def _():
        o_ref[0] = jnp.maximum(o_ref[0], tile_max)


def shared_mlp_max(x_bkn, w1t, b1, w2t, b2, w3t, b3, *, tile_n=256):
    """x_bkn: (B, 3, N) f32 (NCW).  Returns (B, 1024) f32 global-max feature."""
    B, K, N = x_bkn.shape
    if N % tile_n != 0:
        # Fall back to a lane-aligned divisor of N, else the whole point axis.
        tile_n = next((t for t in (512, 384, 256, 128) if N % t == 0), N)

    grid = (B, N // tile_n)

    def full(shape):
        return pl.BlockSpec(shape, lambda b, n: (0,) * len(shape))

    out = pl.pallas_call(
        _shared_mlp_max_kernel,
        out_shape=jax.ShapeDtypeStruct((B, 1024, 1), jnp.float32),
        grid_spec=pltpu.PrefetchScalarGridSpec(
            num_scalar_prefetch=0,
            grid=grid,
            in_specs=[
                pl.BlockSpec((1, K, tile_n), lambda b, n: (b, 0, n)),
                full(w1t.shape), full(b1.shape),
                full(w2t.shape), full(b2.shape),
                full(w3t.shape), full(b3.shape),
            ],
            out_specs=pl.BlockSpec((1, 1024, 1), lambda b, n: (b, 0, 0)),
        ),
        compiler_params=pltpu.CompilerParams(
            dimension_semantics=("parallel", "arbitrary"),
            vmem_limit_bytes=32 * 1024 * 1024,
        ),
    )(x_bkn, w1t, b1, w2t, b2, w3t, b3)
    return out[:, :, 0]                                        # (B, 1024)


# ----------------------------------------------------------------------------
# Kernel 2: dense head 1024 -> 512 -> 256 -> 9 (identity folded into b6)
# ----------------------------------------------------------------------------
def _head_kernel(x_ref, w4, b4, w5, b5, w6, b6, o_ref):
    x = x_ref[...].astype(jnp.bfloat16)                        # (B, 1024)
    h = jnp.dot(x, w4[...], preferred_element_type=jnp.float32) + b4[...]
    h = jnp.maximum(h, 0.0).astype(jnp.bfloat16)
    h = jnp.dot(h, w5[...], preferred_element_type=jnp.float32) + b5[...]
    h = jnp.maximum(h, 0.0).astype(jnp.bfloat16)
    # eye(3).reshape(1, 9) is pre-folded into b6 by the wrapper.
    o_ref[...] = jnp.dot(h, w6[...], preferred_element_type=jnp.float32) + b6[...]


def head_mlp(feat, w4, b4, w5, b5, w6, b6):
    B = feat.shape[0]
    kk = w6.shape[1]
    vmem = pl.BlockSpec(memory_space=pltpu.MemorySpace.VMEM)
    flops = int(2 * B * (1024 * 512 + 512 * 256 + 256 * kk))
    bytes_accessed = int(
        feat.size * feat.dtype.itemsize
        + sum(a.size * a.dtype.itemsize for a in (w4, b4, w5, b5, w6, b6))
        + B * kk * 4)
    return pl.pallas_call(
        _head_kernel,
        out_shape=jax.ShapeDtypeStruct((B, kk), jnp.float32),
        in_specs=[vmem] * 7,
        out_specs=vmem,
        cost_estimate=pl.CostEstimate(flops=flops, transcendentals=0,
                                      bytes_accessed=bytes_accessed),
    )(feat, w4, b4, w5, b5, w6, b6)


# ----------------------------------------------------------------------------
# Parameter construction (deterministic) + BatchNorm folding (eval mode)
# ----------------------------------------------------------------------------
def _fold_bn(w, b, gamma, beta, mean, var, eps=1e-5):
    # z = x @ w + b ; BN(z) = gamma*(z-mean)/sqrt(var+eps)+beta
    scale = gamma / jnp.sqrt(var + eps)
    return w * scale[None, :], (b - mean) * scale + beta


def init_params(key):
    """STN3d params, f32, with eval-mode BatchNorm folded into conv/linear."""
    dims = [(3, 64), (64, 128), (128, 1024), (1024, 512), (512, 256), (256, 9)]
    params = []
    for i, (cin, cout) in enumerate(dims):
        key, kw, kb, kg, kbeta = jax.random.split(key, 5)
        w = jax.random.normal(kw, (cin, cout), jnp.float32) * 0.05
        b = jax.random.normal(kb, (cout,), jnp.float32) * 0.05
        if i < 5:  # conv1..3 and fc1..2 carry BatchNorm; the final fc does not
            gamma = 1.0 + 0.1 * jax.random.normal(kg, (cout,), jnp.float32)
            beta = 0.1 * jax.random.normal(kbeta, (cout,), jnp.float32)
            mean = jnp.zeros((cout,), jnp.float32)   # default running stats
            var = jnp.ones((cout,), jnp.float32)
            w, b = _fold_bn(w, b, gamma, beta, mean, var)
        params.append((w, b))
    return params


def prepare_kernel_params(params):
    """bf16 weights; shared-MLP weights pre-transposed to (Cout, Cin) with
    (Cout, 1) biases; eye(3) folded into the final bias."""
    (w1, b1), (w2, b2), (w3, b3), (w4, b4), (w5, b5), (w6, b6) = params
    shared = [(jnp.transpose(w).astype(jnp.bfloat16), b.reshape(-1, 1))
              for (w, b) in ((w1, b1), (w2, b2), (w3, b3))]
    head = [(w4.astype(jnp.bfloat16), b4.reshape(1, -1)),
            (w5.astype(jnp.bfloat16), b5.reshape(1, -1)),
            (w6.astype(jnp.bfloat16),
             (b6 + jnp.eye(3, dtype=jnp.float32).reshape(-1)).reshape(1, -1))]
    return shared, head


# ----------------------------------------------------------------------------
# Full STN3d forward
# ----------------------------------------------------------------------------
def stn3d_forward(x_bkn, params, *, tile_n=256):
    """x_bkn: (B, 3, N) float32 (PyTorch NCW layout). Returns (B, 3, 3)."""
    B = x_bkn.shape[0]
    shared, head = prepare_kernel_params(params)
    (w1t, b1), (w2t, b2), (w3t, b3) = shared
    (w4, b4), (w5, b5), (w6, b6) = head
    feat = shared_mlp_max(x_bkn, w1t, b1, w2t, b2, w3t, b3, tile_n=tile_n)
    out = head_mlp(feat, w4, b4, w5, b5, w6, b6)               # (B, 9)
    return out.reshape(B, 3, 3)


# Pure-JAX reference, mirroring the kernels' bf16-operand / f32-accumulate math.
def stn3d_reference(x_bkn, params):
    def mm(a, w):
        return jnp.dot(a.astype(jnp.bfloat16), w.astype(jnp.bfloat16),
                       preferred_element_type=jnp.float32)

    (w1, b1), (w2, b2), (w3, b3), (w4, b4), (w5, b5), (w6, b6) = params
    x = jnp.transpose(x_bkn, (0, 2, 1))                        # (B, N, 3)
    h = jnp.maximum(mm(x, w1) + b1, 0.0)
    h = jnp.maximum(mm(h, w2) + b2, 0.0)
    h = jnp.maximum(mm(h, w3) + b3, 0.0)
    feat = jnp.max(h, axis=1)                                  # (B, 1024)
    h = jnp.maximum(mm(feat, w4) + b4, 0.0)
    h = jnp.maximum(mm(h, w5) + b5, 0.0)
    y = mm(h, w6) + b6
    y = y + jnp.eye(3, dtype=y.dtype).reshape(1, 9)
    return y.reshape(-1, 3, 3)


if __name__ == "__main__":
    B, K, N = 2, 3, 512   # small point cloud; N = 2*tile_n exercises cross-tile max
    key = jax.random.PRNGKey(0)
    key, kx = jax.random.split(key)
    x = jax.random.normal(kx, (B, K, N), jnp.float32)          # (B, 3, N) NCW

    params = init_params(key)

    out = stn3d_forward(x, params, tile_n=256)
    out = jax.block_until_ready(out)

    ref = stn3d_reference(x, params)
    assert out.shape == (B, 3, 3), out.shape
    assert jnp.allclose(out, ref, atol=1e-3, rtol=1e-3), "mismatch vs reference"

    print("KERNEL_OK")
</pallas_src>

<mosaic_0001>
module attributes {stable_mosaic.version = 11 : i64} {
  func.func @_shared_mlp_max_kernel(%arg0: i32, %arg1: i32, %arg2: memref<1x3x256xf32, #tpu.memory_space<vmem>>, %arg3: memref<64x3xbf16, #tpu.memory_space<vmem>>, %arg4: memref<64x1xf32, #tpu.memory_space<vmem>>, %arg5: memref<128x64xbf16, #tpu.memory_space<vmem>>, %arg6: memref<128x1xf32, #tpu.memory_space<vmem>>, %arg7: memref<1024x128xbf16, #tpu.memory_space<vmem>>, %arg8: memref<1024x1xf32, #tpu.memory_space<vmem>>, %arg9: memref<1x1024x1xf32, #tpu.memory_space<vmem>>) attributes {dimension_semantics = [#tpu.dimension_semantics<parallel>, #tpu.dimension_semantics<arbitrary>], iteration_bounds = array<i64: 2, 2>, scalar_prefetch = 0 : i64, scratch_operands = 0 : i64, tpu.core_type = #tpu.core_type<tc>, window_params = [{transform_indices = @transform_0, window_bounds = array<i64: 1, 3, 256>}, {pipeline_mode = #tpu.pipeline_mode<synchronous>, transform_indices = @transform_1, window_bounds = array<i64: 64, 3>}, {pipeline_mode = #tpu.pipeline_mode<synchronous>, transform_indices = @transform_2, window_bounds = array<i64: 64, 1>}, {pipeline_mode = #tpu.pipeline_mode<synchronous>, transform_indices = @transform_3, window_bounds = array<i64: 128, 64>}, {pipeline_mode = #tpu.pipeline_mode<synchronous>, transform_indices = @transform_4, window_bounds = array<i64: 128, 1>}, {pipeline_mode = #tpu.pipeline_mode<synchronous>, transform_indices = @transform_5, window_bounds = array<i64: 1024, 128>}, {pipeline_mode = #tpu.pipeline_mode<synchronous>, transform_indices = @transform_6, window_bounds = array<i64: 1024, 1>}, {transform_indices = @transform_7, window_bounds = array<i64: 1, 1024, 1>}]} {
    %c0 = arith.constant 0 : index
    %c0_0 = arith.constant 0 : index
    %c0_1 = arith.constant 0 : index
    %0 = vector.load %arg2[%c0, %c0_0, %c0_1] : memref<1x3x256xf32, #tpu.memory_space<vmem>>, vector<1x3x256xf32>
    %1 = vector.shape_cast %0 : vector<1x3x256xf32> to vector<3x256xf32>
    %2 = arith.truncf %1 : vector<3x256xf32> to vector<3x256xbf16>
    %c0_2 = arith.constant 0 : index
    %c0_3 = arith.constant 0 : index
    %3 = vector.load %arg3[%c0_2, %c0_3] : memref<64x3xbf16, #tpu.memory_space<vmem>>, vector<64x3xbf16>
    %cst = arith.constant dense<0.000000e+00> : vector<64x256xf32>
    %4 = tpu.matmul %3, %2, %cst {dimension_numbers = #tpu.dot_dimension_numbers<[1], [0], [0], [1], [0, 0, 1, 1], [], []>} : vector<64x3xbf16>, vector<3x256xbf16>, vector<64x256xf32> -> vector<64x256xf32>
    %c0_4 = arith.constant 0 : index
    %c0_5 = arith.constant 0 : index
    %5 = vector.load %arg4[%c0_4, %c0_5] : memref<64x1xf32, #tpu.memory_space<vmem>>, vector<64x1xf32>
    %6 = vector.broadcast %5 : vector<64x1xf32> to vector<64x256xf32>
    %7 = arith.addf %4, %6 : vector<64x256xf32>
    %cst_6 = arith.constant 0.000000e+00 : f32
    %8 = vector.broadcast %cst_6 : f32 to vector<64x256xf32>
    %9 = arith.maximumf %7, %8 : vector<64x256xf32>
    %10 = arith.truncf %9 : vector<64x256xf32> to vector<64x256xbf16>
    %c0_7 = arith.constant 0 : index
    %c0_8 = arith.constant 0 : index
    %11 = vector.load %arg5[%c0_7, %c0_8] : memref<128x64xbf16, #tpu.memory_space<vmem>>, vector<128x64xbf16>
    %cst_9 = arith.constant dense<0.000000e+00> : vector<128x256xf32>
    %12 = tpu.matmul %11, %10, %cst_9 {dimension_numbers = #tpu.dot_dimension_numbers<[1], [0], [0], [1], [0, 0, 1, 1], [], []>} : vector<128x64xbf16>, vector<64x256xbf16>, vector<128x256xf32> -> vector<128x256xf32>
    %c0_10 = arith.constant 0 : index
    %c0_11 = arith.constant 0 : index
    %13 = vector.load %arg6[%c0_10, %c0_11] : memref<128x1xf32, #tpu.memory_space<vmem>>, vector<128x1xf32>
    %14 = vector.broadcast %13 : vector<128x1xf32> to vector<128x256xf32>
    %15 = arith.addf %12, %14 : vector<128x256xf32>
    %cst_12 = arith.constant 0.000000e+00 : f32
    %16 = vector.broadcast %cst_12 : f32 to vector<128x256xf32>
    %17 = arith.maximumf %15, %16 : vector<128x256xf32>
    %18 = arith.truncf %17 : vector<128x256xf32> to vector<128x256xbf16>
    %c0_13 = arith.constant 0 : index
    %c0_14 = arith.constant 0 : index
    %19 = vector.load %arg7[%c0_13, %c0_14] : memref<1024x128xbf16, #tpu.memory_space<vmem>>, vector<1024x128xbf16>
    %cst_15 = arith.constant dense<0.000000e+00> : vector<1024x256xf32>
    %20 = tpu.matmul %19, %18, %cst_15 {dimension_numbers = #tpu.dot_dimension_numbers<[1], [0], [0], [1], [0, 0, 1, 1], [], []>} : vector<1024x128xbf16>, vector<128x256xbf16>, vector<1024x256xf32> -> vector<1024x256xf32>
    %c0_16 = arith.constant 0 : index
    %c0_17 = arith.constant 0 : index
    %21 = vector.load %arg8[%c0_16, %c0_17] : memref<1024x1xf32, #tpu.memory_space<vmem>>, vector<1024x1xf32>
    %22 = vector.broadcast %21 : vector<1024x1xf32> to vector<1024x256xf32>
    %23 = arith.addf %20, %22 : vector<1024x256xf32>
    %cst_18 = arith.constant 0.000000e+00 : f32
    %24 = vector.broadcast %cst_18 : f32 to vector<1024x256xf32>
    %25 = arith.maximumf %23, %24 : vector<1024x256xf32>
    %cst_19 = arith.constant dense<0xFF800000> : vector<1024xf32>
    %26 = vector.multi_reduction <maximumf>, %25, %cst_19 [1] : vector<1024x256xf32> to vector<1024xf32>
    %27 = vector.shape_cast %26 : vector<1024xf32> to vector<1024x1xf32>
    %c0_i32 = arith.constant 0 : i32
    %28 = arith.cmpi eq, %arg1, %c0_i32 : i32
    %29 = arith.extui %28 : i1 to i32
    %c0_i32_20 = arith.constant 0 : i32
    %30 = arith.cmpi ne, %29, %c0_i32_20 : i32
    scf.if %30 {
      %c0_23 = arith.constant 0 : index
      %c0_24 = arith.constant 0 : index
      %c0_25 = arith.constant 0 : index
      %34 = vector.load %arg9[%c0_23, %c0_24, %c0_25] : memref<1x1024x1xf32, #tpu.memory_space<vmem>>, vector<1x1024x1xf32>
      %35 = vector.shape_cast %34 : vector<1x1024x1xf32> to vector<1024x1xf32>
      %36 = vector.shape_cast %27 : vector<1024x1xf32> to vector<1x1024x1xf32>
      tpu.vector_store %arg9[%c0_23, %c0_24, %c0_25], %36 {strides = array<i32>} : memref<1x1024x1xf32, #tpu.memory_space<vmem>>, vector<1x1024x1xf32>,
    } else {
    }
    %c0_i32_21 = arith.constant 0 : i32
    %31 = arith.cmpi sgt, %arg1, %c0_i32_21 : i32
    %32 = arith.extui %31 : i1 to i32
    %c0_i32_22 = arith.constant 0 : i32
    %33 = arith.cmpi ne, %32, %c0_i32_22 : i32
    scf.if %33 {
      %c0_23 = arith.constant 0 : index
      %c0_24 = arith.constant 0 : index
      %c0_25 = arith.constant 0 : index
      %34 = vector.load %arg9[%c0_23, %c0_24, %c0_25] : memref<1x1024x1xf32, #tpu.memory_space<vmem>>, vector<1x1024x1xf32>
      %35 = vector.shape_cast %34 : vector<1x1024x1xf32> to vector<1024x1xf32>
      %36 = arith.maximumf %35, %27 : vector<1024x1xf32>
      %c0_26 = arith.constant 0 : index
      %c0_27 = arith.constant 0 : index
      %c0_28 = arith.constant 0 : index
      %37 = vector.load %arg9[%c0_26, %c0_27, %c0_28] : memref<1x1024x1xf32, #tpu.memory_space<vmem>>, vector<1x1024x1xf32>
      %38 = vector.shape_cast %37 : vector<1x1024x1xf32> to vector<1024x1xf32>
      %39 = vector.shape_cast %36 : vector<1024x1xf32> to vector<1x1024x1xf32>
      tpu.vector_store %arg9[%c0_26, %c0_27, %c0_28], %39 {strides = array<i32>} : memref<1x1024x1xf32, #tpu.memory_space<vmem>>, vector<1x1024x1xf32>,
    } else {
    }
    return
  }
  func.func @transform_0(%arg0: i32, %arg1: i32) -> (i32, i32, i32) {
    %c0_i32 = arith.constant 0 : i32
    %c0_i32_0 = arith.constant 0 : i32
    return %arg0, %c0_i32, %arg1 : i32, i32, i32
  }
  func.func @transform_1(%arg0: i32, %arg1: i32) -> (i32, i32) {
    %c0_i32 = arith.constant 0 : i32
    %c0_i32_0 = arith.constant 0 : i32
    %c0_i32_1 = arith.constant 0 : i32
    return %c0_i32, %c0_i32_0 : i32, i32
  }
  func.func @transform_2(%arg0: i32, %arg1: i32) -> (i32, i32) {
    %c0_i32 = arith.constant 0 : i32
    %c0_i32_0 = arith.constant 0 : i32
    %c0_i32_1 = arith.constant 0 : i32
    return %c0_i32, %c0_i32_0 : i32, i32
  }
  func.func @transform_3(%arg0: i32, %arg1: i32) -> (i32, i32) {
    %c0_i32 = arith.constant 0 : i32
    %c0_i32_0 = arith.constant 0 : i32
    %c0_i32_1 = arith.constant 0 : i32
    return %c0_i32, %c0_i32_0 : i32, i32
  }
  func.func @transform_4(%arg0: i32, %arg1: i32) -> (i32, i32) {
    %c0_i32 = arith.constant 0 : i32
    %c0_i32_0 = arith.constant 0 : i32
    %c0_i32_1 = arith.constant 0 : i32
    return %c0_i32, %c0_i32_0 : i32, i32
  }
  func.func @transform_5(%arg0: i32, %arg1: i32) -> (i32, i32) {
    %c0_i32 = arith.constant 0 : i32
    %c0_i32_0 = arith.constant 0 : i32
    %c0_i32_1 = arith.constant 0 : i32
    return %c0_i32, %c0_i32_0 : i32, i32
  }
  func.func @transform_6(%arg0: i32, %arg1: i32) -> (i32, i32) {
    %c0_i32 = arith.constant 0 : i32
    %c0_i32_0 = arith.constant 0 : i32
    %c0_i32_1 = arith.constant 0 : i32
    return %c0_i32, %c0_i32_0 : i32, i32
  }
  func.func @transform_7(%arg0: i32, %arg1: i32) -> (i32, i32, i32) {
    %c0_i32 = arith.constant 0 : i32
    %c0_i32_0 = arith.constant 0 : i32
    %c0_i32_1 = arith.constant 0 : i32
    return %arg0, %c0_i32, %c0_i32_0 : i32, i32, i32
  }
}

</mosaic_0001>

<bundles_post_ra>
// kernel: tpu_custom_call.1
= control target key start
LH: loop header
LB: loop body
LE: loop exit
PB: predicated region body
PF: predicated region fallthrough
CT: control target
= control target key end

     0   :  { %s4555_s24 = smov 0   ;;  %s4557_s25 = smov 0   ;;  %s7121_s0 = inlined_call_operand.vmem [shape: f32[2,3,512], index: 0, kind: input, shape index: {}]   ;;  %s7122_s1 = inlined_call_operand.vmem [shape: bf16[64,3], index: 1, kind: input, shape index: {}]   ;;  %s7123_s2 = inlined_call_operand.vmem [shape: f32[64,1], index: 2, kind: input, shape index: {}]   ;;  %s7124_s3 = inlined_call_operand.vmem [shape: bf16[128,64], index: 3, kind: input, shape index: {}]   ;;  %s7125_s4 = inlined_call_operand.vmem [shape: f32[128,1], index: 4, kind: input, shape index: {}]   ;;  %s7126_s5 = inlined_call_operand.vmem [shape: bf16[1024,128], index: 5, kind: input, shape index: {}]   ;;  %s7127_s6 = inlined_call_operand.vmem [shape: f32[1024,1], index: 6, kind: input, shape index: {}]   ;;  %s7128_s7 = inlined_call_operand.vmem [shape: f32[2,1024,1], index: 7, kind: output, shape index: {}]  }
   0x1   :  { %s4559_s26 = smov 0   ;;  %s4561_s27 = smov 0  }
   0x2   :  { %s4563_s28 = smov 0  }
   0x3 LB: > { %s26_s29 = sadd.s32 1, %s4503_s26  ;;  %s29_s30 = sadd.s32 1, %s4507_s27  ;;  %s4511_s28 = sphi %s4563_s28, %s17_s28   ;;  %s4507_s27 = sphi %s4561_s27, %s7564_s27   ;;  %s4503_s26 = sphi %s4559_s26, %s7563_s26   ;;  %s4499_s25 = sphi %s4557_s25, %s7562_s25   ;;  %s4495_s24 = sphi %s4555_s24, %s7561_s24  }
   0x4   : > { %p27_p0 = scmp.ge.s32.totalorder %s26_s29, 2  ;;  %p3997_p1 = scmp.ge.s32.totalorder %s4511_s28, 1 }
   0x5   : > { %p256_p2 = scmp.lt.s32.totalorder %s4511_s28, 5 }
   0x6   : > { %s7566_s29 = smov (%p27_p0, %s26_s29), 0  ;;  %s7568_s30 = smov (!%p27_p0, %s29_s30), %s4507_s27 }
   0x7   : > { %p257_p3 = pnand %p3997_p1, %p256_p2  ;;  %p31_p4 = scmp.ge.s32.totalorder %s7568_s30, 2 }
   0x9   : > { %s7570_s30 = smov (%p31_p4, %s7568_s30), 0  ;;  %260 = sbr.rel (%p257_p3) target bundleno = 1608 (0x648), region = 48 }
   0xe   : > { %v329_v0 = vld [vmem:[%s7123_s2 + $0x20] sm:$0xff]  ;;  %v327_v1 = vld [vmem:[%s7123_s2 + $0x10] sm:$0xff]  ;;  %s3998_s14 = sshll.u32 %s4495_s24, 1  ;;  %p293_p5 = scmp.lt.s32.totalorder %s4499_s25, 1  ;;  %v4513_v3 = vmov 0   ;;  %v330_v4 = vld [vmem:[%s7123_s2 + $0x28] sm:$0xff] }
   0xf   : > { %v325_v2 = vld [vmem:[%s7123_s2] sm:$0xff]  ;;  %4472 = vset.pattern.permute.xlu2 %v4513_v3  ;;  %4471 = vset.pattern.permute.xlu1 %v4513_v3  ;;  %p295_p6 = scmp.lt.s32.totalorder %s3998_s14, 3  ;;  %v328_v5 = vld [vmem:[%s7123_s2 + $0x18] sm:$0xff]  ;;  %v326_v6 = vld [vmem:[%s7123_s2 + $0x8] sm:$0xff]  ;;  %vm406_vm0 = vcmask 1040384   ;;  %vm407_vm1 = vcmask 1041408  }
  0x10   : > { %4470 = vset.pattern.permute.xlu0 %v4513_v3  ;;  %355 = vperm.xlu2 %4472, %v329_v0   ;;  %s7572_s25 = smov (!%p293_p5, %s4499_s25), 1  ;;  %v4514_v8 = vmov 65535   ;;  %v514_v10 = vld [vmem:[%s7125_s4] sm:$0xff]  ;;  %v332_v11 = vld [vmem:[%s7123_s2 + $0x38] sm:$0xff]  ;;  %v331_v12 = vld [vmem:[%s7123_s2 + $0x30] sm:$0xff]  ;;  %vm393_vm2 = vcmask 23552  }
  0x11   : > { %345 = vperm.xlu1 %4471, %v327_v1   ;;  %335 = vperm.xlu0 %4470, %v325_v2   ;;  %s7574_s14 = smov (!%p295_p6, %s3998_s14), 3  ;;  %s3999_s15 = sshll.u32 %s7572_s25, 2  ;;  %v408_v9 = vsel %vm406_vm0, 4294967295, %v4514_v8  ;;  %v4336_v20 = vld [vmem:[%s7122_s1] sm:$0xff]  ;;  %v517_v21 = vld [vmem:[%s7125_s4 + $0x18] sm:$0xff]  ;;  %v516_v22 = vld [vmem:[%s7125_s4 + $0x10] sm:$0xff] }
  0x12   : > { %s4335_s16 = sshll.u32 %s7572_s25, 10  ;;  %s298_s17 = sadd.s32 %s3999_s15, %s7574_s14  ;;  %v409_v13 = vsel %vm407_vm1, %v408_v9, 0  ;;  %v515_v23 = vld [vmem:[%s7125_s4 + $0x8] sm:$0xff]  ;;  %v520_v24 = vld [vmem:[%s7125_s4 + $0x30] sm:$0xff]  ;;  %v518_v26 = vld [vmem:[%s7125_s4 + $0x20] sm:$0xff]  ;;  %vm650_vm3 = vcmask 523264  }
  0x13   : > { %s4600_s20 = scalar_lea.vmem %s7128_s7, %s4335_s16  ;;  %s4000_s21 = sshll.u32 %s298_s17, 2  ;;  %v519_v25 = vld [vmem:[%s7125_s4 + $0x28] sm:$0xff]  ;;  %v522_v29 = vld [vmem:[%s7125_s4 + $0x40] sm:$0xff]  ;;  %v521_v30 = vld [vmem:[%s7125_s4 + $0x38] sm:$0xff] }
  0x14   : > { %s300_s10 = scalar_lea.vmem %s7121_s0, %s4000_s21  ;;  %v4337_v27 = vld [vmem:[%s7122_s1 + $0x8] sm:$0xff]  ;;  %v526_v31 = vld [vmem:[%s7125_s4 + $0x60] sm:$0xff]  ;;  %v525_v32 = vld [vmem:[%s7125_s4 + $0x58] sm:$0xff]  ;;  %p4331_p7 = scmp.ne.s32.totalorder %s4495_s24, 0 }
  0x15   : > { %v308_v7 = vld [vmem:[%s300_s10] sm:$0x77]  ;;  %v523_v28 = vld [vmem:[%s7125_s4 + $0x48] sm:$0xff]  ;;  %v524_v33 = vld [vmem:[%s7125_s4 + $0x50] sm:$0xff] }
  0x16   : > { %310 = vst [vmem:[#allocation1] ss:$2 sm:$0xff] %v308_v7  ;;  %v4338_v34 = vld [vmem:[%s7122_s1 + $0x10] sm:$0xff]  ;;  %v529_v35 = vld [vmem:[%s7125_s4 + $0x78] sm:$0xff]  ;;  %v527_v37 = vld [vmem:[%s7125_s4 + $0x68] sm:$0xff] }
  0x17   : > { %v528_v36 = vld [vmem:[%s7125_s4 + $0x70] sm:$0xff]  ;;  %v950_v39 = vld [vmem:[%s7127_s6 + $0x8] sm:$0xff]  ;;  %v949_v40 = vld [vmem:[%s7127_s6] sm:$0xff] }
  0x18   : > { %360 = vperm.xlu2 %4472, %v330_v4   ;;  %v951_v38 = vld [vmem:[%s7127_s6 + $0x10] sm:$0xff]  ;;  %v4339_v41 = vld [vmem:[%s7122_s1 + $0x18] sm:$0xff]  ;;  %v954_v42 = vld [vmem:[%s7127_s6 + $0x28] sm:$0xff] }
  0x19   : > { %350 = vperm.xlu1 %4471, %v328_v5   ;;  %340 = vperm.xlu0 %4470, %v326_v6   ;;  %v953_v43 = vld [vmem:[%s7127_s6 + $0x20] sm:$0xff]  ;;  %v952_v44 = vld [vmem:[%s7127_s6 + $0x18] sm:$0xff]  ;;  %v955_v47 = vld [vmem:[%s7127_s6 + $0x30] sm:$0xff] }
  0x1a   : > { %v957_v45 = vld [vmem:[%s7127_s6 + $0x40] sm:$0xff]  ;;  %v956_v46 = vld [vmem:[%s7127_s6 + $0x38] sm:$0xff]  ;;  %v959_v49 = vld [vmem:[%s7127_s6 + $0x50] sm:$0xff] }
  0x1b   : > { %v960_v48 = vld [vmem:[%s7127_s6 + $0x58] sm:$0xff]  ;;  %v958_v50 = vld [vmem:[%s7127_s6 + $0x48] sm:$0xff]  ;;  %v963_v51 = vld [vmem:[%s7127_s6 + $0x70] sm:$0xff] }
  0x1c   : > { %v962_v52 = vld [vmem:[%s7127_s6 + $0x68] sm:$0xff]  ;;  %v961_v53 = vld [vmem:[%s7127_s6 + $0x60] sm:$0xff]  ;;  %v964_v56 = vld [vmem:[%s7127_s6 + $0x78] sm:$0xff] }
  0x1d   : > { %v311_v14 = vld.sshfl [vmem:[#allocation1] sm:$0xff pattern:$0x75316420]  ;;  %v312_v15 = vld.sshfl [vmem:[#allocation1 + $0x8] sm:$0xff pattern:$0x75316420] }
  0x1e   : > { %v315_v16 = vpack.c.bf16 %v311_v14, %v311_v14  ;;  %v316_v17 = vpack.c.bf16 %v312_v15, %v312_v15  ;;  %v966_v54 = vld [vmem:[%s7127_s6 + $0x88] sm:$0xff]  ;;  %v965_v55 = vld [vmem:[%s7127_s6 + $0x80] sm:$0xff]  ;;  %v968_v58 = vld [vmem:[%s7127_s6 + $0x98] sm:$0xff] }
  0x1f   : > { %v969_v57 = vld [vmem:[%s7127_s6 + $0xa0] sm:$0xff]  ;;  %v967_v59 = vld [vmem:[%s7127_s6 + $0x90] sm:$0xff]  ;;  %v972_v60 = vld [vmem:[%s7127_s6 + $0xb8] sm:$0xff] }
  0x20   : > { %532 = vperm.xlu2 %4472, %v514_v10   ;;  %v411_v18 = vand.u32 %v409_v13, %v315_v16  ;;  %v414_v19 = vand.u32 %v409_v13, %v316_v17  ;;  %v971_v61 = vld [vmem:[%s7127_s6 + $0xb0] sm:$0xff]  ;;  %v970_v62 = vld [vmem:[%s7127_s6 + $0xa8] sm:$0xff]  ;;  %v973_v1 = vld [vmem:[%s7127_s6 + $0xc0] sm:$0xff] }
  0x21   : > { %370 = vperm.xlu1 %4471, %v332_v11   ;;  %365 = vperm.xlu0 %4470, %v331_v12   ;;  %v975_v63 = vld [vmem:[%s7127_s6 + $0xd0] sm:$0xff]  ;;  %v974_v0 = vld [vmem:[%s7127_s6 + $0xc8] sm:$0xff]  ;;  %v977_v3 = vld [vmem:[%s7127_s6 + $0xe0] sm:$0xff] }
  0x22   : > { %423 = vmatpush.bf16.msra.mxu0 %v411_v18  ;;  %452 = vmatpush.bf16.msra.mxu1 %v414_v19  ;;  %v978_v2 = vld [vmem:[%s7127_s6 + $0xe8] sm:$0xff]  ;;  %v976_v4 = vld [vmem:[%s7127_s6 + $0xd8] sm:$0xff]  ;;  %v981_v5 = vld [vmem:[%s7127_s6 + $0x100] sm:$0xff] }
  0x23   : > { %v980_v6 = vld [vmem:[%s7127_s6 + $0xf8] sm:$0xff]  ;;  %v979_v7 = vld [vmem:[%s7127_s6 + $0xf0] sm:$0xff]  ;;  %v982_v12 = vld [vmem:[%s7127_s6 + $0x108] sm:$0xff] }
  0x24   : > { %v984_v10 = vld [vmem:[%s7127_s6 + $0x118] sm:$0xff]  ;;  %v983_v11 = vld [vmem:[%s7127_s6 + $0x110] sm:$0xff]  ;;  %v986_v16 = vld [vmem:[%s7127_s6 + $0x128] sm:$0xff] }
  0x25   : > { %4019 = vmatmul.msk.bf16.vlgmr.msra.gmra.mxu0 %vm393_vm2, %v4336_v20  ;;  %4023 = vmatmul.msk.bf16.vlgmr.msra.gmra.mxu1 %vm393_vm2, %v4336_v20  ;;  %v987_v15 = vld [vmem:[%s7127_s6 + $0x130] sm:$0xff]  ;;  %v985_v17 = vld [vmem:[%s7127_s6 + $0x120] sm:$0xff]  ;;  %v990_v20 = vld [vmem:[%s7127_s6 + $0x148] sm:$0xff] }
  0x28   : > { %547 = vperm.xlu2 %4472, %v517_v21   ;;  %v989_v21 = vld [vmem:[%s7127_s6 + $0x140] sm:$0xff] }
  0x29   : > { %542 = vperm.xlu1 %4471, %v516_v22   ;;  %537 = vperm.xlu0 %4470, %v515_v23   ;;  %v988_v22 = vld [vmem:[%s7127_s6 + $0x138] sm:$0xff] }
  0x30   : > { %562 = vperm.xlu2 %4472, %v520_v24  }
  0x31   : > { %557 = vperm.xlu1 %4471, %v519_v25   ;;  %552 = vperm.xlu0 %4470, %v518_v26   ;;  %v993_v25 = vld [vmem:[%s7127_s6 + $0x160] sm:$0xff]  ;;  %v992_v26 = vld [vmem:[%s7127_s6 + $0x158] sm:$0xff] }
  0x35   : > { %4020 = vmatmul.msk.bf16.gmra.mxu0 %vm393_vm2, %v4337_v27  ;;  %4024 = vmatmul.msk.bf16.gmra.mxu1 %vm393_vm2, %v4337_v27  ;;  %v991_v27 = vld [vmem:[%s7127_s6 + $0x150] sm:$0xff] }
  0x38   : > { %577 = vperm.xlu2 %4472, %v523_v28  }
  0x39   : > { %572 = vperm.xlu1 %4471, %v522_v29   ;;  %567 = vperm.xlu0 %4470, %v521_v30   ;;  %v996_v30 = vld [vmem:[%s7127_s6 + $0x178] sm:$0xff] }
  0x40   : > { %592 = vperm.xlu2 %4472, %v526_v31  }
  0x41   : > { %587 = vperm.xlu1 %4471, %v525_v32   ;;  %582 = vperm.xlu0 %4470, %v524_v33   ;;  %v995_v32 = vld [vmem:[%s7127_s6 + $0x170] sm:$0xff]  ;;  %v994_v33 = vld [vmem:[%s7127_s6 + $0x168] sm:$0xff] }
  0x45   : > { %4021 = vmatmul.msk.bf16.gmra.mxu0 %vm393_vm2, %v4338_v34  ;;  %4025 = vmatmul.msk.bf16.gmra.mxu1 %vm393_vm2, %v4338_v34 }
  0x48   : > { %607 = vperm.xlu2 %4472, %v529_v35  }
  0x49   : > { %602 = vperm.xlu1 %4471, %v528_v36   ;;  %597 = vperm.xlu0 %4470, %v527_v37   ;;  %v999_v37 = vld [vmem:[%s7127_s6 + $0x190] sm:$0xff] }
  0x50   : > { %1089 = vperm.xlu2 %4472, %v951_v38   ;;  %v998_v38 = vld [vmem:[%s7127_s6 + $0x188] sm:$0xff] }
  0x51   : > { %1084 = vperm.xlu1 %4471, %v950_v39   ;;  %1079 = vperm.xlu0 %4470, %v949_v40   ;;  %v997_v39 = vld [vmem:[%s7127_s6 + $0x180] sm:$0xff] }
  0x55   : > { %4022 = vmatmul.msk.bf16.gmra.mxu0 %vm393_vm2, %v4339_v41  ;;  %4026 = vmatmul.msk.bf16.gmra.mxu1 %vm393_vm2, %v4339_v41 }
  0x58   : > { %1104 = vperm.xlu2 %4472, %v954_v42  }
  0x59   : > { %1099 = vperm.xlu1 %4471, %v953_v43   ;;  %1094 = vperm.xlu0 %4470, %v952_v44  }
  0x60   : > { %1119 = vperm.xlu2 %4472, %v957_v45   ;;  %v1002_v45 = vld [vmem:[%s7127_s6 + $0x1a8] sm:$0xff] }
  0x61   : > { %1114 = vperm.xlu1 %4471, %v956_v46   ;;  %1109 = vperm.xlu0 %4470, %v955_v47   ;;  %v1001_v46 = vld [vmem:[%s7127_s6 + $0x1a0] sm:$0xff]  ;;  %v1000_v47 = vld [vmem:[%s7127_s6 + $0x198] sm:$0xff] }
  0x68   : > { %1134 = vperm.xlu2 %4472, %v960_v48  }
  0x69   : > { %1129 = vperm.xlu1 %4471, %v959_v49   ;;  %1124 = vperm.xlu0 %4470, %v958_v50  }
  0x6a   : > { %v356_v41 = vpop.permute.xlu2 %355 }
  0x70   : > { %1149 = vperm.xlu2 %4472, %v963_v51  }
  0x71   : > { %1144 = vperm.xlu1 %4471, %v962_v52   ;;  %1139 = vperm.xlu0 %4470, %v961_v53  }
  0x72   : > { %v361_v49 = vpop.permute.xlu2 %360 }
  0x78   : > { %1164 = vperm.xlu2 %4472, %v966_v54  }
  0x79   : > { %1159 = vperm.xlu1 %4471, %v965_v55   ;;  %1154 = vperm.xlu0 %4470, %v964_v56  }
  0x80   : > { %1179 = vperm.xlu2 %4472, %v969_v57  }
  0x81   : > { %1174 = vperm.xlu1 %4471, %v968_v58   ;;  %1169 = vperm.xlu0 %4470, %v967_v59   ;;  %v1005_v59 = vld [vmem:[%s7127_s6 + $0x1c0] sm:$0xff] }
  0x83   : > { %v4838_v31 = vpop.permute.xlu0 %335  ;;  %v346_v34 = vpop.permute.xlu1 %345 }
  0x88   : > { %1194 = vperm.xlu2 %4472, %v972_v60  }
  0x89   : > { %1189 = vperm.xlu1 %4471, %v971_v61   ;;  %1184 = vperm.xlu0 %4470, %v970_v62   ;;  %v1004_v62 = vld [vmem:[%s7127_s6 + $0x1b8] sm:$0xff] }
  0x8b   : > { %v341_v40 = vpop.permute.xlu0 %340  ;;  %v351_v42 = vpop.permute.xlu1 %350 }
  0x90   : > { %1209 = vperm.xlu2 %4472, %v975_v63   ;;  %v1003_v63 = vld [vmem:[%s7127_s6 + $0x1b0] sm:$0xff] }
  0x91   : > { %1204 = vperm.xlu1 %4471, %v974_v0   ;;  %1199 = vperm.xlu0 %4470, %v973_v1  }
  0x93   : > { %v366_v48 = vpop.permute.xlu0 %365  ;;  %v371_v50 = vpop.permute.xlu1 %370 }
  0x98   : > { %1224 = vperm.xlu2 %4472, %v978_v2  }
  0x99   : > { %1219 = vperm.xlu1 %4471, %v977_v3   ;;  %1214 = vperm.xlu0 %4470, %v976_v4  }
  0xa0   : > { %1239 = vperm.xlu2 %4472, %v981_v5  }
  0xa1   : > { %1234 = vperm.xlu1 %4471, %v980_v6   ;;  %1229 = vperm.xlu0 %4470, %v979_v7  }
  0xa2   : > { %v4787_v8 = vpop.f32.mrf.mxu0  ;;  %v4789_v9 = vpop.f32.mrf.mxu1 }
  0xa8   : > { %1254 = vperm.xlu2 %4472, %v984_v10  }
  0xa9   : > { %1249 = vperm.xlu1 %4471, %v983_v11   ;;  %1244 = vperm.xlu0 %4470, %v982_v12  }
  0xaa   : > { %v4800_v13 = vpop.f32.mrf.mxu0  ;;  %v4802_v14 = vpop.f32.mrf.mxu1 }
  0xb0   : > { %1269 = vperm.xlu2 %4472, %v987_v15  }
  0xb1   : > { %1264 = vperm.xlu1 %4471, %v986_v16   ;;  %1259 = vperm.xlu0 %4470, %v985_v17  }
  0xb2   : > { %v4813_v18 = vpop.f32.mrf.mxu0  ;;  %v4815_v19 = vpop.f32.mrf.mxu1 }
  0xb3   : > { %v431_v12 = vadd.f32 %v4813_v18, %v346_v34  ;;  %v460_v15 = vadd.f32 %v4815_v19, %v346_v34  ;;  %v1007_v18 = vld [vmem:[%s7127_s6 + $0x1d0] sm:$0xff]  ;;  %v1006_v19 = vld [vmem:[%s7127_s6 + $0x1c8] sm:$0xff] }
  0xb8   : > { %1284 = vperm.xlu2 %4472, %v990_v20   ;;  %v428_v20 = vadd.f32 %v4800_v13, %v341_v40  ;;  %v426_v13 = vadd.f32 %v4787_v8, %v4838_v31 }
  0xb9   : > { %1279 = vperm.xlu1 %4471, %v989_v21   ;;  %1274 = vperm.xlu0 %4470, %v988_v22   ;;  %v457_v21 = vadd.f32 %v4802_v14, %v341_v40  ;;  %v455_v14 = vadd.f32 %v4789_v9, %v4838_v31  ;;  %v1011_v9 = vld [vmem:[%s7127_s6 + $0x1f0] sm:$0xff]  ;;  %v1010_v31 = vld [vmem:[%s7127_s6 + $0x1e8] sm:$0xff]  ;;  %v1013_v40 = vld [vmem:[%s7127_s6 + $0x200] sm:$0xff] }
  0xba   : > { %v432_v23 = vpop.f32.mrf.mxu0  ;;  %v461_v24 = vpop.f32.mrf.mxu1  ;;  %v474_v34 = vmax.f32 %v426_v13, 0.0  ;;  %v1046_v13 = vld [vmem:[%s7127_s6 + $0x308] sm:$0xff] }
  0xbb   : > { %v433_v4 = vadd.f32 %v432_v23, %v351_v42  ;;  %v462_v5 = vadd.f32 %v461_v24, %v351_v42  ;;  %v1017_v42 = vld [vmem:[%s7127_s6 + $0x220] sm:$0xff] }
  0xbd   : > { %v480_v22 = vmax.f32 %v433_v4, 0.0  ;;  %v481_v23 = vmax.f32 %v462_v5, 0.0  ;;  %v4998_v4 = vpop.permute.xlu0 %537  ;;  %v1038_v5 = vld [vmem:[%s7127_s6 + $0x2c8] sm:$0xff] }
  0xc0   : > { %1299 = vperm.xlu2 %4472, %v993_v25  }
  0xc1   : > { %1294 = vperm.xlu1 %4471, %v992_v26   ;;  %1289 = vperm.xlu0 %4470, %v991_v27   ;;  %v1008_v26 = vld [vmem:[%s7127_s6 + $0x1d8] sm:$0xff]  ;;  %v478_v27 = vmax.f32 %v431_v12, 0.0  ;;  %v1041_v12 = vld [vmem:[%s7127_s6 + $0x2e0] sm:$0xff] }
  0xc2   : > { %v435_v28 = vpop.f32.mrf.mxu0  ;;  %v464_v29 = vpop.f32.mrf.mxu1 }
  0xc3   : > { %v436_v60 = vadd.f32 %v435_v28, %v356_v41  ;;  %v465_v61 = vadd.f32 %v464_v29, %v356_v41  ;;  %v479_v28 = vmax.f32 %v460_v15, 0.0  ;;  %v476_v29 = vmax.f32 %v428_v20, 0.0  ;;  %v1012_v41 = vld [vmem:[%s7127_s6 + $0x1f8] sm:$0xff]  ;;  %v4345_v20 = vld [vmem:[%s7124_s3 + $0x28] sm:$0xff] }
  0xc5   : > { %v482_v16 = vmax.f32 %v436_v60, 0.0  ;;  %v483_v17 = vmax.f32 %v465_v61, 0.0  ;;  %v1032_v60 = vld [vmem:[%s7127_s6 + $0x298] sm:$0xff]  ;;  %v1031_v61 = vld [vmem:[%s7127_s6 + $0x290] sm:$0xff]  ;;  %v5016_v15 = vpop.permute.xlu0 %552 }
  0xc8   : > { %1314 = vperm.xlu2 %4472, %v996_v30   ;;  %v477_v30 = vmax.f32 %v457_v21, 0.0 }
  0xc9   : > { %1309 = vperm.xlu1 %4471, %v995_v32   ;;  %1304 = vperm.xlu0 %4470, %v994_v33   ;;  %v492_v32 = vpack.c.bf16 %v480_v22, %v478_v27  ;;  %v493_v33 = vpack.c.bf16 %v481_v23, %v479_v28  ;;  %v1044_v22 = vld [vmem:[%s7127_s6 + $0x2f8] sm:$0xff]  ;;  %v4346_v27 = vld [vmem:[%s7124_s3 + $0x30] sm:$0xff] }
  0xca   : > { %v437_v35 = vpop.f32.mrf.mxu0  ;;  %v466_v36 = vpop.f32.mrf.mxu1 }
  0xcb   : > { %v438_v55 = vadd.f32 %v437_v35, %v361_v49  ;;  %v467_v56 = vadd.f32 %v466_v36, %v361_v49  ;;  %v475_v35 = vmax.f32 %v455_v14, 0.0  ;;  %v490_v36 = vpack.c.bf16 %v476_v29, %v474_v34  ;;  %v1023_v49 = vld [vmem:[%s7127_s6 + $0x250] sm:$0xff]  ;;  %v1045_v14 = vld [vmem:[%s7127_s6 + $0x300] sm:$0xff]  ;;  %v1048_v34 = vld [vmem:[%s7127_s6 + $0x318] sm:$0xff] }
  0xcd   : > { %v484_v6 = vmax.f32 %v438_v55, 0.0  ;;  %v485_v7 = vmax.f32 %v467_v56, 0.0  ;;  %v491_v8 = vpack.c.bf16 %v477_v30, %v475_v35  ;;  %v1024_v55 = vld [vmem:[%s7127_s6 + $0x258] sm:$0xff]  ;;  %v1029_v56 = vld [vmem:[%s7127_s6 + $0x280] sm:$0xff] }
  0xcf   : > { %v494_v24 = vpack.c.bf16 %v484_v6, %v482_v16  ;;  %v495_v25 = vpack.c.bf16 %v485_v7, %v483_v17  ;;  %v1037_v7 = vld [vmem:[%s7127_s6 + $0x2c0] sm:$0xff]  ;;  %v1040_v16 = vld [vmem:[%s7127_s6 + $0x2d8] sm:$0xff]  ;;  %v1039_v17 = vld [vmem:[%s7127_s6 + $0x2d0] sm:$0xff] }
  0xd0   : > { %1329 = vperm.xlu2 %4472, %v999_v37   ;;  %v1009_v37 = vld [vmem:[%s7127_s6 + $0x1e0] sm:$0xff] }
  0xd1   : > { %1324 = vperm.xlu1 %4471, %v998_v38   ;;  %1319 = vperm.xlu0 %4470, %v997_v39   ;;  %v4340_v38 = vld [vmem:[%s7124_s3] sm:$0xff]  ;;  %v1014_v39 = vld [vmem:[%s7127_s6 + $0x208] sm:$0xff] }
  0xd2   : > { %v440_v43 = vpop.f32.mrf.mxu0  ;;  %v469_v44 = vpop.f32.mrf.mxu1 }
  0xd3   : > { %v441_v51 = vadd.f32 %v440_v43, %v366_v48  ;;  %v470_v52 = vadd.f32 %v469_v44, %v366_v48  ;;  %v1016_v43 = vld [vmem:[%s7127_s6 + $0x218] sm:$0xff]  ;;  %v1015_v44 = vld [vmem:[%s7127_s6 + $0x210] sm:$0xff]  ;;  %v1018_v48 = vld [vmem:[%s7127_s6 + $0x228] sm:$0xff] }
  0xd5   : > { %v486_v0 = vmax.f32 %v441_v51, 0.0  ;;  %v487_v1 = vmax.f32 %v470_v52, 0.0  ;;  %v1021_v51 = vld [vmem:[%s7127_s6 + $0x240] sm:$0xff]  ;;  %v4342_v52 = vld [vmem:[%s7124_s3 + $0x10] sm:$0xff] }
  0xd8   : > { %1344 = vperm.xlu2 %4472, %v1002_v45   ;;  %v4341_v45 = vld [vmem:[%s7124_s3 + $0x8] sm:$0xff] }
  0xd9   : > { %1339 = vperm.xlu1 %4471, %v1001_v46   ;;  %1334 = vperm.xlu0 %4470, %v1000_v47   ;;  %v1020_v46 = vld [vmem:[%s7127_s6 + $0x238] sm:$0xff]  ;;  %v1019_v47 = vld [vmem:[%s7127_s6 + $0x230] sm:$0xff] }
  0xda   : > { %v442_v53 = vpop.f32.mrf.mxu0  ;;  %v471_v54 = vpop.f32.mrf.mxu1 }
  0xdb   : > { %v443_v57 = vadd.f32 %v442_v53, %v371_v50  ;;  %v472_v58 = vadd.f32 %v471_v54, %v371_v50  ;;  %v1022_v50 = vld [vmem:[%s7127_s6 + $0x248] sm:$0xff]  ;;  %v1025_v54 = vld [vmem:[%s7127_s6 + $0x260] sm:$0xff] }
  0xdc   : > { %v1026_v53 = vld [vmem:[%s7127_s6 + $0x268] sm:$0xff] }
  0xdd   : > { %v488_v2 = vmax.f32 %v443_v57, 0.0  ;;  %v489_v3 = vmax.f32 %v472_v58, 0.0  ;;  %v1028_v57 = vld [vmem:[%s7127_s6 + $0x278] sm:$0xff]  ;;  %v1027_v58 = vld [vmem:[%s7127_s6 + $0x270] sm:$0xff] }
  0xdf   : > { %v496_v10 = vpack.c.bf16 %v488_v2, %v486_v0  ;;  %v497_v11 = vpack.c.bf16 %v489_v3, %v487_v1  ;;  %v1035_v0 = vld [vmem:[%s7127_s6 + $0x2b0] sm:$0xff]  ;;  %v1034_v1 = vld [vmem:[%s7127_s6 + $0x2a8] sm:$0xff]  ;;  %v1033_v2 = vld [vmem:[%s7127_s6 + $0x2a0] sm:$0xff] }
  0xe0   : > { %1359 = vperm.xlu2 %4472, %v1005_v59   ;;  %v4343_v59 = vld [vmem:[%s7124_s3 + $0x18] sm:$0xff]  ;;  %v4344_v3 = vld [vmem:[%s7124_s3 + $0x20] sm:$0xff] }
  0xe1   : > { %1354 = vperm.xlu1 %4471, %v1004_v62   ;;  %1349 = vperm.xlu0 %4470, %v1003_v63   ;;  %v1030_v62 = vld [vmem:[%s7127_s6 + $0x288] sm:$0xff]  ;;  %v4982_v63 = vpop.permute.xlu2 %532 }
  0xe2   : > { %679 = vmatpush.bf16.msra.mxu2 %v496_v10  ;;  %728 = vmatpush.bf16.msra.mxu3 %v497_v11  ;;  %v1036_v10 = vld [vmem:[%s7127_s6 + $0x2b8] sm:$0xff]  ;;  %v5011_v11 = vpop.permute.xlu1 %542 }
  0xe6   : > { %680 = vmatpush.bf16.msra.mxu2 %v494_v24  ;;  %729 = vmatpush.bf16.msra.mxu3 %v495_v25  ;;  %v1043_v24 = vld [vmem:[%s7127_s6 + $0x2f0] sm:$0xff]  ;;  %v1042_v25 = vld [vmem:[%s7127_s6 + $0x2e8] sm:$0xff] }
  0xe8   : > { %1374 = vperm.xlu2 %4472, %v1008_v26   ;;  %v5042_v26 = vpop.permute.xlu0 %567 }
  0xe9   : > { %1369 = vperm.xlu1 %4471, %v1007_v18   ;;  %1364 = vperm.xlu0 %4470, %v1006_v19   ;;  %v5003_v6 = vpop.permute.xlu2 %547  ;;  %v1047_v19 = vld [vmem:[%s7127_s6 + $0x310] sm:$0xff] }
  0xea   : > { %681 = vmatpush.bf16.msra.mxu2 %v492_v32  ;;  %730 = vmatpush.bf16.msra.mxu3 %v493_v33  ;;  %v5034_v23 = vpop.permute.xlu1 %557  ;;  %v1050_v32 = vld [vmem:[%s7127_s6 + $0x328] sm:$0xff]  ;;  %v1049_v33 = vld [vmem:[%s7127_s6 + $0x320] sm:$0xff] }
  0xee   : > { %682 = vmatpush.bf16.msra.mxu2 %v490_v36  ;;  %731 = vmatpush.bf16.msra.mxu3 %v491_v8  ;;  %v1053_v8 = vld [vmem:[%s7127_s6 + $0x340] sm:$0xff] }
  0xf0   : > { %1389 = vperm.xlu2 %4472, %v1011_v9   ;;  %v5060_v29 = vpop.permute.xlu0 %582 }
  0xf1   : > { %1384 = vperm.xlu1 %4471, %v1010_v31   ;;  %1379 = vperm.xlu0 %4470, %v1009_v37   ;;  %v5027_v21 = vpop.permute.xlu2 %562  ;;  %v1052_v31 = vld [vmem:[%s7127_s6 + $0x338] sm:$0xff]  ;;  %v1051_v37 = vld [vmem:[%s7127_s6 + $0x330] sm:$0xff] }
  0xf2   : > { %4059 = vmatmul.msk.bf16.vlgmr.msra.gmra.mxu2 %vm650_vm3, %v4340_v38  ;;  %4067 = vmatmul.msk.bf16.vlgmr.msra.gmra.mxu3 %vm650_vm3, %v4340_v38  ;;  %v5058_v28 = vpop.permute.xlu1 %572  ;;  %v4347_v38 = vld [vmem:[%s7124_s3 + $0x38] sm:$0xff] }
  0xf8   : > { %1404 = vperm.xlu2 %4472, %v1014_v39   ;;  %v5077_v36 = vpop.permute.xlu0 %597 }
  0xf9   : > { %1399 = vperm.xlu1 %4471, %v1013_v40   ;;  %1394 = vperm.xlu0 %4470, %v1012_v41   ;;  %v5044_v18 = vpop.permute.xlu2 %577  ;;  %v1056_v40 = vld [vmem:[%s7127_s6 + $0x358] sm:$0xff] }
  0xfa   : > { %v5075_v35 = vpop.permute.xlu1 %587 }
 0x100   : > { %1419 = vperm.xlu2 %4472, %v1017_v42   ;;  %v5100_v41 = vpop.permute.xlu0 %1079  ;;  %v1055_v42 = vld [vmem:[%s7127_s6 + $0x350] sm:$0xff] }
 0x101   : > { %1414 = vperm.xlu1 %4471, %v1016_v43   ;;  %1409 = vperm.xlu0 %4470, %v1015_v44   ;;  %v5064_v30 = vpop.permute.xlu2 %592  ;;  %v1054_v43 = vld [vmem:[%s7127_s6 + $0x348] sm:$0xff] }
 0x102   : > { %4060 = vmatmul.msk.bf16.gmra.mxu2 %vm650_vm3, %v4341_v45  ;;  %4068 = vmatmul.msk.bf16.gmra.mxu3 %vm650_vm3, %v4341_v45  ;;  %v5095_v39 = vpop.permute.xlu1 %602  ;;  %v1059_v45 = vld [vmem:[%s7127_s6 + $0x370] sm:$0xff] }
 0x108   : > { %1434 = vperm.xlu2 %4472, %v1020_v46  }
 0x109   : > { %1429 = vperm.xlu1 %4471, %v1019_v47   ;;  %1424 = vperm.xlu0 %4470, %v1018_v48   ;;  %v5082_v9 = vpop.permute.xlu2 %607  ;;  %v1058_v47 = vld [vmem:[%s7127_s6 + $0x368] sm:$0xff]  ;;  %v1057_v48 = vld [vmem:[%s7127_s6 + $0x360] sm:$0xff] }
 0x10a   : > { %v5113_v46 = vpop.permute.xlu1 %1084 }
 0x110   : > { %1449 = vperm.xlu2 %4472, %v1023_v49   ;;  %v5121_v49 = vpop.permute.xlu0 %1094 }
 0x111   : > { %1444 = vperm.xlu1 %4471, %v1022_v50   ;;  %1439 = vperm.xlu0 %4470, %v1021_v51   ;;  %v5108_v44 = vpop.permute.xlu2 %1089  ;;  %7207 = vst [vmem:[#allocation2_spill] sm:$0xff] %v5121_v49 }
 0x112   : > { %4061 = vmatmul.msk.bf16.gmra.mxu2 %vm650_vm3, %v4342_v52  ;;  %4069 = vmatmul.msk.bf16.gmra.mxu3 %vm650_vm3, %v4342_v52 }
 0x118   : > { %1464 = vperm.xlu2 %4472, %v1026_v53   ;;  %v1062_v53 = vld [vmem:[%s7127_s6 + $0x388] sm:$0xff] }
 0x119   : > { %1459 = vperm.xlu1 %4471, %v1025_v54   ;;  %1454 = vperm.xlu0 %4470, %v1024_v55   ;;  %v5123_v50 = vpop.permute.xlu2 %1104  ;;  %v1061_v54 = vld [vmem:[%s7127_s6 + $0x380] sm:$0xff]  ;;  %v1060_v55 = vld [vmem:[%s7127_s6 + $0x378] sm:$0xff] }
 0x11a   : > { %7208 = vst [vmem:[#allocation3_spill] sm:$0xff] %v5123_v50 }
 0x120   : > { %1479 = vperm.xlu2 %4472, %v1029_v56   ;;  %v5138_v56 = vpop.permute.xlu1 %1099 }
 0x121   : > { %1474 = vperm.xlu1 %4471, %v1028_v57   ;;  %1469 = vperm.xlu0 %4470, %v1027_v58   ;;  %7209 = vst [vmem:[#allocation4_spill] sm:$0xff] %v5138_v56  ;;  %v5140_v57 = vpop.permute.xlu0 %1109  ;;  %v5142_v58 = vpop.permute.xlu2 %1119 }
 0x122   : > { %4062 = vmatmul.msk.bf16.gmra.mxu2 %vm650_vm3, %v4343_v59  ;;  %4070 = vmatmul.msk.bf16.gmra.mxu3 %vm650_vm3, %v4343_v59  ;;  %7210 = vst [vmem:[#allocation5_spill] sm:$0xff] %v5140_v57 }
 0x123   : > { %7211 = vst [vmem:[#allocation6_spill] sm:$0xff] %v5142_v58 }
 0x128   : > { %1494 = vperm.xlu2 %4472, %v1032_v60  }
 0x129   : > { %1489 = vperm.xlu1 %4471, %v1031_v61   ;;  %1484 = vperm.xlu0 %4470, %v1030_v62   ;;  %v1065_v61 = vld [vmem:[%s7127_s6 + $0x3a0] sm:$0xff]  ;;  %v1064_v62 = vld [vmem:[%s7127_s6 + $0x398] sm:$0xff] }
 0x130   : > { %1509 = vperm.xlu2 %4472, %v1035_v0   ;;  %v1063_v0 = vld [vmem:[%s7127_s6 + $0x390] sm:$0xff] }
 0x131   : > { %1504 = vperm.xlu1 %4471, %v1034_v1   ;;  %1499 = vperm.xlu0 %4470, %v1033_v2   ;;  %v5157_v1 = vpop.permute.xlu1 %1114  ;;  %v5159_v2 = vpop.permute.xlu0 %1124 }
 0x132   : > { %4063 = vmatmul.msk.bf16.gmra.mxu2 %vm650_vm3, %v4344_v3  ;;  %4071 = vmatmul.msk.bf16.gmra.mxu3 %vm650_vm3, %v4344_v3  ;;  %7212 = vst [vmem:[#allocation7_spill] sm:$0xff] %v5157_v1 }
 0x133   : > { %7213 = vst [vmem:[#allocation8_spill] sm:$0xff] %v5159_v2 }
 0x138   : > { %1524 = vperm.xlu2 %4472, %v1038_v5  }
 0x139   : > { %1519 = vperm.xlu1 %4471, %v1037_v7   ;;  %1514 = vperm.xlu0 %4470, %v1036_v10   ;;  %v1068_v7 = vld [vmem:[%s7127_s6 + $0x3b8] sm:$0xff]  ;;  %v5168_v10 = vpop.permute.xlu2 %1134 }
 0x13a   : > { %7214 = vst [vmem:[#allocation9_spill] sm:$0xff] %v5168_v10 }
 0x140   : > { %1539 = vperm.xlu2 %4472, %v1041_v12   ;;  %v1067_v12 = vld [vmem:[%s7127_s6 + $0x3b0] sm:$0xff] }
 0x141   : > { %1534 = vperm.xlu1 %4471, %v1040_v16   ;;  %1529 = vperm.xlu0 %4470, %v1039_v17   ;;  %v1066_v16 = vld [vmem:[%s7127_s6 + $0x3a8] sm:$0xff]  ;;  %v5176_v17 = vpop.permute.xlu1 %1129 }
 0x142   : > { %4064 = vmatmul.msk.bf16.gmra.mxu2 %vm650_vm3, %v4345_v20  ;;  %4072 = vmatmul.msk.bf16.gmra.mxu3 %vm650_vm3, %v4345_v20  ;;  %7215 = vst [vmem:[#allocation10_spill] sm:$0xff] %v5176_v17 }
 0x148   : > { %1554 = vperm.xlu2 %4472, %v1044_v22  }
 0x149   : > { %1549 = vperm.xlu1 %4471, %v1043_v24   ;;  %1544 = vperm.xlu0 %4470, %v1042_v25   ;;  %v1071_v24 = vld [vmem:[%s7127_s6 + $0x3d0] sm:$0xff]  ;;  %v5185_v25 = vpop.permute.xlu0 %1139 }
 0x14a   : > { %7216 = vst [vmem:[#allocation11_spill] sm:$0xff] %v5185_v25 }
 0x150   : > { %1569 = vperm.xlu2 %4472, %v1047_v19   ;;  %v1070_v19 = vld [vmem:[%s7127_s6 + $0x3c8] sm:$0xff] }
 0x151   : > { %1564 = vperm.xlu1 %4471, %v1046_v13   ;;  %1559 = vperm.xlu0 %4470, %v1045_v14   ;;  %v1069_v13 = vld [vmem:[%s7127_s6 + $0x3c0] sm:$0xff]  ;;  %v5193_v14 = vpop.permute.xlu2 %1149 }
 0x152   : > { %4065 = vmatmul.msk.bf16.gmra.mxu2 %vm650_vm3, %v4346_v27  ;;  %4073 = vmatmul.msk.bf16.gmra.mxu3 %vm650_vm3, %v4346_v27  ;;  %7217 = vst [vmem:[#allocation12_spill] sm:$0xff] %v5193_v14 }
 0x158   : > { %1584 = vperm.xlu2 %4472, %v1050_v32  }
 0x159   : > { %1579 = vperm.xlu1 %4471, %v1049_v33   ;;  %1574 = vperm.xlu0 %4470, %v1048_v34   ;;  %v1074_v33 = vld [vmem:[%s7127_s6 + $0x3e8] sm:$0xff]  ;;  %v5202_v34 = vpop.permute.xlu1 %1144 }
 0x15a   : > { %7218 = vst [vmem:[#allocation13_spill] sm:$0xff] %v5202_v34 }
 0x160   : > { %1599 = vperm.xlu2 %4472, %v1053_v8   ;;  %v1073_v8 = vld [vmem:[%s7127_s6 + $0x3e0] sm:$0xff] }
 0x161   : > { %1594 = vperm.xlu1 %4471, %v1052_v31   ;;  %1589 = vperm.xlu0 %4470, %v1051_v37   ;;  %v1072_v31 = vld [vmem:[%s7127_s6 + $0x3d8] sm:$0xff]  ;;  %v5210_v37 = vpop.permute.xlu0 %1154 }
 0x162   : > { %4066 = vmatmul.msk.bf16.gmra.mxu2 %vm650_vm3, %v4347_v38  ;;  %4074 = vmatmul.msk.bf16.gmra.mxu3 %vm650_vm3, %v4347_v38  ;;  %7219 = vst [vmem:[#allocation14_spill] sm:$0xff] %v5210_v37  ;;  %v5212_v38 = vpop.permute.xlu2 %1164 }
 0x163   : > { %7220 = vst [vmem:[#allocation15_spill] sm:$0xff] %v5212_v38 }
 0x168   : > { %1614 = vperm.xlu2 %4472, %v1056_v40  }
 0x169   : > { %1609 = vperm.xlu1 %4471, %v1055_v42   ;;  %1604 = vperm.xlu0 %4470, %v1054_v43   ;;  %v1076_v43 = vld [vmem:[%s7127_s6 + $0x3f8] sm:$0xff] }
 0x170   : > { %1629 = vperm.xlu2 %4472, %v1059_v45   ;;  %v1075_v45 = vld [vmem:[%s7127_s6 + $0x3f0] sm:$0xff] }
 0x171   : > { %1624 = vperm.xlu1 %4471, %v1058_v47   ;;  %1619 = vperm.xlu0 %4470, %v1057_v48   ;;  %v5224_v47 = vpop.permute.xlu1 %1159  ;;  %v5226_v48 = vpop.permute.xlu0 %1169 }
 0x172   : > { %7221 = vst [vmem:[#allocation16_spill] sm:$0xff] %v5224_v47 }
 0x173   : > { %7222 = vst [vmem:[#allocation17_spill] sm:$0xff] %v5226_v48 }
 0x175   : > { %v5125_v51 = vpop.f32.mrf.mxu2  ;;  %v5127_v52 = vpop.f32.mrf.mxu3 }
 0x178   : > { %1644 = vperm.xlu2 %4472, %v1062_v53   ;;  %v5228_v53 = vpop.permute.xlu2 %1179 }
 0x179   : > { %1639 = vperm.xlu1 %4471, %v1061_v54   ;;  %1634 = vperm.xlu0 %4470, %v1060_v55   ;;  %7223 = vst [vmem:[#allocation18_spill] sm:$0xff] %v5228_v53 }
 0x17d   : > { %v5144_v59 = vpop.f32.mrf.mxu2  ;;  %v5146_v60 = vpop.f32.mrf.mxu3 }
 0x180   : > { %1659 = vperm.xlu2 %4472, %v1065_v61   ;;  %v5234_v61 = vpop.permute.xlu1 %1174 }
 0x181   : > { %1654 = vperm.xlu1 %4471, %v1064_v62   ;;  %1649 = vperm.xlu0 %4470, %v1063_v0   ;;  %7224 = vst [vmem:[#allocation19_spill] sm:$0xff] %v5234_v61  ;;  %v5236_v62 = vpop.permute.xlu0 %1184 }
 0x182   : > { %7225 = vst [vmem:[#allocation20_spill] sm:$0xff] %v5236_v62 }
 0x185   : > { %v5161_v3 = vpop.f32.mrf.mxu2  ;;  %v5163_v5 = vpop.f32.mrf.mxu3 }
 0x188   : > { %1674 = vperm.xlu2 %4472, %v1068_v7  }
 0x189   : > { %1669 = vperm.xlu1 %4471, %v1067_v12   ;;  %1664 = vperm.xlu0 %4470, %v1066_v16   ;;  %v5242_v12 = vpop.permute.xlu2 %1194  ;;  %v5244_v16 = vpop.permute.xlu1 %1189 }
 0x18a   : > { %7226 = vst [vmem:[#allocation21_spill] sm:$0xff] %v5242_v12 }
 0x18b   : > { %7227 = vst [vmem:[#allocation22_spill] sm:$0xff] %v5244_v16 }
 0x18d   : > { %v5178_v20 = vpop.f32.mrf.mxu2  ;;  %v5180_v22 = vpop.f32.mrf.mxu3 }
 0x190   : > { %1689 = vperm.xlu2 %4472, %v1071_v24  }
 0x191   : > { %1684 = vperm.xlu1 %4471, %v1070_v19   ;;  %1679 = vperm.xlu0 %4470, %v1069_v13   ;;  %v5250_v13 = vpop.permute.xlu0 %1199 }
 0x192   : > { %7228 = vst [vmem:[#allocation23_spill] sm:$0xff] %v5250_v13 }
 0x195   : > { %v5195_v27 = vpop.f32.mrf.mxu2  ;;  %v5197_v32 = vpop.f32.mrf.mxu3 }
 0x198   : > { %1704 = vperm.xlu2 %4472, %v1074_v33   ;;  %v5252_v33 = vpop.permute.xlu2 %1209 }
 0x199   : > { %1699 = vperm.xlu1 %4471, %v1073_v8   ;;  %1694 = vperm.xlu0 %4470, %v1072_v31   ;;  %7229 = vst [vmem:[#allocation24_spill] sm:$0xff] %v5252_v33 }
 0x19d   : > { %v5214_v40 = vpop.f32.mrf.mxu2  ;;  %v5216_v42 = vpop.f32.mrf.mxu3 }
 0x1a0   : > { %v5258_v62 = vpop.permute.xlu2 %1224 }
 0x1a1   : > { %1714 = vperm.xlu1 %4471, %v1076_v43   ;;  %1709 = vperm.xlu0 %4470, %v1075_v45   ;;  %v5254_v43 = vpop.permute.xlu1 %1204  ;;  %v5256_v45 = vpop.permute.xlu0 %1214  ;;  %7232 = vst [vmem:[#allocation27_spill] sm:$0xff] %v5258_v62 }
 0x1a2   : > { %7230 = vst [vmem:[#allocation25_spill] sm:$0xff] %v5254_v43 }
 0x1a3   : > { %7231 = vst [vmem:[#allocation26_spill] sm:$0xff] %v5256_v45 }
 0x1a5   : > { %v5230_v54 = vpop.f32.mrf.mxu2  ;;  %v5232_v55 = vpop.f32.mrf.mxu3 }
 0x1a8   : > { %v5264_v48 = vpop.permute.xlu2 %1239 }
 0x1a9   : > { %v5260_v61 = vpop.permute.xlu1 %1219  ;;  %v5262_v16 = vpop.permute.xlu0 %1229  ;;  %7235 = vst [vmem:[#allocation30_spill] sm:$0xff] %v5264_v48 }
 0x1aa   : > { %7233 = vst [vmem:[#allocation28_spill] sm:$0xff] %v5260_v61 }
 0x1ab   : > { %7234 = vst [vmem:[#allocation29_spill] sm:$0xff] %v5262_v16 }
 0x1ad   : > { %v5238_v0 = vpop.f32.mrf.mxu2  ;;  %v5240_v7 = vpop.f32.mrf.mxu3 }
 0x1b0   : > { %v5270_v14 = vpop.permute.xlu2 %1254 }
 0x1b1   : > { %v5266_v47 = vpop.permute.xlu1 %1234  ;;  %v5268_v33 = vpop.permute.xlu0 %1244  ;;  %7238 = vst [vmem:[#allocation33_spill] sm:$0xff] %v5270_v14 }
 0x1b2   : > { %7236 = vst [vmem:[#allocation31_spill] sm:$0xff] %v5266_v47 }
 0x1b3   : > { %7237 = vst [vmem:[#allocation32_spill] sm:$0xff] %v5268_v33 }
 0x1b5   : > { %v5246_v24 = vpop.f32.mrf.mxu2  ;;  %v5248_v19 = vpop.f32.mrf.mxu3 }
 0x1b8   : > { %v5276_v61 = vpop.permute.xlu2 %1269 }
 0x1b9   : > { %v5272_v45 = vpop.permute.xlu1 %1249  ;;  %v5274_v25 = vpop.permute.xlu0 %1259  ;;  %7241 = vst [vmem:[#allocation36_spill] sm:$0xff] %v5276_v61 }
 0x1ba   : > { %7239 = vst [vmem:[#allocation34_spill] sm:$0xff] %v5272_v45 }
 0x1bb   : > { %7240 = vst [vmem:[#allocation35_spill] sm:$0xff] %v5274_v25 }
 0x1bd   : > { %v706_v8 = vpop.f32.mrf.mxu2  ;;  %v755_v31 = vpop.f32.mrf.mxu3 }
 0x1c0   : > { %v5282_v47 = vpop.permute.xlu2 %1284 }
 0x1c1   : > { %v5278_v10 = vpop.permute.xlu1 %1264  ;;  %v5280_v17 = vpop.permute.xlu0 %1274  ;;  %7244 = vst [vmem:[#allocation39_spill] sm:$0xff] %v5282_v47 }
 0x1c2   : > { %7242 = vst [vmem:[#allocation37_spill] sm:$0xff] %v5278_v10 }
 0x1c3   : > { %7243 = vst [vmem:[#allocation38_spill] sm:$0xff] %v5280_v17 }
 0x1c5   : > { %v709_v53 = vpop.f32.mrf.mxu2  ;;  %v758_v12 = vpop.f32.mrf.mxu3 }
 0x1c9   : > { %v5291_v57 = vpop.permute.xlu1 %1279 }
 0x1cd   : > { %v711_v38 = vpop.f32.mrf.mxu2  ;;  %v760_v13 = vpop.f32.mrf.mxu3 }
 0x1d5   : > { %v714_v37 = vpop.f32.mrf.mxu2  ;;  %v763_v43 = vpop.f32.mrf.mxu3 }
 0x1d6   : > { %v715_v1 = vadd.f32 %v714_v37, %v5064_v30 }
 0x1dd   : > { %v716_v62 = vpop.f32.mrf.mxu2  ;;  %v765_v34 = vpop.f32.mrf.mxu3 }
 0x1de   : > { %v717_v58 = vadd.f32 %v716_v62, %v5077_v36  ;;  %v766_v10 = vadd.f32 %v765_v34, %v5077_v36  ;;  %v710_v36 = vadd.f32 %v709_v53, %v5060_v29  ;;  %v797_v34 = vmax.f32 %v715_v1, 0.0 }
 0x1df   : > { %v705_v1 = vadd.f32 %v5246_v24, %v5058_v28 }
 0x1e0   : > { %v799_v56 = vmax.f32 %v717_v58, 0.0  ;;  %v800_v37 = vmax.f32 %v766_v10, 0.0 }
 0x1e5   : > { %v719_v16 = vpop.f32.mrf.mxu2  ;;  %v768_v48 = vpop.f32.mrf.mxu3 }
 0x1e6   : > { %v720_v33 = vadd.f32 %v719_v16, %v5095_v39  ;;  %v769_v14 = vadd.f32 %v768_v48, %v5095_v39  ;;  %v764_v39 = vadd.f32 %v763_v43, %v5064_v30  ;;  %v712_v48 = vadd.f32 %v711_v38, %v5075_v35 }
 0x1e7   : > { %v756_v38 = vadd.f32 %v755_v31, %v5044_v18 }
 0x1e8   : > { %v801_v17 = vmax.f32 %v720_v33, 0.0  ;;  %v802_v47 = vmax.f32 %v769_v14, 0.0  ;;  %v5299_v14 = vpop.permute.xlu2 %1299  ;;  %v798_v30 = vmax.f32 %v764_v39, 0.0  ;;  %v795_v58 = vmax.f32 %v712_v48, 0.0 }
 0x1e9   : > { %v792_v24 = vmax.f32 %v756_v38, 0.0  ;;  %v700_v33 = vadd.f32 %v5230_v54, %v5027_v21  ;;  %v746_v54 = vadd.f32 %v5216_v42, %v5034_v23  ;;  %v695_v39 = vadd.f32 %v5195_v27, %v5016_v15 }
 0x1ea   : > { %v818_v10 = vpack.c.bf16 %v800_v37, %v798_v30  ;;  %v736_v30 = vadd.f32 %v5146_v60, %v4998_v4 }
 0x1eb   : > { %v785_v48 = vmax.f32 %v700_v33, 0.0  ;;  %v784_v42 = vmax.f32 %v746_v54, 0.0 }
 0x1ed   : > { %v721_v2 = vpop.f32.mrf.mxu2  ;;  %v770_v45 = vpop.f32.mrf.mxu3 }
 0x1ee   : > { %v722_v25 = vadd.f32 %v721_v2, %v5082_v9  ;;  %v771_v61 = vadd.f32 %v770_v45, %v5082_v9  ;;  %v5295_v2 = vpop.permute.xlu0 %1289  ;;  %v761_v9 = vadd.f32 %v760_v13, %v5075_v35 }
 0x1f0   : > { %v803_v50 = vmax.f32 %v722_v25, 0.0  ;;  %v804_v16 = vmax.f32 %v771_v61, 0.0  ;;  %v759_v25 = vadd.f32 %v758_v12, %v5060_v29  ;;  %v796_v35 = vmax.f32 %v761_v9, 0.0  ;;  %v5322_v43 = vpop.permute.xlu2 %1314 }
 0x1f1   : > { %v754_v29 = vadd.f32 %v5248_v19, %v5058_v28  ;;  %v751_v12 = vadd.f32 %v5240_v7, %v5042_v26  ;;  %v749_v19 = vadd.f32 %v5232_v55, %v5027_v21  ;;  %v744_v21 = vadd.f32 %v5197_v32, %v5016_v15 }
 0x1f2   : > { %v819_v62 = vpack.c.bf16 %v803_v50, %v801_v17  ;;  %v820_v49 = vpack.c.bf16 %v804_v16, %v802_v47  ;;  %v707_v50 = vadd.f32 %v706_v8, %v5044_v18  ;;  %v817_v17 = vpack.c.bf16 %v799_v56, %v797_v34 }
 0x1f3   : > { %v793_v47 = vmax.f32 %v710_v36, 0.0  ;;  %v794_v53 = vmax.f32 %v759_v25, 0.0  ;;  %v702_v56 = vadd.f32 %v5238_v0, %v5042_v26  ;;  %v789_v8 = vmax.f32 %v705_v1, 0.0 }
 0x1f4   : > { %2101 = vmatpush.bf16.msrb.mxu0 %v819_v62  ;;  %4412 = vmatpush.bf16.msrb.mxu2 %v819_v62  ;;  %v791_v18 = vmax.f32 %v707_v50, 0.0  ;;  %v790_v31 = vmax.f32 %v754_v29, 0.0  ;;  %v697_v0 = vadd.f32 %v5214_v40, %v5034_v23  ;;  %v788_v45 = vmax.f32 %v751_v12, 0.0 }
 0x1f5   : > { %2430 = vmatpush.bf16.msrb.mxu1 %v820_v49  ;;  %4420 = vmatpush.bf16.msrb.mxu3 %v820_v49  ;;  %v5308_v49 = vpop.permute.xlu1 %1294  ;;  %v815_v61 = vpack.c.bf16 %v795_v58, %v793_v47  ;;  %v816_v13 = vpack.c.bf16 %v796_v35, %v794_v53  ;;  %v787_v26 = vmax.f32 %v702_v56, 0.0  ;;  %v786_v55 = vmax.f32 %v749_v19, 0.0 }
 0x1f6   : > { %v5316_v28 = vpop.permute.xlu0 %1304  ;;  %v813_v7 = vpack.c.bf16 %v791_v18, %v789_v8  ;;  %v814_v16 = vpack.c.bf16 %v792_v24, %v790_v31  ;;  %v692_v40 = vadd.f32 %v5178_v20, %v5003_v6  ;;  %v783_v62 = vmax.f32 %v697_v0, 0.0  ;;  %v4349_v24 = vld [vmem:[%s7126_s5 + $0x8] sm:$0xff] }
 0x1f7   : > { %v811_v9 = vpack.c.bf16 %v787_v26, %v785_v48  ;;  %v741_v23 = vadd.f32 %v5180_v22, %v5003_v6  ;;  %v812_v37 = vpack.c.bf16 %v788_v45, %v786_v55  ;;  %v690_v36 = vadd.f32 %v5161_v3, %v5011_v11  ;;  %v4350_v26 = vld [vmem:[%s7126_s5 + $0x10] sm:$0xff]  ;;  %v4351_v48 = vld [vmem:[%s7126_s5 + $0x18] sm:$0xff] }
 0x1f8   : > { %2102 = vmatpush.bf16.msrb.mxu0 %v817_v17  ;;  %4413 = vmatpush.bf16.msrb.mxu2 %v817_v17  ;;  %v781_v34 = vmax.f32 %v695_v39, 0.0  ;;  %v739_v15 = vadd.f32 %v5163_v5, %v5011_v11  ;;  %v782_v32 = vmax.f32 %v744_v21, 0.0  ;;  %v687_v20 = vadd.f32 %v5144_v59, %v4998_v4  ;;  %v5348_v11 = vpop.permute.xlu2 %1329  ;;  %v4386_v21 = vld [vmem:[%s7126_s5 + $0x130] sm:$0xff] }
 0x1f9   : > { %2431 = vmatpush.bf16.msrb.mxu1 %v818_v10  ;;  %4421 = vmatpush.bf16.msrb.mxu3 %v818_v10  ;;  %v779_v6 = vmax.f32 %v692_v40, 0.0  ;;  %v780_v3 = vmax.f32 %v741_v23, 0.0  ;;  %v685_v58 = vadd.f32 %v5125_v51, %v4982_v63  ;;  %v777_v17 = vmax.f32 %v690_v36, 0.0  ;;  %7245 = vst [vmem:[#allocation40_spill] sm:$0xff] %v5348_v11  ;;  %v4387_v36 = vld [vmem:[%s7126_s5 + $0x138] sm:$0xff] }
 0x1fa   : > { %v809_v22 = vpack.c.bf16 %v783_v62, %v781_v34  ;;  %v810_v50 = vpack.c.bf16 %v784_v42, %v782_v32  ;;  %v734_v59 = vadd.f32 %v5127_v52, %v4982_v63  ;;  %v778_v5 = vmax.f32 %v739_v15, 0.0  ;;  %v4348_v63 = vld [vmem:[%s7126_s5] sm:$0xff]  ;;  %v4383_v52 = vld [vmem:[%s7126_s5 + $0x118] sm:$0xff] }
 0x1fb   : > { %v775_v38 = vmax.f32 %v687_v20, 0.0  ;;  %v807_v35 = vpack.c.bf16 %v779_v6, %v777_v17  ;;  %v776_v10 = vmax.f32 %v736_v30, 0.0  ;;  %v773_v60 = vmax.f32 %v685_v58, 0.0  ;;  %v4353_v6 = vld [vmem:[%s7126_s5 + $0x28] sm:$0xff] }
 0x1fc   : > { %2103 = vmatpush.bf16.msrb.mxu0 %v815_v61  ;;  %4414 = vmatpush.bf16.msrb.mxu2 %v815_v61  ;;  %v808_v4 = vpack.c.bf16 %v780_v3, %v778_v5  ;;  %v774_v1 = vmax.f32 %v734_v59, 0.0  ;;  %v4354_v59 = vld [vmem:[%s7126_s5 + $0x30] sm:$0xff]  ;;  %v4389_v5 = vld [vmem:[%s7126_s5 + $0x148] sm:$0xff] }
 0x1fd   : > { %2432 = vmatpush.bf16.msrb.mxu1 %v816_v13  ;;  %4422 = vmatpush.bf16.msrb.mxu3 %v816_v13  ;;  %v5334_v27 = vpop.permute.xlu1 %1309  ;;  %v805_v47 = vpack.c.bf16 %v775_v38, %v773_v60  ;;  %v4384_v13 = vld [vmem:[%s7126_s5 + $0x120] sm:$0xff] }
 0x1fe   : > { %v5342_v25 = vpop.permute.xlu0 %1319  ;;  %v806_v29 = vpack.c.bf16 %v776_v10, %v774_v1  ;;  %v4355_v1 = vld [vmem:[%s7126_s5 + $0x38] sm:$0xff] }
 0x200   : > { %2104 = vmatpush.bf16.msrb.mxu0 %v813_v7  ;;  %4415 = vmatpush.bf16.msrb.mxu2 %v813_v7  ;;  %v5362_v56 = vpop.permute.xlu2 %1344  ;;  %v4385_v7 = vld [vmem:[%s7126_s5 + $0x128] sm:$0xff] }
 0x201   : > { %2433 = vmatpush.bf16.msrb.mxu1 %v814_v16  ;;  %4423 = vmatpush.bf16.msrb.mxu3 %v814_v16  ;;  %7248 = vst [vmem:[#allocation43_spill] sm:$0xff] %v5362_v56 }
 0x204   : > { %2105 = vmatpush.bf16.msrb.mxu0 %v811_v9  ;;  %4416 = vmatpush.bf16.msrb.mxu2 %v811_v9 }
 0x205   : > { %2434 = vmatpush.bf16.msrb.mxu1 %v812_v37  ;;  %4424 = vmatpush.bf16.msrb.mxu3 %v812_v37  ;;  %v5352_v51 = vpop.permute.xlu1 %1324  ;;  %v4352_v37 = vld [vmem:[%s7126_s5 + $0x20] sm:$0xff] }
 0x206   : > { %7246 = vst [vmem:[#allocation41_spill] sm:$0xff] %v5352_v51  ;;  %v5360_v53 = vpop.permute.xlu0 %1334 }
 0x207   : > { %7247 = vst [vmem:[#allocation42_spill] sm:$0xff] %v5360_v53 }
 0x208   : > { %2106 = vmatpush.bf16.msrb.mxu0 %v809_v22  ;;  %4417 = vmatpush.bf16.msrb.mxu2 %v809_v22  ;;  %v5368_v12 = vpop.permute.xlu2 %1359  ;;  %v4388_v22 = vld [vmem:[%s7126_s5 + $0x140] sm:$0xff] }
 0x209   : > { %2435 = vmatpush.bf16.msrb.mxu1 %v810_v50  ;;  %4425 = vmatpush.bf16.msrb.mxu3 %v810_v50  ;;  %7251 = vst [vmem:[#allocation46_spill] sm:$0xff] %v5368_v12 }
 0x20c   : > { %2107 = vmatpush.bf16.msrb.mxu0 %v807_v35  ;;  %4418 = vmatpush.bf16.msrb.mxu2 %v807_v35 }
 0x20d   : > { %2436 = vmatpush.bf16.msrb.mxu1 %v808_v4  ;;  %4426 = vmatpush.bf16.msrb.mxu3 %v808_v4  ;;  %v5364_v18 = vpop.permute.xlu1 %1339 }
 0x20e   : > { %7249 = vst [vmem:[#allocation44_spill] sm:$0xff] %v5364_v18  ;;  %v5366_v61 = vpop.permute.xlu0 %1349 }
 0x20f   : > { %7250 = vst [vmem:[#allocation45_spill] sm:$0xff] %v5366_v61 }
 0x210   : > { %2108 = vmatpush.bf16.msrb.mxu0 %v805_v47  ;;  %4419 = vmatpush.bf16.msrb.mxu2 %v805_v47  ;;  %v5380_v19 = vpop.permute.xlu2 %1374  ;;  %v4390_v47 = vld [vmem:[%s7126_s5 + $0x150] sm:$0xff] }
 0x211   : > { %2437 = vmatpush.bf16.msrb.mxu1 %v806_v29  ;;  %4427 = vmatpush.bf16.msrb.mxu3 %v806_v29  ;;  %7254 = vst [vmem:[#allocation49_spill] sm:$0xff] %v5380_v19 }
 0x213   : > { %2109 = vmatmul.bf16.vlgmr.msrb.gmra.mxu0 %v4348_v63  ;;  %2284 = vmatmul.bf16.vlgmr.msrb.gmra.mxu2 %v4383_v52 }
 0x214   : > { %2438 = vmatmul.bf16.vlgmr.msrb.gmra.mxu1 %v4348_v63  ;;  %2613 = vmatmul.bf16.vlgmr.msrb.gmra.mxu3 %v4383_v52 }
 0x215   : > { %v5376_v33 = vpop.permute.xlu1 %1354 }
 0x216   : > { %7252 = vst [vmem:[#allocation47_spill] sm:$0xff] %v5376_v33  ;;  %v5378_v8 = vpop.permute.xlu0 %1364 }
 0x217   : > { %7253 = vst [vmem:[#allocation48_spill] sm:$0xff] %v5378_v8 }
 0x218   : > { %v5392_v54 = vpop.permute.xlu2 %1389 }
 0x219   : > { %7257 = vst [vmem:[#allocation52_spill] sm:$0xff] %v5392_v54 }
 0x21d   : > { %v5382_v31 = vpop.permute.xlu1 %1369 }
 0x21e   : > { %7255 = vst [vmem:[#allocation50_spill] sm:$0xff] %v5382_v31  ;;  %v5384_v0 = vpop.permute.xlu0 %1379 }
 0x21f   : > { %7256 = vst [vmem:[#allocation51_spill] sm:$0xff] %v5384_v0 }
 0x220   : > { %v5398_v39 = vpop.permute.xlu2 %1404 }
 0x221   : > { %7260 = vst [vmem:[#allocation55_spill] sm:$0xff] %v5398_v39 }
 0x223   : > { %2114 = vmatmul.bf16.gmra.mxu0 %v4349_v24  ;;  %2289 = vmatmul.bf16.gmra.mxu2 %v4384_v13 }
 0x224   : > { %2443 = vmatmul.bf16.gmra.mxu1 %v4349_v24  ;;  %2618 = vmatmul.bf16.gmra.mxu3 %v4384_v13  ;;  %v4356_v13 = vld [vmem:[%s7126_s5 + $0x40] sm:$0xff] }
 0x225   : > { %v5394_v45 = vpop.permute.xlu1 %1384 }
 0x226   : > { %7258 = vst [vmem:[#allocation53_spill] sm:$0xff] %v5394_v45  ;;  %v5396_v16 = vpop.permute.xlu0 %1394 }
 0x227   : > { %7259 = vst [vmem:[#allocation54_spill] sm:$0xff] %v5396_v16 }
 0x228   : > { %v5410_v62 = vpop.permute.xlu2 %1419 }
 0x229   : > { %7263 = vst [vmem:[#allocation58_spill] sm:$0xff] %v5410_v62 }
 0x22d   : > { %v5406_v55 = vpop.permute.xlu1 %1399 }
 0x22e   : > { %7261 = vst [vmem:[#allocation56_spill] sm:$0xff] %v5406_v55  ;;  %v5408_v40 = vpop.permute.xlu0 %1409 }
 0x22f   : > { %7262 = vst [vmem:[#allocation57_spill] sm:$0xff] %v5408_v40 }
 0x230   : > { %v5416_v42 = vpop.permute.xlu2 %1434 }
 0x233   : > { %2119 = vmatmul.bf16.gmra.mxu0 %v4350_v26  ;;  %2294 = vmatmul.bf16.gmra.mxu2 %v4385_v7 }
 0x234   : > { %2448 = vmatmul.bf16.gmra.mxu1 %v4350_v26  ;;  %2623 = vmatmul.bf16.gmra.mxu3 %v4385_v7  ;;  %v4391_v26 = vld [vmem:[%s7126_s5 + $0x158] sm:$0xff] }
 0x235   : > { %v5412_v9 = vpop.permute.xlu1 %1414 }
 0x236   : > { %7264 = vst [vmem:[#allocation59_spill] sm:$0xff] %v5412_v9  ;;  %v5414_v23 = vpop.permute.xlu0 %1424 }
 0x237   : > { %7265 = vst [vmem:[#allocation60_spill] sm:$0xff] %v5414_v23 }
 0x238   : > { %v5426_v32 = vpop.permute.xlu2 %1449 }
 0x23d   : > { %v1430_v34 = vpop.permute.xlu1 %1429 }
 0x23e   : > { %v5424_v15 = vpop.permute.xlu0 %1439 }
 0x240   : > { %v5438_v3 = vpop.permute.xlu2 %1464 }
 0x243   : > { %2124 = vmatmul.bf16.gmra.mxu0 %v4351_v48  ;;  %2299 = vmatmul.bf16.gmra.mxu2 %v4386_v21 }
 0x244   : > { %2453 = vmatmul.bf16.gmra.mxu1 %v4351_v48  ;;  %2628 = vmatmul.bf16.gmra.mxu3 %v4386_v21 }
 0x245   : > { %v5428_v20 = vpop.permute.xlu1 %1444 }
 0x246   : > { %v5436_v30 = vpop.permute.xlu0 %1454 }
 0x248   : > { %v5444_v17 = vpop.permute.xlu2 %1479 }
 0x24d   : > { %v5440_v50 = vpop.permute.xlu1 %1459 }
 0x24e   : > { %v5442_v58 = vpop.permute.xlu0 %1469 }
 0x250   : > { %v5456_v10 = vpop.permute.xlu2 %1494 }
 0x253   : > { %2129 = vmatmul.bf16.gmra.mxu0 %v4352_v37  ;;  %2304 = vmatmul.bf16.gmra.mxu2 %v4387_v36 }
 0x254   : > { %2458 = vmatmul.bf16.gmra.mxu1 %v4352_v37  ;;  %2633 = vmatmul.bf16.gmra.mxu3 %v4387_v36 }
 0x255   : > { %v5452_v38 = vpop.permute.xlu1 %1474 }
 0x256   : > { %v5454_v35 = vpop.permute.xlu0 %1484 }
 0x258   : > { %v5468_v29 = vpop.permute.xlu2 %1509 }
 0x25d   : > { %v5458_v4 = vpop.permute.xlu1 %1489 }
 0x25e   : > { %v5460_v60 = vpop.permute.xlu0 %1499 }
 0x260   : > { %v5474_v24 = vpop.permute.xlu2 %1524 }
 0x263   : > { %2134 = vmatmul.bf16.gmra.mxu0 %v4353_v6  ;;  %2309 = vmatmul.bf16.gmra.mxu2 %v4388_v22 }
 0x264   : > { %2463 = vmatmul.bf16.gmra.mxu1 %v4353_v6  ;;  %2638 = vmatmul.bf16.gmra.mxu3 %v4388_v22 }
 0x265   : > { %v5470_v63 = vpop.permute.xlu1 %1504 }
 0x266   : > { %v5472_v52 = vpop.permute.xlu0 %1514 }
 0x26d   : > { %v5482_v7 = vpop.permute.xlu1 %1519 }
 0x26e   : > { %v5486_v6 = vpop.permute.xlu0 %1529 }
 0x273   : > { %2139 = vmatmul.bf16.gmra.mxu0 %v4354_v59  ;;  %2314 = vmatmul.bf16.gmra.mxu2 %v4389_v5 }
 0x274   : > { %2468 = vmatmul.bf16.gmra.mxu1 %v4354_v59  ;;  %2643 = vmatmul.bf16.gmra.mxu3 %v4389_v5  ;;  %v5488_v5 = vpop.permute.xlu2 %1539 }
 0x276   : > { %v5494_v55 = vpop.permute.xlu0 %1544 }
 0x27c   : > { %v5496_v16 = vpop.permute.xlu2 %1554 }
 0x283   : > { %2144 = vmatmul.bf16.gmra.mxu0 %v4355_v1  ;;  %2319 = vmatmul.bf16.gmra.mxu2 %v4390_v47 }
 0x284   : > { %2473 = vmatmul.bf16.gmra.mxu1 %v4355_v1  ;;  %2648 = vmatmul.bf16.gmra.mxu3 %v4390_v47 }
 0x290   : > { %v2110_v48 = vpop.f32.mrf.mxu0 }
 0x291   : > { %v2111_v21 = vadd.f32 %v2110_v48, %v5100_v41  ;;  %v2439_v37 = vpop.f32.mrf.mxu1 }
 0x292   : > { %v2440_v36 = vadd.f32 %v2439_v37, %v5100_v41  ;;  %v5491_v37 = vpop.permute.xlu1 %1534 }
 0x293   : > { %v2759_v22 = vmax.f32 %v2111_v21, 0.0  ;;  %2149 = vmatmul.bf16.gmra.mxu0 %v4356_v13  ;;  %2324 = vmatmul.bf16.gmra.mxu2 %v4391_v26 }
 0x294   : > { %v2760_v59 = vmax.f32 %v2440_v36, 0.0  ;;  %2478 = vmatmul.bf16.gmra.mxu1 %v4356_v13  ;;  %2653 = vmatmul.bf16.gmra.mxu3 %v4391_v26 }
 0x296   : > { %v3015_v1 = vmax.f32 %v2759_v22, %v2760_v59  ;;  %v2285_v47 = vpop.f32.mrf.mxu2 }
 0x297   : > { %v2286_v23 = vadd.f32 %v2285_v47, %v1430_v34  ;;  %v2614_v62 = vpop.f32.mrf.mxu3 }
 0x298   : > { %v2615_v9 = vadd.f32 %v2614_v62, %v1430_v34  ;;  %3016 = vmax.xlane.f32.xlu2 %v3015_v1  ;;  %v2112_v48 = vpop.f32.mrf.mxu0  ;;  %v4357_v1 = vld [vmem:[%s7126_s5 + $0x48] sm:$0xff] }
 0x299   : > { %v2113_v40 = vadd.f32 %v2112_v48, %v5113_v46  ;;  %v2441_v41 = vpop.f32.mrf.mxu1  ;;  %v2899_v21 = vmax.f32 %v2286_v23, 0.0 }
 0x29a   : > { %v2900_v39 = vmax.f32 %v2615_v9, 0.0  ;;  %v2442_v36 = vadd.f32 %v2441_v41, %v5113_v46  ;;  %v4392_v46 = vld [vmem:[%s7126_s5 + $0x160] sm:$0xff] }
 0x29b   : > { %v2761_v13 = vmax.f32 %v2113_v40, 0.0 }
 0x29c   : > { %v2762_v26 = vmax.f32 %v2442_v36, 0.0  ;;  %v3225_v22 = vmax.f32 %v2899_v21, %v2900_v39 }
 0x29e   : > { %v2287_v59 = vpop.f32.mrf.mxu2  ;;  %v3018_v47 = vmax.f32 %v2761_v13, %v2762_v26  ;;  %v5508_v13 = vpop.permute.xlu1 %1549 }
 0x29f   : > { %v2288_v62 = vadd.f32 %v2287_v59, %v5416_v42  ;;  %v2616_v34 = vpop.f32.mrf.mxu3 }
 0x2a0   : > { %v2617_v40 = vadd.f32 %v2616_v34, %v5416_v42  ;;  %3019 = vmax.xlane.f32.xlu0 %v3018_v47  ;;  %3226 = vmax.xlane.f32.xlu2 %v3225_v22  ;;  %v2115_v39 = vpop.f32.mrf.mxu0  ;;  %v5510_v22 = vpop.permute.xlu0 %1559 }
 0x2a1   : > { %v2116_v9 = vadd.f32 %v2115_v39, %v5108_v44  ;;  %v2444_v23 = vpop.f32.mrf.mxu1  ;;  %v2901_v48 = vmax.f32 %v2288_v62, 0.0 }
 0x2a2   : > { %v2902_v41 = vmax.f32 %v2617_v40, 0.0  ;;  %v2445_v21 = vadd.f32 %v2444_v23, %v5108_v44  ;;  %v5514_v40 = vpop.permute.xlu2 %1569 }
 0x2a3   : > { %v2763_v36 = vmax.f32 %v2116_v9, 0.0  ;;  %2154 = vmatmul.bf16.gmra.mxu0 %v4357_v1  ;;  %2329 = vmatmul.bf16.gmra.mxu2 %v4392_v46  ;;  %v7266_v9 = vld [vmem:[#allocation2_spill] sm:$0xff] }
 0x2a4   : > { %v2764_v26 = vmax.f32 %v2445_v21, 0.0  ;;  %2483 = vmatmul.bf16.gmra.mxu1 %v4357_v1  ;;  %2658 = vmatmul.bf16.gmra.mxu3 %v4392_v46  ;;  %v3228_v47 = vmax.f32 %v2901_v48, %v2902_v41 }
 0x2a6   : > { %v3021_v59 = vmax.f32 %v2763_v36, %v2764_v26  ;;  %v2290_v42 = vpop.f32.mrf.mxu2  ;;  %v5518_v26 = vpop.permute.xlu1 %1564 }
 0x2a7   : > { %v2291_v34 = vadd.f32 %v2290_v42, %v5424_v15  ;;  %v2619_v39 = vpop.f32.mrf.mxu3 }
 0x2a8   : > { %v2620_v62 = vadd.f32 %v2619_v39, %v5424_v15  ;;  %3022 = vmax.xlane.f32.xlu1 %v3021_v59  ;;  %3229 = vmax.xlane.f32.xlu0 %v3228_v47  ;;  %v2117_v44 = vpop.f32.mrf.mxu0  ;;  %v4358_v47 = vld [vmem:[%s7126_s5 + $0x50] sm:$0xff] }
 0x2a9   : > { %v2118_v23 = vadd.f32 %v2117_v44, %v7266_v9  ;;  %v2446_v21 = vpop.f32.mrf.mxu1  ;;  %v2903_v1 = vmax.f32 %v2291_v34, 0.0  ;;  %v4393_v34 = vld [vmem:[%s7126_s5 + $0x168] sm:$0xff]  ;;  %v5528_v44 = vpop.permute.xlu0 %1574 }
 0x2aa   : > { %v2904_v46 = vmax.f32 %v2620_v62, 0.0  ;;  %v2447_v36 = vadd.f32 %v2446_v21, %v7266_v9 }
 0x2ab   : > { %v2765_v48 = vmax.f32 %v2118_v23, 0.0 }
 0x2ac   : > { %v2766_v41 = vmax.f32 %v2447_v36, 0.0  ;;  %v3231_v42 = vmax.f32 %v2903_v1, %v2904_v46  ;;  %v7267_v1 = vld [vmem:[#allocation4_spill] sm:$0xff] }
 0x2ae   : > { %v2292_v54 = vpop.f32.mrf.mxu2  ;;  %v3024_v45 = vmax.f32 %v2765_v48, %v2766_v41 }
 0x2af   : > { %v2293_v15 = vadd.f32 %v2292_v54, %v5428_v20  ;;  %v2621_v59 = vpop.f32.mrf.mxu3  ;;  %v5530_v54 = vpop.permute.xlu2 %1584 }
 0x2b0   : > { %v2622_v39 = vadd.f32 %v2621_v59, %v5428_v20  ;;  %3232 = vmax.xlane.f32.xlu1 %v3231_v42  ;;  %3025 = vmax.xlane.f32.xlu2 %v3024_v45  ;;  %v2120_v62 = vpop.f32.mrf.mxu0  ;;  %v5535_v42 = vpop.permute.xlu1 %1579 }
 0x2b1   : > { %v2449_v9 = vpop.f32.mrf.mxu1  ;;  %v2905_v23 = vmax.f32 %v2293_v15, 0.0  ;;  %v2121_v46 = vadd.f32 %v2120_v62, %v7267_v1  ;;  %v5538_v31 = vpop.permute.xlu0 %1589  ;;  %v7268_v62 = vld [vmem:[#allocation3_spill] sm:$0xff] }
 0x2b2   : > { %v2906_v21 = vmax.f32 %v2622_v39, 0.0  ;;  %v2450_v36 = vadd.f32 %v2449_v9, %v7267_v1 }
 0x2b3   : > { %2159 = vmatmul.bf16.gmra.mxu0 %v4358_v47  ;;  %2334 = vmatmul.bf16.gmra.mxu2 %v4393_v34  ;;  %v2767_v19 = vmax.f32 %v2121_v46, 0.0  ;;  %v4359_v46 = vld [vmem:[%s7126_s5 + $0x58] sm:$0xff] }
 0x2b4   : > { %2488 = vmatmul.bf16.gmra.mxu1 %v4358_v47  ;;  %2663 = vmatmul.bf16.gmra.mxu3 %v4393_v34  ;;  %v3234_v20 = vmax.f32 %v2905_v23, %v2906_v21  ;;  %v2768_v47 = vmax.f32 %v2450_v36, 0.0  ;;  %v4394_v36 = vld [vmem:[%s7126_s5 + $0x170] sm:$0xff] }
 0x2b6   : > { %v2295_v48 = vpop.f32.mrf.mxu2 }
 0x2b7   : > { %v2296_v45 = vadd.f32 %v2295_v48, %v5426_v32  ;;  %v2624_v41 = vpop.f32.mrf.mxu3  ;;  %v5542_v1 = vpop.permute.xlu2 %1599  ;;  %v3027_v48 = vmax.f32 %v2767_v19, %v2768_v47 }
 0x2b8   : > { %v2625_v15 = vadd.f32 %v2624_v41, %v5426_v32  ;;  %3235 = vmax.xlane.f32.xlu2 %v3234_v20  ;;  %v2122_v59 = vpop.f32.mrf.mxu0 }
 0x2b9   : > { %v2907_v39 = vmax.f32 %v2296_v45, 0.0  ;;  %v2451_v0 = vpop.f32.mrf.mxu1  ;;  %v2123_v9 = vadd.f32 %v2122_v59, %v7268_v62 }
 0x2ba   : > { %v2908_v34 = vmax.f32 %v2625_v15, 0.0  ;;  %v2452_v23 = vadd.f32 %v2451_v0, %v7268_v62 }
 0x2bb   : > { %v2769_v32 = vmax.f32 %v2123_v9, 0.0 }
 0x2bc   : > { %v3237_v21 = vmax.f32 %v2907_v39, %v2908_v34  ;;  %v2770_v20 = vmax.f32 %v2452_v23, 0.0  ;;  %v5552_v39 = vpop.permute.xlu1 %1594  ;;  %v7269_v34 = vld [vmem:[#allocation5_spill] sm:$0xff] }
 0x2be   : > { %3238 = vmax.xlane.f32.xlu0 %v3237_v21  ;;  %v2297_v8 = vpop.f32.mrf.mxu2  ;;  %v5556_v21 = vpop.permute.xlu0 %1604 }
 0x2bf   : > { %v2298_v45 = vadd.f32 %v2297_v8, %v5436_v30  ;;  %v2626_v41 = vpop.f32.mrf.mxu3  ;;  %v3030_v8 = vmax.f32 %v2769_v32, %v2770_v20 }
 0x2c0   : > { %v2627_v0 = vadd.f32 %v2626_v41, %v5436_v30  ;;  %3028 = vmax.xlane.f32.xlu2 %v3027_v48  ;;  %v2125_v15 = vpop.f32.mrf.mxu0  ;;  %v5558_v48 = vpop.permute.xlu2 %1614 }
 0x2c1   : > { %v2909_v19 = vmax.f32 %v2298_v45, 0.0  ;;  %v2454_v59 = vpop.f32.mrf.mxu1  ;;  %v2126_v62 = vadd.f32 %v2125_v15, %v7269_v34 }
 0x2c2   : > { %v2910_v47 = vmax.f32 %v2627_v0, 0.0  ;;  %v2455_v9 = vadd.f32 %v2454_v59, %v7269_v34 }
 0x2c3   : > { %2164 = vmatmul.bf16.gmra.mxu0 %v4359_v46  ;;  %2339 = vmatmul.bf16.gmra.mxu2 %v4394_v36  ;;  %v2771_v0 = vmax.f32 %v2126_v62, 0.0 }
 0x2c4   : > { %2493 = vmatmul.bf16.gmra.mxu1 %v4359_v46  ;;  %2668 = vmatmul.bf16.gmra.mxu3 %v4394_v36  ;;  %v3240_v23 = vmax.f32 %v2909_v19, %v2910_v47  ;;  %v2772_v12 = vmax.f32 %v2455_v9, 0.0  ;;  %v7270_v36 = vld [vmem:[#allocation7_spill] sm:$0xff]  ;;  %v5564_v34 = vpop.permute.xlu1 %1609 }
 0x2c6   : > { %3241 = vmax.xlane.f32.xlu1 %v3240_v23  ;;  %3031 = vmax.xlane.f32.xlu0 %v3030_v8  ;;  %v2300_v30 = vpop.f32.mrf.mxu2  ;;  %v3033_v8 = vmax.f32 %v2771_v0, %v2772_v12  ;;  %v5566_v33 = vpop.permute.xlu0 %1619 }
 0x2c7   : > { %v2301_v45 = vadd.f32 %v2300_v30, %v5440_v50  ;;  %v2629_v41 = vpop.f32.mrf.mxu3 }
 0x2c8   : > { %v2630_v32 = vadd.f32 %v2629_v41, %v5440_v50  ;;  %v2127_v20 = vpop.f32.mrf.mxu0  ;;  %v4360_v41 = vld [vmem:[%s7126_s5 + $0x60] sm:$0xff] }
 0x2c9   : > { %v2911_v15 = vmax.f32 %v2301_v45, 0.0  ;;  %v2456_v59 = vpop.f32.mrf.mxu1  ;;  %v2128_v19 = vadd.f32 %v2127_v20, %v7270_v36  ;;  %v5576_v20 = vpop.permute.xlu2 %1629 }
 0x2ca   : > { %v2912_v46 = vmax.f32 %v2630_v32, 0.0  ;;  %v2457_v47 = vadd.f32 %v2456_v59, %v7270_v36  ;;  %v4395_v32 = vld [vmem:[%s7126_s5 + $0x178] sm:$0xff] }
 0x2cb   : > { %v2773_v62 = vmax.f32 %v2128_v19, 0.0  ;;  %v7271_v19 = vld [vmem:[#allocation6_spill] sm:$0xff] }
 0x2cc   : > { %v3243_v23 = vmax.f32 %v2911_v15, %v2912_v46  ;;  %v2774_v9 = vmax.f32 %v2457_v47, 0.0 }
 0x2ce   : > { %3034 = vmax.xlane.f32.xlu1 %v3033_v8  ;;  %3244 = vmax.xlane.f32.xlu2 %v3243_v23  ;;  %v2302_v30 = vpop.f32.mrf.mxu2  ;;  %v3036_v36 = vmax.f32 %v2773_v62, %v2774_v9  ;;  %v5584_v9 = vpop.permute.xlu0 %1634 }
 0x2cf   : > { %v2303_v50 = vadd.f32 %v2302_v30, %v5438_v3  ;;  %v2631_v45 = vpop.f32.mrf.mxu3  ;;  %v5580_v30 = vpop.permute.xlu1 %1624 }
 0x2d0   : > { %v2632_v12 = vadd.f32 %v2631_v45, %v5438_v3  ;;  %v2130_v0 = vpop.f32.mrf.mxu0 }
 0x2d1   : > { %v2913_v15 = vmax.f32 %v2303_v50, 0.0  ;;  %v2459_v59 = vpop.f32.mrf.mxu1  ;;  %v2131_v47 = vadd.f32 %v2130_v0, %v7271_v19 }
 0x2d2   : > { %v2914_v46 = vmax.f32 %v2632_v12, 0.0  ;;  %v2460_v8 = vadd.f32 %v2459_v59, %v7271_v19 }
 0x2d3   : > { %2169 = vmatmul.bf16.gmra.mxu0 %v4360_v41  ;;  %2344 = vmatmul.bf16.gmra.mxu2 %v4395_v32  ;;  %v2775_v61 = vmax.f32 %v2131_v47, 0.0 }
 0x2d4   : > { %2498 = vmatmul.bf16.gmra.mxu1 %v4360_v41  ;;  %2673 = vmatmul.bf16.gmra.mxu3 %v4395_v32  ;;  %v3246_v23 = vmax.f32 %v2913_v15, %v2914_v46  ;;  %v2776_v12 = vmax.f32 %v2460_v8, 0.0  ;;  %v5586_v32 = vpop.permute.xlu2 %1644  ;;  %v7272_v15 = vld [vmem:[#allocation8_spill] sm:$0xff] }
 0x2d6   : > { %3247 = vmax.xlane.f32.xlu0 %v3246_v23  ;;  %3037 = vmax.xlane.f32.xlu2 %v3036_v36  ;;  %v2305_v3 = vpop.f32.mrf.mxu2  ;;  %v3039_v19 = vmax.f32 %v2775_v61, %v2776_v12 }
 0x2d7   : > { %v2306_v45 = vadd.f32 %v2305_v3, %v5442_v58  ;;  %v2634_v50 = vpop.f32.mrf.mxu3 }
 0x2d8   : > { %v2635_v56 = vadd.f32 %v2634_v50, %v5442_v58  ;;  %v2132_v62 = vpop.f32.mrf.mxu0 }
 0x2d9   : > { %v2915_v0 = vmax.f32 %v2306_v45, 0.0  ;;  %v2461_v59 = vpop.f32.mrf.mxu1  ;;  %v2133_v46 = vadd.f32 %v2132_v62, %v7272_v15  ;;  %v4396_v45 = vld [vmem:[%s7126_s5 + $0x180] sm:$0xff]  ;;  %v5597_v62 = vpop.permute.xlu1 %1639 }
 0x2da   : > { %v2916_v41 = vmax.f32 %v2635_v56, 0.0  ;;  %v2462_v36 = vadd.f32 %v2461_v59, %v7272_v15  ;;  %v4361_v56 = vld [vmem:[%s7126_s5 + $0x68] sm:$0xff]  ;;  %v5600_v15 = vpop.permute.xlu0 %1649 }
 0x2db   : > { %v2777_v8 = vmax.f32 %v2133_v46, 0.0 }
 0x2dc   : > { %v3249_v23 = vmax.f32 %v2915_v0, %v2916_v41  ;;  %v2778_v3 = vmax.f32 %v2462_v36, 0.0  ;;  %v7273_v36 = vld [vmem:[#allocation10_spill] sm:$0xff]  ;;  %v5604_v18 = vpop.permute.xlu2 %1659 }
 0x2de   : > { %3250 = vmax.xlane.f32.xlu1 %v3249_v23  ;;  %3040 = vmax.xlane.f32.xlu0 %v3039_v19  ;;  %v2307_v47 = vpop.f32.mrf.mxu2  ;;  %v3042_v46 = vmax.f32 %v2777_v8, %v2778_v3 }
 0x2df   : > { %v2308_v58 = vadd.f32 %v2307_v47, %v5452_v38  ;;  %v2636_v50 = vpop.f32.mrf.mxu3 }
 0x2e0   : > { %v2637_v61 = vadd.f32 %v2636_v50, %v5452_v38  ;;  %v2135_v12 = vpop.f32.mrf.mxu0 }
 0x2e1   : > { %v2917_v0 = vmax.f32 %v2308_v58, 0.0  ;;  %v2464_v59 = vpop.f32.mrf.mxu1  ;;  %v2136_v19 = vadd.f32 %v2135_v12, %v7273_v36  ;;  %v5608_v51 = vpop.permute.xlu1 %1654 }
 0x2e2   : > { %v2918_v41 = vmax.f32 %v2637_v61, 0.0  ;;  %v2465_v23 = vadd.f32 %v2464_v59, %v7273_v36  ;;  %v5612_v36 = vpop.permute.xlu0 %1664 }
 0x2e3   : > { %2174 = vmatmul.bf16.gmra.mxu0 %v4361_v56  ;;  %2349 = vmatmul.bf16.gmra.mxu2 %v4396_v45  ;;  %v2779_v61 = vmax.f32 %v2136_v19, 0.0 }
 0x2e4   : > { %2503 = vmatmul.bf16.gmra.mxu1 %v4361_v56  ;;  %2678 = vmatmul.bf16.gmra.mxu3 %v4396_v45  ;;  %v3252_v47 = vmax.f32 %v2917_v0, %v2918_v41  ;;  %v2780_v53 = vmax.f32 %v2465_v23, 0.0  ;;  %v7274_v45 = vld [vmem:[#allocation9_spill] sm:$0xff]  ;;  %v5614_v23 = vpop.permute.xlu2 %1674 }
 0x2e5   : > { %7275 = vst [vmem:[#allocation2_spill] sm:$0xff] %v5614_v23 }
 0x2e6   : > { %3043 = vmax.xlane.f32.xlu1 %v3042_v46  ;;  %3253 = vmax.xlane.f32.xlu2 %v3252_v47  ;;  %v2310_v38 = vpop.f32.mrf.mxu2  ;;  %v3045_v41 = vmax.f32 %v2779_v61, %v2780_v53  ;;  %v4397_v53 = vld [vmem:[%s7126_s5 + $0x188] sm:$0xff] }
 0x2e7   : > { %v2311_v58 = vadd.f32 %v2310_v38, %v5444_v17  ;;  %v2639_v50 = vpop.f32.mrf.mxu3 }
 0x2e8   : > { %v2640_v11 = vadd.f32 %v2639_v50, %v5444_v17  ;;  %v2137_v8 = vpop.f32.mrf.mxu0 }
 0x2e9   : > { %v2919_v3 = vmax.f32 %v2311_v58, 0.0  ;;  %v2466_v12 = vpop.f32.mrf.mxu1  ;;  %v2138_v0 = vadd.f32 %v2137_v8, %v7274_v45 }
 0x2ea   : > { %v2920_v56 = vmax.f32 %v2640_v11, 0.0  ;;  %v2467_v59 = vadd.f32 %v2466_v12, %v7274_v45  ;;  %v4362_v11 = vld [vmem:[%s7126_s5 + $0x70] sm:$0xff]  ;;  %v5624_v45 = vpop.permute.xlu1 %1669 }
 0x2eb   : > { %v2781_v17 = vmax.f32 %v2138_v0, 0.0  ;;  %7276 = vst [vmem:[#allocation4_spill] sm:$0xff] %v5624_v45  ;;  %v7277_v0 = vld [vmem:[#allocation11_spill] sm:$0xff] }
 0x2ec   : > { %v3255_v46 = vmax.f32 %v2919_v3, %v2920_v56  ;;  %v2782_v47 = vmax.f32 %v2467_v59, 0.0  ;;  %v5632_v45 = vpop.permute.xlu2 %1689 }
 0x2ed   : > { %7278 = vst [vmem:[#allocation3_spill] sm:$0xff] %v5632_v45 }
 0x2ee   : > { %3256 = vmax.xlane.f32.xlu0 %v3255_v46  ;;  %3046 = vmax.xlane.f32.xlu2 %v3045_v41  ;;  %v2312_v19 = vpop.f32.mrf.mxu2  ;;  %v3048_v56 = vmax.f32 %v2781_v17, %v2782_v47 }
 0x2ef   : > { %v2313_v38 = vadd.f32 %v2312_v19, %v5454_v35  ;;  %v2641_v58 = vpop.f32.mrf.mxu3 }
 0x2f0   : > { %v2642_v50 = vadd.f32 %v2641_v58, %v5454_v35  ;;  %v2140_v61 = vpop.f32.mrf.mxu0  ;;  %v5628_v35 = vpop.permute.xlu0 %1679 }
 0x2f1   : > { %v2921_v8 = vmax.f32 %v2313_v38, 0.0  ;;  %v2469_v3 = vpop.f32.mrf.mxu1  ;;  %v2141_v59 = vadd.f32 %v2140_v61, %v7277_v0 }
 0x2f2   : > { %v2922_v12 = vmax.f32 %v2642_v50, 0.0  ;;  %v2470_v41 = vadd.f32 %v2469_v3, %v7277_v0 }
 0x2f3   : > { %2179 = vmatmul.bf16.gmra.mxu0 %v4362_v11  ;;  %2354 = vmatmul.bf16.gmra.mxu2 %v4397_v53  ;;  %v2783_v50 = vmax.f32 %v2141_v59, 0.0 }
 0x2f4   : > { %2508 = vmatmul.bf16.gmra.mxu1 %v4362_v11  ;;  %2683 = vmatmul.bf16.gmra.mxu3 %v4397_v53  ;;  %v3258_v46 = vmax.f32 %v2921_v8, %v2922_v12  ;;  %v2784_v23 = vmax.f32 %v2470_v41, 0.0  ;;  %v7279_v53 = vld [vmem:[#allocation13_spill] sm:$0xff] }
 0x2f6   : > { %3259 = vmax.xlane.f32.xlu1 %v3258_v46  ;;  %3049 = vmax.xlane.f32.xlu0 %v3048_v56  ;;  %v2315_v19 = vpop.f32.mrf.mxu2  ;;  %v3051_v56 = vmax.f32 %v2783_v50, %v2784_v23  ;;  %v5636_v46 = vpop.permute.xlu1 %1684 }
 0x2f7   : > { %v2316_v38 = vadd.f32 %v2315_v19, %v5458_v4  ;;  %v2644_v58 = vpop.f32.mrf.mxu3  ;;  %7280 = vst [vmem:[#allocation5_spill] sm:$0xff] %v5636_v46 }
 0x2f8   : > { %v2645_v17 = vadd.f32 %v2644_v58, %v5458_v4  ;;  %v2142_v47 = vpop.f32.mrf.mxu0 }
 0x2f9   : > { %v2923_v61 = vmax.f32 %v2316_v38, 0.0  ;;  %v2471_v3 = vpop.f32.mrf.mxu1  ;;  %v2143_v8 = vadd.f32 %v2142_v47, %v7279_v53  ;;  %v4363_v38 = vld [vmem:[%s7126_s5 + $0x78] sm:$0xff]  ;;  %v5646_v47 = vpop.permute.xlu0 %1694 }
 0x2fa   : > { %v2924_v11 = vmax.f32 %v2645_v17, 0.0  ;;  %v2472_v12 = vadd.f32 %v2471_v3, %v7279_v53  ;;  %v4398_v17 = vld [vmem:[%s7126_s5 + $0x190] sm:$0xff]  ;;  %7281 = vst [vmem:[#allocation7_spill] sm:$0xff] %v5646_v47  ;;  %v5648_v53 = vpop.permute.xlu2 %1704 }
 0x2fb   : > { %v2785_v41 = vmax.f32 %v2143_v8, 0.0  ;;  %7282 = vst [vmem:[#allocation6_spill] sm:$0xff] %v5648_v53 }
 0x2fc   : > { %v3261_v0 = vmax.f32 %v2923_v61, %v2924_v11  ;;  %v2786_v19 = vmax.f32 %v2472_v12, 0.0  ;;  %v7283_v12 = vld [vmem:[#allocation12_spill] sm:$0xff] }
 0x2fe   : > { %3052 = vmax.xlane.f32.xlu1 %v3051_v56  ;;  %3262 = vmax.xlane.f32.xlu2 %v3261_v0  ;;  %v2317_v59 = vpop.f32.mrf.mxu2  ;;  %v3054_v8 = vmax.f32 %v2785_v41, %v2786_v19  ;;  %v5653_v47 = vpop.permute.xlu1 %1699 }
 0x2ff   : > { %v2318_v4 = vadd.f32 %v2317_v59, %v5456_v10  ;;  %v2646_v58 = vpop.f32.mrf.mxu3 }
 0x300   : > { %v2647_v23 = vadd.f32 %v2646_v58, %v5456_v10  ;;  %v2145_v50 = vpop.f32.mrf.mxu0 }
 0x301   : > { %v2925_v61 = vmax.f32 %v2318_v4, 0.0  ;;  %v2474_v3 = vpop.f32.mrf.mxu1  ;;  %v2146_v56 = vadd.f32 %v2145_v50, %v7283_v12 }
 0x302   : > { %v2926_v11 = vmax.f32 %v2647_v23, 0.0  ;;  %v2475_v0 = vadd.f32 %v2474_v3, %v7283_v12  ;;  %v5656_v3 = vpop.permute.xlu0 %1709 }
 0x303   : > { %2184 = vmatmul.bf16.gmra.mxu0 %v4363_v38  ;;  %2359 = vmatmul.bf16.gmra.mxu2 %v4398_v17  ;;  %v2787_v23 = vmax.f32 %v2146_v56, 0.0  ;;  %7284 = vst [vmem:[#allocation8_spill] sm:$0xff] %v5656_v3 }
 0x304   : > { %2513 = vmatmul.bf16.gmra.mxu1 %v4363_v38  ;;  %2688 = vmatmul.bf16.gmra.mxu3 %v4398_v17  ;;  %v3264_v59 = vmax.f32 %v2925_v61, %v2926_v11  ;;  %v2788_v53 = vmax.f32 %v2475_v0, 0.0  ;;  %v7285_v38 = vld [vmem:[#allocation14_spill] sm:$0xff] }
 0x306   : > { %3265 = vmax.xlane.f32.xlu0 %v3264_v59  ;;  %3055 = vmax.xlane.f32.xlu2 %v3054_v8  ;;  %v2320_v10 = vpop.f32.mrf.mxu2  ;;  %v3057_v8 = vmax.f32 %v2787_v23, %v2788_v53 }
 0x307   : > { %v2321_v58 = vadd.f32 %v2320_v10, %v5460_v60  ;;  %v2649_v4 = vpop.f32.mrf.mxu3 }
 0x308   : > { %v2650_v45 = vadd.f32 %v2649_v4, %v5460_v60  ;;  %v2147_v41 = vpop.f32.mrf.mxu0 }
 0x309   : > { %v2927_v19 = vmax.f32 %v2321_v58, 0.0  ;;  %v2476_v50 = vpop.f32.mrf.mxu1  ;;  %v2148_v17 = vadd.f32 %v2147_v41, %v7285_v38  ;;  %v4399_v58 = vld [vmem:[%s7126_s5 + $0x198] sm:$0xff]  ;;  %v5670_v41 = vpop.permute.xlu1 %1714 }
 0x30a   : > { %v2928_v46 = vmax.f32 %v2650_v45, 0.0  ;;  %v2477_v61 = vadd.f32 %v2476_v50, %v7285_v38  ;;  %v4364_v45 = vld [vmem:[%s7126_s5 + $0x80] sm:$0xff]  ;;  %7287 = vst [vmem:[#allocation9_spill] sm:$0xff] %v5670_v41 }
 0x30b   : > { %v5660_v11 = vpop.xlane.xlu2 %3016  ;;  %v2789_v0 = vmax.f32 %v2148_v17, 0.0 }
 0x30c   : > { %7286 = vst [vmem:[#allocation10_spill] sm:$0xff] %v5660_v11  ;;  %v3267_v12 = vmax.f32 %v2927_v19, %v2928_v46  ;;  %v2790_v59 = vmax.f32 %v2477_v61, 0.0  ;;  %v7290_v61 = vld [vmem:[#allocation16_spill] sm:$0xff] }
 0x30e   : > { %3268 = vmax.xlane.f32.xlu1 %v3267_v12  ;;  %3058 = vmax.xlane.f32.xlu0 %v3057_v8  ;;  %v2322_v56 = vpop.f32.mrf.mxu2  ;;  %v3060_v17 = vmax.f32 %v2789_v0, %v2790_v59 }
 0x30f   : > { %v2323_v60 = vadd.f32 %v2322_v56, %v5470_v63  ;;  %v2651_v10 = vpop.f32.mrf.mxu3 }
 0x310   : > { %v2652_v4 = vadd.f32 %v2651_v10, %v5470_v63  ;;  %v2150_v53 = vpop.f32.mrf.mxu0 }
 0x311   : > { %v2929_v46 = vmax.f32 %v2323_v60, 0.0  ;;  %v2479_v23 = vpop.f32.mrf.mxu1  ;;  %v2151_v8 = vadd.f32 %v2150_v53, %v7290_v61  ;;  %v7291_v53 = vld [vmem:[#allocation15_spill] sm:$0xff] }
 0x312   : > { %v2930_v19 = vmax.f32 %v2652_v4, 0.0  ;;  %v2480_v12 = vadd.f32 %v2479_v23, %v7290_v61 }
 0x313   : > { %v5672_v50 = vpop.xlane.xlu0 %3019  ;;  %v5674_v38 = vpop.xlane.xlu2 %3226  ;;  %2189 = vmatmul.bf16.gmra.mxu0 %v4364_v45  ;;  %2364 = vmatmul.bf16.gmra.mxu2 %v4399_v58  ;;  %v2791_v4 = vmax.f32 %v2151_v8, 0.0 }
 0x314   : > { %7288 = vst [vmem:[#allocation11_spill] sm:$0xff] %v5672_v50  ;;  %2518 = vmatmul.bf16.gmra.mxu1 %v4364_v45  ;;  %2693 = vmatmul.bf16.gmra.mxu3 %v4399_v58  ;;  %v3270_v63 = vmax.f32 %v2929_v46, %v2930_v19  ;;  %v2792_v50 = vmax.f32 %v2480_v12, 0.0 }
 0x315   : > { %7289 = vst [vmem:[#allocation13_spill] sm:$0xff] %v5674_v38 }
 0x316   : > { %3061 = vmax.xlane.f32.xlu1 %v3060_v17  ;;  %3271 = vmax.xlane.f32.xlu2 %v3270_v63  ;;  %v2325_v56 = vpop.f32.mrf.mxu2  ;;  %v3063_v23 = vmax.f32 %v2791_v4, %v2792_v50 }
 0x317   : > { %v2326_v60 = vadd.f32 %v2325_v56, %v5468_v29  ;;  %v2654_v10 = vpop.f32.mrf.mxu3 }
 0x318   : > { %v2655_v38 = vadd.f32 %v2654_v10, %v5468_v29  ;;  %v2152_v11 = vpop.f32.mrf.mxu0 }
 0x319   : > { %v2931_v3 = vmax.f32 %v2326_v60, 0.0  ;;  %v2481_v0 = vpop.f32.mrf.mxu1  ;;  %v2153_v41 = vadd.f32 %v2152_v11, %v7291_v53  ;;  %v4365_v11 = vld [vmem:[%s7126_s5 + $0x88] sm:$0xff] }
 0x31a   : > { %v2932_v59 = vmax.f32 %v2655_v38, 0.0  ;;  %v2482_v45 = vadd.f32 %v2481_v0, %v7291_v53  ;;  %v4400_v38 = vld [vmem:[%s7126_s5 + $0x1a0] sm:$0xff] }
 0x31b   : > { %v5682_v58 = vpop.xlane.xlu1 %3022  ;;  %v5684_v46 = vpop.xlane.xlu0 %3229  ;;  %v2793_v61 = vmax.f32 %v2153_v41, 0.0  ;;  %v7294_v0 = vld [vmem:[#allocation17_spill] sm:$0xff] }
 0x31c   : > { %7292 = vst [vmem:[#allocation12_spill] sm:$0xff] %v5684_v46  ;;  %v3273_v19 = vmax.f32 %v2931_v3, %v2932_v59  ;;  %v2794_v8 = vmax.f32 %v2482_v45, 0.0 }
 0x31e   : > { %3274 = vmax.xlane.f32.xlu0 %v3273_v19  ;;  %3064 = vmax.xlane.f32.xlu2 %v3063_v23  ;;  %v2327_v17 = vpop.f32.mrf.mxu2  ;;  %v3066_v4 = vmax.f32 %v2793_v61, %v2794_v8 }
 0x31f   : > { %v2328_v29 = vadd.f32 %v2327_v17, %v5472_v52  ;;  %v2656_v12 = vpop.f32.mrf.mxu3 }
 0x320   : > { %v2657_v63 = vadd.f32 %v2656_v12, %v5472_v52  ;;  %v2155_v50 = vpop.f32.mrf.mxu0 }
 0x321   : > { %v2933_v3 = vmax.f32 %v2328_v29, 0.0  ;;  %v2484_v56 = vpop.f32.mrf.mxu1  ;;  %v2156_v59 = vadd.f32 %v2155_v50, %v7294_v0  ;;  %v7295_v50 = vld [vmem:[#allocation19_spill] sm:$0xff] }
 0x322   : > { %v2934_v60 = vmax.f32 %v2657_v63, 0.0  ;;  %v2485_v53 = vadd.f32 %v2484_v56, %v7294_v0 }
 0x323   : > { %v5694_v10 = vpop.xlane.xlu1 %3232  ;;  %v5696_v41 = vpop.xlane.xlu2 %3025  ;;  %2194 = vmatmul.bf16.gmra.mxu0 %v4365_v11  ;;  %2369 = vmatmul.bf16.gmra.mxu2 %v4400_v38  ;;  %v2795_v17 = vmax.f32 %v2156_v59, 0.0 }
 0x324   : > { %7293 = vst [vmem:[#allocation14_spill] sm:$0xff] %v5694_v10  ;;  %2523 = vmatmul.bf16.gmra.mxu1 %v4365_v11  ;;  %2698 = vmatmul.bf16.gmra.mxu3 %v4400_v38  ;;  %v3276_v45 = vmax.f32 %v2933_v3, %v2934_v60  ;;  %v2796_v29 = vmax.f32 %v2485_v53, 0.0  ;;  %v4366_v53 = vld [vmem:[%s7126_s5 + $0x90] sm:$0xff] }
 0x326   : > { %3277 = vmax.xlane.f32.xlu1 %v3276_v45  ;;  %3067 = vmax.xlane.f32.xlu0 %v3066_v4  ;;  %v2330_v52 = vpop.f32.mrf.mxu2  ;;  %v3069_v3 = vmax.f32 %v2795_v17, %v2796_v29  ;;  %v4401_v45 = vld [vmem:[%s7126_s5 + $0x1a8] sm:$0xff] }
 0x327   : > { %v2331_v23 = vadd.f32 %v2330_v52, %v5482_v7  ;;  %v2659_v19 = vpop.f32.mrf.mxu3 }
 0x328   : > { %v2660_v12 = vadd.f32 %v2659_v19, %v5482_v7  ;;  %v2157_v63 = vpop.f32.mrf.mxu0 }
 0x329   : > { %v2935_v10 = vmax.f32 %v2331_v23, 0.0  ;;  %v2486_v61 = vpop.f32.mrf.mxu1  ;;  %v2158_v46 = vadd.f32 %v2157_v63, %v7295_v50  ;;  %v7298_v63 = vld [vmem:[#allocation18_spill] sm:$0xff] }
 0x32a   : > { %v2936_v8 = vmax.f32 %v2660_v12, 0.0  ;;  %v2487_v11 = vadd.f32 %v2486_v61, %v7295_v50 }
 0x32b   : > { %v5704_v38 = vpop.xlane.xlu2 %3235  ;;  %v2797_v4 = vmax.f32 %v2158_v46, 0.0 }
 0x32c   : > { %7296 = vst [vmem:[#allocation16_spill] sm:$0xff] %v5704_v38  ;;  %v3279_v56 = vmax.f32 %v2935_v10, %v2936_v8  ;;  %v2798_v0 = vmax.f32 %v2487_v11, 0.0 }
 0x32e   : > { %3070 = vmax.xlane.f32.xlu1 %v3069_v3  ;;  %3280 = vmax.xlane.f32.xlu2 %v3279_v56  ;;  %v2332_v60 = vpop.f32.mrf.mxu2  ;;  %v3072_v12 = vmax.f32 %v2797_v4, %v2798_v0 }
 0x32f   : > { %v2333_v59 = vadd.f32 %v2332_v60, %v5474_v24  ;;  %v2661_v7 = vpop.f32.mrf.mxu3 }
 0x330   : > { %v2662_v52 = vadd.f32 %v2661_v7, %v5474_v24  ;;  %v2160_v23 = vpop.f32.mrf.mxu0 }
 0x331   : > { %v2937_v10 = vmax.f32 %v2333_v59, 0.0  ;;  %v2489_v19 = vpop.f32.mrf.mxu1  ;;  %v5714_v17 = vpop.xlane.xlu0 %3238  ;;  %v2161_v61 = vadd.f32 %v2160_v23, %v7298_v63 }
 0x332   : > { %7297 = vst [vmem:[#allocation15_spill] sm:$0xff] %v5714_v17  ;;  %v2938_v46 = vmax.f32 %v2662_v52, 0.0  ;;  %v2490_v8 = vadd.f32 %v2489_v19, %v7298_v63 }
 0x333   : > { %v5716_v29 = vpop.xlane.xlu2 %3028  ;;  %2199 = vmatmul.bf16.gmra.mxu0 %v4366_v53  ;;  %2374 = vmatmul.bf16.gmra.mxu2 %v4401_v45  ;;  %v2799_v56 = vmax.f32 %v2161_v61, 0.0 }
 0x334   : > { %2528 = vmatmul.bf16.gmra.mxu1 %v4366_v53  ;;  %2703 = vmatmul.bf16.gmra.mxu3 %v4401_v45  ;;  %v3282_v50 = vmax.f32 %v2937_v10, %v2938_v46  ;;  %v2800_v60 = vmax.f32 %v2490_v8, 0.0  ;;  %v7300_v53 = vld [vmem:[#allocation20_spill] sm:$0xff] }
 0x336   : > { %3283 = vmax.xlane.f32.xlu0 %v3282_v50  ;;  %3073 = vmax.xlane.f32.xlu2 %v3072_v12  ;;  %v2335_v24 = vpop.f32.mrf.mxu2  ;;  %v3075_v46 = vmax.f32 %v2799_v56, %v2800_v60 }
 0x337   : > { %v2336_v11 = vadd.f32 %v2335_v24, %v5486_v6  ;;  %v2664_v3 = vpop.f32.mrf.mxu3  ;;  %v4367_v24 = vld [vmem:[%s7126_s5 + $0x98] sm:$0xff] }
 0x338   : > { %v2665_v59 = vadd.f32 %v2664_v3, %v5486_v6  ;;  %v2162_v7 = vpop.f32.mrf.mxu0 }
 0x339   : > { %v2939_v52 = vmax.f32 %v2336_v11, 0.0  ;;  %v2491_v4 = vpop.f32.mrf.mxu1  ;;  %v5722_v0 = vpop.xlane.xlu1 %3241  ;;  %v2163_v45 = vadd.f32 %v2162_v7, %v7300_v53  ;;  %v4402_v11 = vld [vmem:[%s7126_s5 + $0x1b0] sm:$0xff] }
 0x33a   : > { %7299 = vst [vmem:[#allocation17_spill] sm:$0xff] %v5722_v0  ;;  %v2940_v23 = vmax.f32 %v2665_v59, 0.0  ;;  %v5724_v19 = vpop.xlane.xlu0 %3031  ;;  %v2492_v10 = vadd.f32 %v2491_v4, %v7300_v53  ;;  %v7302_v53 = vld [vmem:[#allocation22_spill] sm:$0xff] }
 0x33b   : > { %v2801_v61 = vmax.f32 %v2163_v45, 0.0 }
 0x33c   : > { %v3285_v12 = vmax.f32 %v2939_v52, %v2940_v23  ;;  %v2802_v8 = vmax.f32 %v2492_v10, 0.0 }
 0x33e   : > { %3286 = vmax.xlane.f32.xlu1 %v3285_v12  ;;  %3076 = vmax.xlane.f32.xlu0 %v3075_v46  ;;  %v2337_v63 = vpop.f32.mrf.mxu2  ;;  %v3078_v23 = vmax.f32 %v2801_v61, %v2802_v8 }
 0x33f   : > { %v2338_v6 = vadd.f32 %v2337_v63, %v5491_v37  ;;  %v2666_v50 = vpop.f32.mrf.mxu3 }
 0x340   : > { %v2667_v3 = vadd.f32 %v2666_v50, %v5491_v37  ;;  %v2165_v56 = vpop.f32.mrf.mxu0 }
 0x341   : > { %v2941_v60 = vmax.f32 %v2338_v6, 0.0  ;;  %v2494_v59 = vpop.f32.mrf.mxu1  ;;  %v5736_v7 = vpop.xlane.xlu1 %3034  ;;  %v2166_v45 = vadd.f32 %v2165_v56, %v7302_v53 }
 0x342   : > { %v2942_v52 = vmax.f32 %v2667_v3, 0.0  ;;  %v5738_v4 = vpop.xlane.xlu2 %3244  ;;  %v2495_v10 = vadd.f32 %v2494_v59, %v7302_v53 }
 0x343   : > { %7301 = vst [vmem:[#allocation19_spill] sm:$0xff] %v5738_v4  ;;  %2204 = vmatmul.bf16.gmra.mxu0 %v4367_v24  ;;  %2379 = vmatmul.bf16.gmra.mxu2 %v4402_v11  ;;  %v2803_v6 = vmax.f32 %v2166_v45, 0.0 }
 0x344   : > { %2533 = vmatmul.bf16.gmra.mxu1 %v4367_v24  ;;  %2708 = vmatmul.bf16.gmra.mxu3 %v4402_v11  ;;  %v3288_v46 = vmax.f32 %v2941_v60, %v2942_v52  ;;  %v2804_v50 = vmax.f32 %v2495_v10, 0.0  ;;  %v7304_v24 = vld [vmem:[#allocation21_spill] sm:$0xff] }
 0x346   : > { %3079 = vmax.xlane.f32.xlu1 %v3078_v23  ;;  %3289 = vmax.xlane.f32.xlu2 %v3288_v46  ;;  %v2340_v37 = vpop.f32.mrf.mxu2  ;;  %v3081_v52 = vmax.f32 %v2803_v6, %v2804_v50 }
 0x347   : > { %v2341_v12 = vadd.f32 %v2340_v37, %v5488_v5  ;;  %v2669_v63 = vpop.f32.mrf.mxu3  ;;  %v4368_v37 = vld [vmem:[%s7126_s5 + $0xa0] sm:$0xff] }
 0x348   : > { %v2670_v3 = vadd.f32 %v2669_v63, %v5488_v5  ;;  %v2167_v4 = vpop.f32.mrf.mxu0 }
 0x349   : > { %v2943_v0 = vmax.f32 %v2341_v12, 0.0  ;;  %v2496_v61 = vpop.f32.mrf.mxu1  ;;  %v5744_v8 = vpop.xlane.xlu0 %3247  ;;  %v2168_v11 = vadd.f32 %v2167_v4, %v7304_v24  ;;  %v4403_v4 = vld [vmem:[%s7126_s5 + $0x1b8] sm:$0xff] }
 0x34a   : > { %7303 = vst [vmem:[#allocation18_spill] sm:$0xff] %v5744_v8  ;;  %v2944_v56 = vmax.f32 %v2670_v3, 0.0  ;;  %v5746_v59 = vpop.xlane.xlu2 %3037  ;;  %v2497_v60 = vadd.f32 %v2496_v61, %v7304_v24  ;;  %v7306_v24 = vld [vmem:[#allocation23_spill] sm:$0xff] }
 0x34b   : > { %v2805_v45 = vmax.f32 %v2168_v11, 0.0 }
 0x34c   : > { %v3291_v23 = vmax.f32 %v2943_v0, %v2944_v56  ;;  %v2806_v10 = vmax.f32 %v2497_v60, 0.0 }
 0x34e   : > { %3292 = vmax.xlane.f32.xlu0 %v3291_v23  ;;  %3082 = vmax.xlane.f32.xlu2 %v3081_v52  ;;  %v2342_v53 = vpop.f32.mrf.mxu2  ;;  %v3084_v56 = vmax.f32 %v2805_v45, %v2806_v10 }
 0x34f   : > { %v2343_v5 = vadd.f32 %v2342_v53, %v5494_v55  ;;  %v2671_v46 = vpop.f32.mrf.mxu3 }
 0x350   : > { %v2672_v12 = vadd.f32 %v2671_v46, %v5494_v55  ;;  %v2170_v63 = vpop.f32.mrf.mxu0 }
 0x351   : > { %v2945_v0 = vmax.f32 %v2343_v5, 0.0  ;;  %v2499_v6 = vpop.f32.mrf.mxu1  ;;  %v5758_v50 = vpop.xlane.xlu1 %3250  ;;  %v2171_v11 = vadd.f32 %v2170_v63, %v7306_v24 }
 0x352   : > { %7305 = vst [vmem:[#allocation20_spill] sm:$0xff] %v5758_v50  ;;  %v2946_v3 = vmax.f32 %v2672_v12, 0.0  ;;  %v5760_v61 = vpop.xlane.xlu0 %3040  ;;  %v2500_v60 = vadd.f32 %v2499_v6, %v7306_v24 }
 0x353   : > { %2209 = vmatmul.bf16.gmra.mxu0 %v4368_v37  ;;  %2384 = vmatmul.bf16.gmra.mxu2 %v4403_v4  ;;  %v2807_v5 = vmax.f32 %v2171_v11, 0.0 }
 0x354   : > { %2538 = vmatmul.bf16.gmra.mxu1 %v4368_v37  ;;  %2713 = vmatmul.bf16.gmra.mxu3 %v4403_v4  ;;  %v3294_v52 = vmax.f32 %v2945_v0, %v2946_v3  ;;  %v2808_v46 = vmax.f32 %v2500_v60, 0.0  ;;  %v7308_v37 = vld [vmem:[#allocation25_spill] sm:$0xff] }
 0x356   : > { %3295 = vmax.xlane.f32.xlu1 %v3294_v52  ;;  %3085 = vmax.xlane.f32.xlu0 %v3084_v56  ;;  %v2345_v55 = vpop.f32.mrf.mxu2  ;;  %v3087_v3 = vmax.f32 %v2807_v5, %v2808_v46 }
 0x357   : > { %v2346_v23 = vadd.f32 %v2345_v55, %v5508_v13  ;;  %v2674_v53 = vpop.f32.mrf.mxu3  ;;  %v4369_v55 = vld [vmem:[%s7126_s5 + $0xa8] sm:$0xff] }
 0x358   : > { %v2675_v12 = vadd.f32 %v2674_v53, %v5508_v13  ;;  %v2172_v50 = vpop.f32.mrf.mxu0 }
 0x359   : > { %v2947_v8 = vmax.f32 %v2346_v23, 0.0  ;;  %v2501_v45 = vpop.f32.mrf.mxu1  ;;  %v5766_v10 = vpop.xlane.xlu1 %3043  ;;  %v2173_v4 = vadd.f32 %v2172_v50, %v7308_v37  ;;  %v4404_v50 = vld [vmem:[%s7126_s5 + $0x1c0] sm:$0xff] }
 0x35a   : > { %v2948_v63 = vmax.f32 %v2675_v12, 0.0  ;;  %v5768_v6 = vpop.xlane.xlu2 %3253  ;;  %v2502_v0 = vadd.f32 %v2501_v45, %v7308_v37  ;;  %v7310_v37 = vld [vmem:[#allocation24_spill] sm:$0xff] }
 0x35b   : > { %7307 = vst [vmem:[#allocation22_spill] sm:$0xff] %v5768_v6  ;;  %v2809_v11 = vmax.f32 %v2173_v4, 0.0 }
 0x35c   : > { %v3297_v56 = vmax.f32 %v2947_v8, %v2948_v63  ;;  %v2810_v60 = vmax.f32 %v2502_v0, 0.0 }
 0x35e   : > { %3088 = vmax.xlane.f32.xlu1 %v3087_v3  ;;  %3298 = vmax.xlane.f32.xlu2 %v3297_v56  ;;  %v2347_v24 = vpop.f32.mrf.mxu2  ;;  %v3090_v63 = vmax.f32 %v2809_v11, %v2810_v60 }
 0x35f   : > { %v2348_v13 = vadd.f32 %v2347_v24, %v5496_v16  ;;  %v2676_v52 = vpop.f32.mrf.mxu3 }
 0x360   : > { %v2677_v23 = vadd.f32 %v2676_v52, %v5496_v16  ;;  %v2175_v53 = vpop.f32.mrf.mxu0 }
 0x361   : > { %v2949_v8 = vmax.f32 %v2348_v13, 0.0  ;;  %v2504_v5 = vpop.f32.mrf.mxu1  ;;  %v5780_v46 = vpop.xlane.xlu0 %3256  ;;  %v2176_v4 = vadd.f32 %v2175_v53, %v7310_v37 }
 0x362   : > { %7309 = vst [vmem:[#allocation21_spill] sm:$0xff] %v5780_v46  ;;  %v2950_v12 = vmax.f32 %v2677_v23, 0.0  ;;  %v5782_v45 = vpop.xlane.xlu2 %3046  ;;  %v2505_v0 = vadd.f32 %v2504_v5, %v7310_v37 }
 0x363   : > { %2214 = vmatmul.bf16.gmra.mxu0 %v4369_v55  ;;  %2389 = vmatmul.bf16.gmra.mxu2 %v4404_v50  ;;  %v2811_v13 = vmax.f32 %v2176_v4, 0.0 }
 0x364   : > { %2543 = vmatmul.bf16.gmra.mxu1 %v4369_v55  ;;  %2718 = vmatmul.bf16.gmra.mxu3 %v4404_v50  ;;  %v3300_v3 = vmax.f32 %v2949_v8, %v2950_v12  ;;  %v2812_v52 = vmax.f32 %v2505_v0, 0.0  ;;  %v7312_v55 = vld [vmem:[#allocation26_spill] sm:$0xff] }
 0x366   : > { %3301 = vmax.xlane.f32.xlu0 %v3300_v3  ;;  %3091 = vmax.xlane.f32.xlu2 %v3090_v63  ;;  %v2350_v16 = vpop.f32.mrf.mxu2  ;;  %v3093_v12 = vmax.f32 %v2811_v13, %v2812_v52 }
 0x367   : > { %v2351_v56 = vadd.f32 %v2350_v16, %v5510_v22  ;;  %v2679_v24 = vpop.f32.mrf.mxu3  ;;  %v4370_v16 = vld [vmem:[%s7126_s5 + $0xb0] sm:$0xff] }
 0x368   : > { %v2680_v23 = vadd.f32 %v2679_v24, %v5510_v22  ;;  %v2177_v46 = vpop.f32.mrf.mxu0 }
 0x369   : > { %v2951_v6 = vmax.f32 %v2351_v56, 0.0  ;;  %v2506_v11 = vpop.f32.mrf.mxu1  ;;  %v5788_v60 = vpop.xlane.xlu1 %3259  ;;  %v2178_v50 = vadd.f32 %v2177_v46, %v7312_v55  ;;  %v4405_v46 = vld [vmem:[%s7126_s5 + $0x1c8] sm:$0xff] }
 0x36a   : > { %7311 = vst [vmem:[#allocation23_spill] sm:$0xff] %v5788_v60  ;;  %v2952_v53 = vmax.f32 %v2680_v23, 0.0  ;;  %v5790_v5 = vpop.xlane.xlu0 %3049  ;;  %v2507_v8 = vadd.f32 %v2506_v11, %v7312_v55  ;;  %v7314_v55 = vld [vmem:[#allocation28_spill] sm:$0xff] }
 0x36b   : > { %v2813_v4 = vmax.f32 %v2178_v50, 0.0 }
 0x36c   : > { %v3303_v63 = vmax.f32 %v2951_v6, %v2952_v53  ;;  %v2814_v0 = vmax.f32 %v2507_v8, 0.0 }
 0x36e   : > { %3304 = vmax.xlane.f32.xlu1 %v3303_v63  ;;  %3094 = vmax.xlane.f32.xlu0 %v3093_v12  ;;  %v2352_v37 = vpop.f32.mrf.mxu2  ;;  %v3096_v53 = vmax.f32 %v2813_v4, %v2814_v0 }
 0x36f   : > { %v2353_v22 = vadd.f32 %v2352_v37, %v5518_v26  ;;  %v2681_v3 = vpop.f32.mrf.mxu3 }
 0x370   : > { %v2682_v56 = vadd.f32 %v2681_v3, %v5518_v26  ;;  %v2180_v24 = vpop.f32.mrf.mxu0 }
 0x371   : > { %v2953_v6 = vmax.f32 %v2353_v22, 0.0  ;;  %v2509_v13 = vpop.f32.mrf.mxu1  ;;  %v5802_v52 = vpop.xlane.xlu1 %3052  ;;  %v2181_v50 = vadd.f32 %v2180_v24, %v7314_v55 }
 0x372   : > { %v2954_v23 = vmax.f32 %v2682_v56, 0.0  ;;  %v5804_v11 = vpop.xlane.xlu2 %3262  ;;  %v2510_v8 = vadd.f32 %v2509_v13, %v7314_v55 }
 0x373   : > { %7313 = vst [vmem:[#allocation25_spill] sm:$0xff] %v5804_v11  ;;  %2219 = vmatmul.bf16.gmra.mxu0 %v4370_v16  ;;  %2394 = vmatmul.bf16.gmra.mxu2 %v4405_v46  ;;  %v2815_v22 = vmax.f32 %v2181_v50, 0.0 }
 0x374   : > { %2548 = vmatmul.bf16.gmra.mxu1 %v4370_v16  ;;  %2723 = vmatmul.bf16.gmra.mxu3 %v4405_v46  ;;  %v3306_v12 = vmax.f32 %v2953_v6, %v2954_v23  ;;  %v2816_v3 = vmax.f32 %v2510_v8, 0.0  ;;  %v7316_v16 = vld [vmem:[#allocation27_spill] sm:$0xff] }
 0x376   : > { %3097 = vmax.xlane.f32.xlu1 %v3096_v53  ;;  %3307 = vmax.xlane.f32.xlu2 %v3306_v12  ;;  %v2355_v26 = vpop.f32.mrf.mxu2  ;;  %v3099_v23 = vmax.f32 %v2815_v22, %v2816_v3 }
 0x377   : > { %v2356_v63 = vadd.f32 %v2355_v26, %v5514_v40  ;;  %v2684_v37 = vpop.f32.mrf.mxu3  ;;  %v4371_v26 = vld [vmem:[%s7126_s5 + $0xb8] sm:$0xff] }
 0x378   : > { %v2685_v56 = vadd.f32 %v2684_v37, %v5514_v40  ;;  %v2182_v11 = vpop.f32.mrf.mxu0 }
 0x379   : > { %v2955_v60 = vmax.f32 %v2356_v63, 0.0  ;;  %v2511_v4 = vpop.f32.mrf.mxu1  ;;  %v5810_v0 = vpop.xlane.xlu0 %3265  ;;  %v2183_v46 = vadd.f32 %v2182_v11, %v7316_v16  ;;  %v4406_v11 = vld [vmem:[%s7126_s5 + $0x1d0] sm:$0xff] }
 0x37a   : > { %7315 = vst [vmem:[#allocation24_spill] sm:$0xff] %v5810_v0  ;;  %v2956_v24 = vmax.f32 %v2685_v56, 0.0  ;;  %v5812_v13 = vpop.xlane.xlu2 %3055  ;;  %v2512_v6 = vadd.f32 %v2511_v4, %v7316_v16  ;;  %v7318_v16 = vld [vmem:[#allocation29_spill] sm:$0xff] }
 0x37b   : > { %v2817_v50 = vmax.f32 %v2183_v46, 0.0 }
 0x37c   : > { %v3309_v53 = vmax.f32 %v2955_v60, %v2956_v24  ;;  %v2818_v8 = vmax.f32 %v2512_v6, 0.0 }
 0x37e   : > { %3310 = vmax.xlane.f32.xlu0 %v3309_v53  ;;  %3100 = vmax.xlane.f32.xlu2 %v3099_v23  ;;  %v2357_v55 = vpop.f32.mrf.mxu2  ;;  %v3102_v24 = vmax.f32 %v2817_v50, %v2818_v8 }
 0x37f   : > { %v2358_v40 = vadd.f32 %v2357_v55, %v5528_v44  ;;  %v2686_v12 = vpop.f32.mrf.mxu3 }
 0x380   : > { %v2687_v63 = vadd.f32 %v2686_v12, %v5528_v44  ;;  %v2185_v37 = vpop.f32.mrf.mxu0 }
 0x381   : > { %v2957_v60 = vmax.f32 %v2358_v40, 0.0  ;;  %v2514_v22 = vpop.f32.mrf.mxu1  ;;  %v5824_v3 = vpop.xlane.xlu1 %3268  ;;  %v2186_v46 = vadd.f32 %v2185_v37, %v7318_v16 }
 0x382   : > { %7317 = vst [vmem:[#allocation26_spill] sm:$0xff] %v5824_v3  ;;  %v2958_v56 = vmax.f32 %v2687_v63, 0.0  ;;  %v5826_v4 = vpop.xlane.xlu0 %3058  ;;  %v2515_v6 = vadd.f32 %v2514_v22, %v7318_v16 }
 0x383   : > { %2224 = vmatmul.bf16.gmra.mxu0 %v4371_v26  ;;  %2399 = vmatmul.bf16.gmra.mxu2 %v4406_v11  ;;  %v2819_v40 = vmax.f32 %v2186_v46, 0.0 }
 0x384   : > { %2553 = vmatmul.bf16.gmra.mxu1 %v4371_v26  ;;  %2728 = vmatmul.bf16.gmra.mxu3 %v4406_v11  ;;  %v3312_v23 = vmax.f32 %v2957_v60, %v2958_v56  ;;  %v2820_v12 = vmax.f32 %v2515_v6, 0.0  ;;  %v7320_v26 = vld [vmem:[#allocation31_spill] sm:$0xff] }
 0x386   : > { %3313 = vmax.xlane.f32.xlu1 %v3312_v23  ;;  %3103 = vmax.xlane.f32.xlu0 %v3102_v24  ;;  %v2360_v44 = vpop.f32.mrf.mxu2  ;;  %v3105_v56 = vmax.f32 %v2819_v40, %v2820_v12 }
 0x387   : > { %v2361_v53 = vadd.f32 %v2360_v44, %v5535_v42  ;;  %v2689_v55 = vpop.f32.mrf.mxu3  ;;  %v4372_v44 = vld [vmem:[%s7126_s5 + $0xc0] sm:$0xff] }
 0x388   : > { %v2690_v63 = vadd.f32 %v2689_v55, %v5535_v42  ;;  %v2187_v3 = vpop.f32.mrf.mxu0 }
 0x389   : > { %v2959_v0 = vmax.f32 %v2361_v53, 0.0  ;;  %v2516_v50 = vpop.f32.mrf.mxu1  ;;  %v5832_v8 = vpop.xlane.xlu1 %3061  ;;  %v2188_v11 = vadd.f32 %v2187_v3, %v7320_v26  ;;  %v4407_v3 = vld [vmem:[%s7126_s5 + $0x1d8] sm:$0xff] }
 0x38a   : > { %v2960_v37 = vmax.f32 %v2690_v63, 0.0  ;;  %v5834_v22 = vpop.xlane.xlu2 %3271  ;;  %v2517_v60 = vadd.f32 %v2516_v50, %v7320_v26  ;;  %v7322_v26 = vld [vmem:[#allocation30_spill] sm:$0xff] }
 0x38b   : > { %7319 = vst [vmem:[#allocation28_spill] sm:$0xff] %v5834_v22  ;;  %v2821_v46 = vmax.f32 %v2188_v11, 0.0 }
 0x38c   : > { %v3315_v24 = vmax.f32 %v2959_v0, %v2960_v37  ;;  %v2822_v6 = vmax.f32 %v2517_v60, 0.0 }
 0x38e   : > { %3106 = vmax.xlane.f32.xlu1 %v3105_v56  ;;  %3316 = vmax.xlane.f32.xlu2 %v3315_v24  ;;  %v2362_v16 = vpop.f32.mrf.mxu2  ;;  %v3108_v37 = vmax.f32 %v2821_v46, %v2822_v6 }
 0x38f   : > { %v2363_v42 = vadd.f32 %v2362_v16, %v5530_v54  ;;  %v2691_v23 = vpop.f32.mrf.mxu3 }
 0x390   : > { %v2692_v53 = vadd.f32 %v2691_v23, %v5530_v54  ;;  %v2190_v55 = vpop.f32.mrf.mxu0 }
 0x391   : > { %v2961_v0 = vmax.f32 %v2363_v42, 0.0  ;;  %v2519_v40 = vpop.f32.mrf.mxu1  ;;  %v5846_v12 = vpop.xlane.xlu0 %3274  ;;  %v2191_v11 = vadd.f32 %v2190_v55, %v7322_v26 }
 0x392   : > { %7321 = vst [vmem:[#allocation27_spill] sm:$0xff] %v5846_v12  ;;  %v2962_v63 = vmax.f32 %v2692_v53, 0.0  ;;  %v5848_v50 = vpop.xlane.xlu2 %3064  ;;  %v2520_v60 = vadd.f32 %v2519_v40, %v7322_v26 }
 0x393   : > { %2229 = vmatmul.bf16.gmra.mxu0 %v4372_v44  ;;  %2404 = vmatmul.bf16.gmra.mxu2 %v4407_v3  ;;  %v2823_v42 = vmax.f32 %v2191_v11, 0.0 }
 0x394   : > { %2558 = vmatmul.bf16.gmra.mxu1 %v4372_v44  ;;  %2733 = vmatmul.bf16.gmra.mxu3 %v4407_v3  ;;  %v3318_v56 = vmax.f32 %v2961_v0, %v2962_v63  ;;  %v2824_v23 = vmax.f32 %v2520_v60, 0.0  ;;  %v7324_v44 = vld [vmem:[#allocation32_spill] sm:$0xff] }
 0x396   : > { %3319 = vmax.xlane.f32.xlu0 %v3318_v56  ;;  %3109 = vmax.xlane.f32.xlu2 %v3108_v37  ;;  %v2365_v54 = vpop.f32.mrf.mxu2  ;;  %v3111_v63 = vmax.f32 %v2823_v42, %v2824_v23 }
 0x397   : > { %v2366_v24 = vadd.f32 %v2365_v54, %v5538_v31  ;;  %v2694_v16 = vpop.f32.mrf.mxu3  ;;  %v4373_v54 = vld [vmem:[%s7126_s5 + $0xc8] sm:$0xff] }
 0x398   : > { %v2695_v53 = vadd.f32 %v2694_v16, %v5538_v31  ;;  %v2192_v12 = vpop.f32.mrf.mxu0 }
 0x399   : > { %v2963_v22 = vmax.f32 %v2366_v24, 0.0  ;;  %v2521_v46 = vpop.f32.mrf.mxu1  ;;  %v5854_v6 = vpop.xlane.xlu1 %3277  ;;  %v2193_v3 = vadd.f32 %v2192_v12, %v7324_v44  ;;  %v4408_v12 = vld [vmem:[%s7126_s5 + $0x1e0] sm:$0xff] }
 0x39a   : > { %7323 = vst [vmem:[#allocation29_spill] sm:$0xff] %v5854_v6  ;;  %v2964_v55 = vmax.f32 %v2695_v53, 0.0  ;;  %v5856_v40 = vpop.xlane.xlu0 %3067  ;;  %v2522_v0 = vadd.f32 %v2521_v46, %v7324_v44  ;;  %v7326_v44 = vld [vmem:[#allocation34_spill] sm:$0xff] }
 0x39b   : > { %v2825_v11 = vmax.f32 %v2193_v3, 0.0 }
 0x39c   : > { %v3321_v37 = vmax.f32 %v2963_v22, %v2964_v55  ;;  %v2826_v60 = vmax.f32 %v2522_v0, 0.0 }
 0x39e   : > { %3322 = vmax.xlane.f32.xlu1 %v3321_v37  ;;  %3112 = vmax.xlane.f32.xlu0 %v3111_v63  ;;  %v2367_v26 = vpop.f32.mrf.mxu2  ;;  %v3114_v55 = vmax.f32 %v2825_v11, %v2826_v60 }
 0x39f   : > { %v2368_v31 = vadd.f32 %v2367_v26, %v5552_v39  ;;  %v2696_v56 = vpop.f32.mrf.mxu3 }
 0x3a0   : > { %v2697_v24 = vadd.f32 %v2696_v56, %v5552_v39  ;;  %v2195_v16 = vpop.f32.mrf.mxu0 }
 0x3a1   : > { %v2965_v22 = vmax.f32 %v2368_v31, 0.0  ;;  %v2524_v42 = vpop.f32.mrf.mxu1  ;;  %v5868_v23 = vpop.xlane.xlu1 %3070  ;;  %v2196_v3 = vadd.f32 %v2195_v16, %v7326_v44 }
 0x3a2   : > { %v2966_v53 = vmax.f32 %v2697_v24, 0.0  ;;  %v5870_v46 = vpop.xlane.xlu2 %3280  ;;  %v2525_v0 = vadd.f32 %v2524_v42, %v7326_v44 }
 0x3a3   : > { %7325 = vst [vmem:[#allocation31_spill] sm:$0xff] %v5870_v46  ;;  %2234 = vmatmul.bf16.gmra.mxu0 %v4373_v54  ;;  %2409 = vmatmul.bf16.gmra.mxu2 %v4408_v12  ;;  %v2827_v31 = vmax.f32 %v2196_v3, 0.0 }
 0x3a4   : > { %2563 = vmatmul.bf16.gmra.mxu1 %v4373_v54  ;;  %2738 = vmatmul.bf16.gmra.mxu3 %v4408_v12  ;;  %v3324_v63 = vmax.f32 %v2965_v22, %v2966_v53  ;;  %v2828_v56 = vmax.f32 %v2525_v0, 0.0  ;;  %v7328_v54 = vld [vmem:[#allocation33_spill] sm:$0xff] }
 0x3a6   : > { %3115 = vmax.xlane.f32.xlu1 %v3114_v55  ;;  %3325 = vmax.xlane.f32.xlu2 %v3324_v63  ;;  %v2370_v39 = vpop.f32.mrf.mxu2  ;;  %v3117_v53 = vmax.f32 %v2827_v31, %v2828_v56 }
 0x3a7   : > { %v2371_v37 = vadd.f32 %v2370_v39, %v5542_v1  ;;  %v2699_v26 = vpop.f32.mrf.mxu3  ;;  %v4374_v39 = vld [vmem:[%s7126_s5 + $0xd0] sm:$0xff] }
 0x3a8   : > { %v2700_v24 = vadd.f32 %v2699_v26, %v5542_v1  ;;  %v2197_v46 = vpop.f32.mrf.mxu0 }
 0x3a9   : > { %v2967_v6 = vmax.f32 %v2371_v37, 0.0  ;;  %v2526_v11 = vpop.f32.mrf.mxu1  ;;  %v5876_v60 = vpop.xlane.xlu0 %3283  ;;  %v2198_v12 = vadd.f32 %v2197_v46, %v7328_v54  ;;  %v4409_v46 = vld [vmem:[%s7126_s5 + $0x1e8] sm:$0xff] }
 0x3aa   : > { %7327 = vst [vmem:[#allocation30_spill] sm:$0xff] %v5876_v60  ;;  %v2968_v16 = vmax.f32 %v2700_v24, 0.0  ;;  %v5878_v42 = vpop.xlane.xlu2 %3073  ;;  %v2527_v22 = vadd.f32 %v2526_v11, %v7328_v54 }
 0x3ab   : > { %v2829_v3 = vmax.f32 %v2198_v12, 0.0  ;;  %v7330_v12 = vld [vmem:[#allocation35_spill] sm:$0xff] }
 0x3ac   : > { %v3327_v55 = vmax.f32 %v2967_v6, %v2968_v16  ;;  %v2830_v0 = vmax.f32 %v2527_v22, 0.0 }
 0x3ae   : > { %3328 = vmax.xlane.f32.xlu0 %v3327_v55  ;;  %3118 = vmax.xlane.f32.xlu2 %v3117_v53  ;;  %v2372_v44 = vpop.f32.mrf.mxu2  ;;  %v3120_v16 = vmax.f32 %v2829_v3, %v2830_v0 }
 0x3af   : > { %v2373_v1 = vadd.f32 %v2372_v44, %v5556_v21  ;;  %v2701_v63 = vpop.f32.mrf.mxu3 }
 0x3b0   : > { %v2702_v37 = vadd.f32 %v2701_v63, %v5556_v21  ;;  %v2200_v26 = vpop.f32.mrf.mxu0 }
 0x3b1   : > { %v2969_v6 = vmax.f32 %v2373_v1, 0.0  ;;  %v2529_v31 = vpop.f32.mrf.mxu1  ;;  %v5890_v56 = vpop.xlane.xlu1 %3286  ;;  %v2201_v22 = vadd.f32 %v2200_v26, %v7330_v12 }
 0x3b2   : > { %7329 = vst [vmem:[#allocation32_spill] sm:$0xff] %v5890_v56  ;;  %v2970_v24 = vmax.f32 %v2702_v37, 0.0  ;;  %v5892_v11 = vpop.xlane.xlu0 %3076  ;;  %v2530_v53 = vadd.f32 %v2529_v31, %v7330_v12 }
 0x3b3   : > { %2239 = vmatmul.bf16.gmra.mxu0 %v4374_v39  ;;  %2414 = vmatmul.bf16.gmra.mxu2 %v4409_v46  ;;  %v2831_v1 = vmax.f32 %v2201_v22, 0.0 }
 0x3b4   : > { %v3330_v54 = vmax.f32 %v2969_v6, %v2970_v24  ;;  %2568 = vmatmul.bf16.gmra.mxu1 %v4374_v39  ;;  %2743 = vmatmul.bf16.gmra.mxu3 %v4409_v46  ;;  %v2832_v63 = vmax.f32 %v2530_v53, 0.0  ;;  %v7332_v39 = vld [vmem:[#allocation37_spill] sm:$0xff] }
 0x3b6   : > { %3331 = vmax.xlane.f32.xlu1 %v3330_v54  ;;  %3121 = vmax.xlane.f32.xlu0 %v3120_v16  ;;  %v2375_v21 = vpop.f32.mrf.mxu2  ;;  %v3123_v24 = vmax.f32 %v2831_v1, %v2832_v63 }
 0x3b7   : > { %v2376_v55 = vadd.f32 %v2375_v21, %v5564_v34  ;;  %v2704_v44 = vpop.f32.mrf.mxu3  ;;  %v4375_v21 = vld [vmem:[%s7126_s5 + $0xd8] sm:$0xff] }
 0x3b8   : > { %v2705_v37 = vadd.f32 %v2704_v44, %v5564_v34  ;;  %v2202_v56 = vpop.f32.mrf.mxu0 }
 0x3b9   : > { %v2971_v60 = vmax.f32 %v2376_v55, 0.0  ;;  %v2531_v3 = vpop.f32.mrf.mxu1  ;;  %v5898_v0 = vpop.xlane.xlu1 %3079  ;;  %v2203_v46 = vadd.f32 %v2202_v56, %v7332_v39  ;;  %v4410_v56 = vld [vmem:[%s7126_s5 + $0x1f0] sm:$0xff] }
 0x3ba   : > { %v2972_v26 = vmax.f32 %v2705_v37, 0.0  ;;  %v5900_v6 = vpop.xlane.xlu2 %3289  ;;  %v2532_v31 = vadd.f32 %v2531_v3, %v7332_v39 }
 0x3bb   : > { %7331 = vst [vmem:[#allocation34_spill] sm:$0xff] %v5900_v6  ;;  %v2833_v12 = vmax.f32 %v2203_v46, 0.0  ;;  %v7334_v46 = vld [vmem:[#allocation36_spill] sm:$0xff] }
 0x3bc   : > { %v3333_v16 = vmax.f32 %v2971_v60, %v2972_v26  ;;  %v2834_v22 = vmax.f32 %v2532_v31, 0.0 }
 0x3be   : > { %3124 = vmax.xlane.f32.xlu1 %v3123_v24  ;;  %3334 = vmax.xlane.f32.xlu2 %v3333_v16  ;;  %v2377_v54 = vpop.f32.mrf.mxu2  ;;  %v3126_v26 = vmax.f32 %v2833_v12, %v2834_v22 }
 0x3bf   : > { %v2378_v34 = vadd.f32 %v2377_v54, %v5558_v48  ;;  %v2706_v53 = vpop.f32.mrf.mxu3 }
 0x3c0   : > { %v2707_v55 = vadd.f32 %v2706_v53, %v5558_v48  ;;  %v2205_v44 = vpop.f32.mrf.mxu0 }
 0x3c1   : > { %v2973_v60 = vmax.f32 %v2378_v34, 0.0  ;;  %v2534_v1 = vpop.f32.mrf.mxu1  ;;  %v5912_v63 = vpop.xlane.xlu0 %3292  ;;  %v2206_v31 = vadd.f32 %v2205_v44, %v7334_v46 }
 0x3c2   : > { %7333 = vst [vmem:[#allocation33_spill] sm:$0xff] %v5912_v63  ;;  %v2974_v37 = vmax.f32 %v2707_v55, 0.0  ;;  %v5914_v3 = vpop.xlane.xlu2 %3082  ;;  %v2535_v24 = vadd.f32 %v2534_v1, %v7334_v46 }
 0x3c3   : > { %2244 = vmatmul.bf16.gmra.mxu0 %v4375_v21  ;;  %2419 = vmatmul.bf16.gmra.mxu2 %v4410_v56  ;;  %v2835_v34 = vmax.f32 %v2206_v31, 0.0 }
 0x3c4   : > { %v3336_v39 = vmax.f32 %v2973_v60, %v2974_v37  ;;  %2573 = vmatmul.bf16.gmra.mxu1 %v4375_v21  ;;  %2748 = vmatmul.bf16.gmra.mxu3 %v4410_v56  ;;  %v2836_v53 = vmax.f32 %v2535_v24, 0.0  ;;  %v7336_v21 = vld [vmem:[#allocation38_spill] sm:$0xff] }
 0x3c6   : > { %3337 = vmax.xlane.f32.xlu0 %v3336_v39  ;;  %3127 = vmax.xlane.f32.xlu2 %v3126_v26  ;;  %v2380_v48 = vpop.f32.mrf.mxu2  ;;  %v3129_v37 = vmax.f32 %v2835_v34, %v2836_v53 }
 0x3c7   : > { %v2381_v16 = vadd.f32 %v2380_v48, %v5566_v33  ;;  %v2709_v54 = vpop.f32.mrf.mxu3  ;;  %v4376_v48 = vld [vmem:[%s7126_s5 + $0xe0] sm:$0xff] }
 0x3c8   : > { %v2710_v55 = vadd.f32 %v2709_v54, %v5566_v33  ;;  %v2207_v63 = vpop.f32.mrf.mxu0 }
 0x3c9   : > { %v2975_v6 = vmax.f32 %v2381_v16, 0.0  ;;  %v2536_v12 = vpop.f32.mrf.mxu1  ;;  %v5920_v22 = vpop.xlane.xlu1 %3295  ;;  %v2208_v56 = vadd.f32 %v2207_v63, %v7336_v21  ;;  %v4411_v63 = vld [vmem:[%s7126_s5 + $0x1f8] sm:$0xff] }
 0x3ca   : > { %7335 = vst [vmem:[#allocation35_spill] sm:$0xff] %v5920_v22  ;;  %v2976_v44 = vmax.f32 %v2710_v55, 0.0  ;;  %v5922_v60 = vpop.xlane.xlu0 %3085  ;;  %v2537_v1 = vadd.f32 %v2536_v12, %v7336_v21 }
 0x3cb   : > { %v2837_v46 = vmax.f32 %v2208_v56, 0.0 }
 0x3cc   : > { %v3339_v26 = vmax.f32 %v2975_v6, %v2976_v44  ;;  %v2838_v31 = vmax.f32 %v2537_v1, 0.0 }
 0x3ce   : > { %3340 = vmax.xlane.f32.xlu1 %v3339_v26  ;;  %3130 = vmax.xlane.f32.xlu0 %v3129_v37  ;;  %v2382_v39 = vpop.f32.mrf.mxu2  ;;  %v3132_v44 = vmax.f32 %v2837_v46, %v2838_v31 }
 0x3cf   : > { %v2383_v33 = vadd.f32 %v2382_v39, %v5580_v30  ;;  %v2711_v24 = vpop.f32.mrf.mxu3 }
 0x3d0   : > { %v2712_v16 = vadd.f32 %v2711_v24, %v5580_v30  ;;  %v2210_v54 = vpop.f32.mrf.mxu0 }
 0x3d1   : > { %v2977_v6 = vmax.f32 %v2383_v33, 0.0  ;;  %v2539_v34 = vpop.f32.mrf.mxu1  ;;  %v5934_v53 = vpop.xlane.xlu1 %3088  ;;  %v2211_v56 = vadd.f32 %v2210_v54, %v5291_v57 }
 0x3d2   : > { %v2978_v55 = vmax.f32 %v2712_v16, 0.0  ;;  %v5936_v12 = vpop.xlane.xlu2 %3298  ;;  %v2540_v1 = vadd.f32 %v2539_v34, %v5291_v57 }
 0x3d3   : > { %7337 = vst [vmem:[#allocation37_spill] sm:$0xff] %v5936_v12  ;;  %2249 = vmatmul.bf16.gmra.mxu0 %v4376_v48  ;;  %2424 = vmatmul.bf16.gmra.mxu2 %v4411_v63  ;;  %v2839_v39 = vmax.f32 %v2211_v56, 0.0  ;;  %v4377_v56 = vld [vmem:[%s7126_s5 + $0xe8] sm:$0xff] }
 0x3d4   : > { %v3342_v21 = vmax.f32 %v2977_v6, %v2978_v55  ;;  %2578 = vmatmul.bf16.gmra.mxu1 %v4376_v48  ;;  %2753 = vmatmul.bf16.gmra.mxu3 %v4411_v63  ;;  %v2840_v33 = vmax.f32 %v2540_v1, 0.0  ;;  %v7339_v63 = vld [vmem:[#allocation39_spill] sm:$0xff] }
 0x3d6   : > { %3133 = vmax.xlane.f32.xlu1 %v3132_v44  ;;  %3343 = vmax.xlane.f32.xlu2 %v3342_v21  ;;  %v2385_v30 = vpop.f32.mrf.mxu2  ;;  %v3135_v57 = vmax.f32 %v2839_v39, %v2840_v33 }
 0x3d7   : > { %v2386_v37 = vadd.f32 %v2385_v30, %v5576_v20  ;;  %v2714_v26 = vpop.f32.mrf.mxu3 }
 0x3d8   : > { %v2715_v24 = vadd.f32 %v2714_v26, %v5576_v20  ;;  %v2212_v16 = vpop.f32.mrf.mxu0 }
 0x3d9   : > { %v2979_v12 = vmax.f32 %v2386_v37, 0.0  ;;  %v2541_v46 = vpop.f32.mrf.mxu1  ;;  %v5942_v31 = vpop.xlane.xlu0 %3301  ;;  %v2213_v34 = vadd.f32 %v2212_v16, %v7339_v63 }
 0x3da   : > { %7338 = vst [vmem:[#allocation36_spill] sm:$0xff] %v5942_v31  ;;  %v2980_v54 = vmax.f32 %v2715_v24, 0.0  ;;  %v5944_v6 = vpop.xlane.xlu2 %3091  ;;  %v2542_v55 = vadd.f32 %v2541_v46, %v7339_v63 }
 0x3db   : > { %v2841_v1 = vmax.f32 %v2213_v34, 0.0 }
 0x3dc   : > { %v3345_v48 = vmax.f32 %v2979_v12, %v2980_v54  ;;  %v2842_v30 = vmax.f32 %v2542_v55, 0.0 }
 0x3de   : > { %3346 = vmax.xlane.f32.xlu0 %v3345_v48  ;;  %3136 = vmax.xlane.f32.xlu2 %v3135_v57  ;;  %v2387_v44 = vpop.f32.mrf.mxu2  ;;  %v3138_v48 = vmax.f32 %v2841_v1, %v2842_v30 }
 0x3df   : > { %v2388_v21 = vadd.f32 %v2387_v44, %v5584_v9  ;;  %v2716_v20 = vpop.f32.mrf.mxu3 }
 0x3e0   : > { %v2717_v37 = vadd.f32 %v2716_v20, %v5584_v9  ;;  %v2215_v26 = vpop.f32.mrf.mxu0 }
 0x3e1   : > { %v2981_v12 = vmax.f32 %v2388_v21, 0.0  ;;  %v2544_v39 = vpop.f32.mrf.mxu1  ;;  %v5953_v33 = vpop.xlane.xlu1 %3304  ;;  %v2216_v54 = vadd.f32 %v2215_v26, %v5295_v2 }
 0x3e2   : > { %7340 = vst [vmem:[#allocation38_spill] sm:$0xff] %v5953_v33  ;;  %v2982_v24 = vmax.f32 %v2717_v37, 0.0  ;;  %v5955_v16 = vpop.xlane.xlu0 %3094  ;;  %v2545_v57 = vadd.f32 %v2544_v39, %v5295_v2 }
 0x3e3   : > { %2254 = vmatmul.bf16.gmra.mxu0 %v4377_v56  ;;  %v2843_v55 = vmax.f32 %v2216_v54, 0.0  ;;  %v4378_v54 = vld [vmem:[%s7126_s5 + $0xf0] sm:$0xff] }
 0x3e4   : > { %v3348_v46 = vmax.f32 %v2981_v12, %v2982_v24  ;;  %2583 = vmatmul.bf16.gmra.mxu1 %v4377_v56  ;;  %v2844_v44 = vmax.f32 %v2545_v57, 0.0 }
 0x3e6   : > { %3349 = vmax.xlane.f32.xlu1 %v3348_v46  ;;  %3139 = vmax.xlane.f32.xlu0 %v3138_v48  ;;  %v2390_v63 = vpop.f32.mrf.mxu2  ;;  %v3141_v2 = vmax.f32 %v2843_v55, %v2844_v44 }
 0x3e7   : > { %v2391_v9 = vadd.f32 %v2390_v63, %v5597_v62  ;;  %v2719_v34 = vpop.f32.mrf.mxu3 }
 0x3e8   : > { %v2720_v21 = vadd.f32 %v2719_v34, %v5597_v62  ;;  %v2217_v20 = vpop.f32.mrf.mxu0 }
 0x3e9   : > { %v2983_v37 = vmax.f32 %v2391_v9, 0.0  ;;  %v2546_v33 = vpop.f32.mrf.mxu1  ;;  %v5961_v12 = vpop.xlane.xlu1 %3097  ;;  %v2218_v1 = vadd.f32 %v2217_v20, %v5308_v49 }
 0x3ea   : > { %v2984_v26 = vmax.f32 %v2720_v21, 0.0  ;;  %v5963_v24 = vpop.xlane.xlu2 %3307  ;;  %v2547_v30 = vadd.f32 %v2546_v33, %v5308_v49 }
 0x3eb   : > { %7341 = vst [vmem:[#allocation39_spill] sm:$0xff] %v5963_v24  ;;  %v2845_v57 = vmax.f32 %v2218_v1, 0.0 }
 0x3ec   : > { %v3351_v56 = vmax.f32 %v2983_v37, %v2984_v26  ;;  %v2846_v48 = vmax.f32 %v2547_v30, 0.0 }
 0x3ee   : > { %3142 = vmax.xlane.f32.xlu1 %v3141_v2  ;;  %3352 = vmax.xlane.f32.xlu2 %v3351_v56  ;;  %v2392_v39 = vpop.f32.mrf.mxu2  ;;  %v3144_v26 = vmax.f32 %v2845_v57, %v2846_v48 }
 0x3ef   : > { %v2393_v46 = vadd.f32 %v2392_v39, %v5586_v32  ;;  %v2721_v62 = vpop.f32.mrf.mxu3 }
 0x3f0   : > { %v2722_v63 = vadd.f32 %v2721_v62, %v5586_v32  ;;  %v2220_v9 = vpop.f32.mrf.mxu0 }
 0x3f1   : > { %v2985_v34 = vmax.f32 %v2393_v46, 0.0  ;;  %v2549_v55 = vpop.f32.mrf.mxu1  ;;  %v5972_v44 = vpop.xlane.xlu0 %3310  ;;  %v2221_v20 = vadd.f32 %v2220_v9, %v5299_v14 }
 0x3f2   : > { %7342 = vst [vmem:[#allocation61_spill] sm:$0xff] %v5972_v44  ;;  %v2986_v49 = vmax.f32 %v2722_v63, 0.0  ;;  %v5974_v33 = vpop.xlane.xlu2 %3100  ;;  %v2550_v37 = vadd.f32 %v2549_v55, %v5299_v14 }
 0x3f3   : > { %2259 = vmatmul.bf16.gmra.mxu0 %v4378_v54  ;;  %v2847_v1 = vmax.f32 %v2221_v20, 0.0  ;;  %v4379_v20 = vld [vmem:[%s7126_s5 + $0xf8] sm:$0xff] }
 0x3f4   : > { %v3354_v21 = vmax.f32 %v2985_v34, %v2986_v49  ;;  %2588 = vmatmul.bf16.gmra.mxu1 %v4378_v54  ;;  %v2848_v30 = vmax.f32 %v2550_v37, 0.0 }
 0x3f6   : > { %3355 = vmax.xlane.f32.xlu0 %v3354_v21  ;;  %3145 = vmax.xlane.f32.xlu2 %v3144_v26  ;;  %v2395_v2 = vpop.f32.mrf.mxu2  ;;  %v3147_v14 = vmax.f32 %v2847_v1, %v2848_v30 }
 0x3f7   : > { %v2396_v32 = vadd.f32 %v2395_v2, %v5600_v15  ;;  %v2724_v56 = vpop.f32.mrf.mxu3 }
 0x3f8   : > { %v2725_v39 = vadd.f32 %v2724_v56, %v5600_v15  ;;  %v2222_v46 = vpop.f32.mrf.mxu0 }
 0x3f9   : > { %v2987_v62 = vmax.f32 %v2396_v32, 0.0  ;;  %v2551_v63 = vpop.f32.mrf.mxu1  ;;  %v5980_v34 = vpop.xlane.xlu1 %3313  ;;  %v2223_v57 = vadd.f32 %v2222_v46, %v5316_v28 }
 0x3fa   : > { %7343 = vst [vmem:[#allocation62_spill] sm:$0xff] %v5980_v34  ;;  %v2988_v9 = vmax.f32 %v2725_v39, 0.0  ;;  %v5982_v49 = vpop.xlane.xlu0 %3103  ;;  %v2552_v48 = vadd.f32 %v2551_v63, %v5316_v28 }
 0x3fb   : > { %v2849_v37 = vmax.f32 %v2223_v57, 0.0 }
 0x3fc   : > { %v3357_v54 = vmax.f32 %v2987_v62, %v2988_v9  ;;  %v2850_v26 = vmax.f32 %v2552_v48, 0.0 }
 0x3fe   : > { %3358 = vmax.xlane.f32.xlu1 %v3357_v54  ;;  %3148 = vmax.xlane.f32.xlu0 %v3147_v14  ;;  %v2397_v55 = vpop.f32.mrf.mxu2  ;;  %v3150_v9 = vmax.f32 %v2849_v37, %v2850_v26 }
 0x3ff   : > { %v2398_v21 = vadd.f32 %v2397_v55, %v5608_v51  ;;  %v2726_v15 = vpop.f32.mrf.mxu3 }
 0x400   : > { %v2727_v2 = vadd.f32 %v2726_v15, %v5608_v51  ;;  %v2225_v32 = vpop.f32.mrf.mxu0 }
 0x401   : > { %v2989_v56 = vmax.f32 %v2398_v21, 0.0  ;;  %v2554_v1 = vpop.f32.mrf.mxu1  ;;  %v5991_v30 = vpop.xlane.xlu1 %3106  ;;  %v2226_v62 = vadd.f32 %v2225_v32, %v5334_v27 }
 0x402   : > { %v2990_v28 = vmax.f32 %v2727_v2, 0.0  ;;  %v5993_v39 = vpop.xlane.xlu2 %3316  ;;  %v2555_v63 = vadd.f32 %v2554_v1, %v5334_v27 }
 0x403   : > { %7344 = vst [vmem:[#allocation63_spill] sm:$0xff] %v5993_v39  ;;  %2264 = vmatmul.bf16.gmra.mxu0 %v4379_v20  ;;  %v2851_v57 = vmax.f32 %v2226_v62, 0.0  ;;  %v4380_v62 = vld [vmem:[%s7126_s5 + $0x100] sm:$0xff] }
 0x404   : > { %v3360_v46 = vmax.f32 %v2989_v56, %v2990_v28  ;;  %2593 = vmatmul.bf16.gmra.mxu1 %v4379_v20  ;;  %v2852_v48 = vmax.f32 %v2555_v63, 0.0 }
 0x406   : > { %3151 = vmax.xlane.f32.xlu1 %v3150_v9  ;;  %3361 = vmax.xlane.f32.xlu2 %v3360_v46  ;;  %v2400_v14 = vpop.f32.mrf.mxu2  ;;  %v3153_v27 = vmax.f32 %v2851_v57, %v2852_v48 }
 0x407   : > { %v2401_v51 = vadd.f32 %v2400_v14, %v5604_v18  ;;  %v2729_v54 = vpop.f32.mrf.mxu3 }
 0x408   : > { %v2730_v55 = vadd.f32 %v2729_v54, %v5604_v18  ;;  %v2227_v21 = vpop.f32.mrf.mxu0 }
 0x409   : > { %v2991_v15 = vmax.f32 %v2401_v51, 0.0  ;;  %v2556_v2 = vpop.f32.mrf.mxu1  ;;  %v5999_v56 = vpop.xlane.xlu0 %3319  ;;  %v2228_v37 = vadd.f32 %v2227_v21, %v5322_v43 }
 0x40a   : > { %7345 = vst [vmem:[#allocation64_spill] sm:$0xff] %v5999_v56  ;;  %v2992_v32 = vmax.f32 %v2730_v55, 0.0  ;;  %v6001_v28 = vpop.xlane.xlu2 %3109  ;;  %v2557_v26 = vadd.f32 %v2556_v2, %v5322_v43 }
 0x40b   : > { %v2853_v63 = vmax.f32 %v2228_v37, 0.0 }
 0x40c   : > { %v3363_v20 = vmax.f32 %v2991_v15, %v2992_v32  ;;  %v2854_v9 = vmax.f32 %v2557_v26, 0.0 }
 0x40e   : > { %3364 = vmax.xlane.f32.xlu0 %v3363_v20  ;;  %3154 = vmax.xlane.f32.xlu2 %v3153_v27  ;;  %v2402_v1 = vpop.f32.mrf.mxu2  ;;  %v3156_v21 = vmax.f32 %v2853_v63, %v2854_v9 }
 0x40f   : > { %v2403_v46 = vadd.f32 %v2402_v1, %v5612_v36  ;;  %v2731_v18 = vpop.f32.mrf.mxu3 }
 0x410   : > { %v2732_v14 = vadd.f32 %v2731_v18, %v5612_v36  ;;  %v2230_v51 = vpop.f32.mrf.mxu0  ;;  %v7347_v36 = vld [vmem:[#allocation4_spill] sm:$0xff] }
 0x411   : > { %v2993_v54 = vmax.f32 %v2403_v46, 0.0  ;;  %v2559_v57 = vpop.f32.mrf.mxu1  ;;  %v6010_v48 = vpop.xlane.xlu1 %3322  ;;  %v2231_v2 = vadd.f32 %v2230_v51, %v5342_v25 }
 0x412   : > { %7346 = vst [vmem:[#allocation65_spill] sm:$0xff] %v6010_v48  ;;  %v2994_v43 = vmax.f32 %v2732_v14, 0.0  ;;  %v6012_v55 = vpop.xlane.xlu0 %3112  ;;  %v2560_v32 = vadd.f32 %v2559_v57, %v5342_v25 }
 0x413   : > { %2269 = vmatmul.bf16.gmra.mxu0 %v4380_v62  ;;  %v2855_v26 = vmax.f32 %v2231_v2, 0.0 }
 0x414   : > { %v3366_v15 = vmax.f32 %v2993_v54, %v2994_v43  ;;  %2598 = vmatmul.bf16.gmra.mxu1 %v4380_v62  ;;  %v2856_v1 = vmax.f32 %v2560_v32, 0.0  ;;  %v7349_v54 = vld [vmem:[#allocation41_spill] sm:$0xff] }
 0x416   : > { %3367 = vmax.xlane.f32.xlu1 %v3366_v15  ;;  %3157 = vmax.xlane.f32.xlu0 %v3156_v21  ;;  %v2405_v27 = vpop.f32.mrf.mxu2  ;;  %v3159_v25 = vmax.f32 %v2855_v26, %v2856_v1  ;;  %v7350_v15 = vld [vmem:[#allocation2_spill] sm:$0xff] }
 0x417   : > { %v2406_v20 = vadd.f32 %v2405_v27, %v7347_v36  ;;  %v2734_v37 = vpop.f32.mrf.mxu3  ;;  %v4381_v27 = vld [vmem:[%s7126_s5 + $0x108] sm:$0xff] }
 0x418   : > { %v2735_v46 = vadd.f32 %v2734_v37, %v7347_v36  ;;  %v2232_v18 = vpop.f32.mrf.mxu0 }
 0x419   : > { %v2995_v14 = vmax.f32 %v2406_v20, 0.0  ;;  %v2561_v48 = vpop.f32.mrf.mxu1  ;;  %v6018_v63 = vpop.xlane.xlu1 %3115  ;;  %v2233_v57 = vadd.f32 %v2232_v18, %v7349_v54 }
 0x41a   : > { %v2996_v9 = vmax.f32 %v2735_v46, 0.0  ;;  %v6020_v51 = vpop.xlane.xlu2 %3325  ;;  %v2562_v43 = vadd.f32 %v2561_v48, %v7349_v54 }
 0x41b   : > { %7348 = vst [vmem:[#allocation4_spill] sm:$0xff] %v6020_v51  ;;  %v2857_v36 = vmax.f32 %v2233_v57, 0.0 }
 0x41c   : > { %v3369_v62 = vmax.f32 %v2995_v14, %v2996_v9  ;;  %v2858_v20 = vmax.f32 %v2562_v43, 0.0 }
 0x41e   : > { %3160 = vmax.xlane.f32.xlu1 %v3159_v25  ;;  %3370 = vmax.xlane.f32.xlu2 %v3369_v62  ;;  %v2407_v21 = vpop.f32.mrf.mxu2  ;;  %v3162_v9 = vmax.f32 %v2857_v36, %v2858_v20  ;;  %v7352_v62 = vld [vmem:[#allocation40_spill] sm:$0xff] }
 0x41f   : > { %v2408_v2 = vadd.f32 %v2407_v21, %v7350_v15  ;;  %v2736_v32 = vpop.f32.mrf.mxu3 }
 0x420   : > { %v2737_v37 = vadd.f32 %v2736_v32, %v7350_v15  ;;  %v2235_v26 = vpop.f32.mrf.mxu0 }
 0x421   : > { %v2997_v1 = vmax.f32 %v2408_v2, 0.0  ;;  %v2564_v46 = vpop.f32.mrf.mxu1  ;;  %v6029_v18 = vpop.xlane.xlu0 %3328  ;;  %v2236_v54 = vadd.f32 %v2235_v26, %v7352_v62 }
 0x422   : > { %7351 = vst [vmem:[#allocation41_spill] sm:$0xff] %v6029_v18  ;;  %v2998_v48 = vmax.f32 %v2737_v37, 0.0  ;;  %v6031_v14 = vpop.xlane.xlu2 %3118  ;;  %v2565_v21 = vadd.f32 %v2564_v46, %v7352_v62  ;;  %v7354_v46 = vld [vmem:[#allocation42_spill] sm:$0xff]  ;;  %v7355_v62 = vld [vmem:[#allocation5_spill] sm:$0xff] }
 0x423   : > { %2274 = vmatmul.bf16.gmra.mxu0 %v4381_v27  ;;  %v2859_v2 = vmax.f32 %v2236_v54, 0.0 }
 0x424   : > { %v3372_v25 = vmax.f32 %v2997_v1, %v2998_v48  ;;  %2603 = vmatmul.bf16.gmra.mxu1 %v4381_v27  ;;  %v2860_v32 = vmax.f32 %v2565_v21, 0.0  ;;  %v4382_v21 = vld [vmem:[%s7126_s5 + $0x110] sm:$0xff] }
 0x426   : > { %3373 = vmax.xlane.f32.xlu0 %v3372_v25  ;;  %3163 = vmax.xlane.f32.xlu2 %v3162_v9  ;;  %v2410_v57 = vpop.f32.mrf.mxu2  ;;  %v3165_v1 = vmax.f32 %v2859_v2, %v2860_v32 }
 0x427   : > { %v2411_v43 = vadd.f32 %v2410_v57, %v5628_v35  ;;  %v2739_v15 = vpop.f32.mrf.mxu3 }
 0x428   : > { %v2740_v37 = vadd.f32 %v2739_v15, %v5628_v35  ;;  %v2237_v18 = vpop.f32.mrf.mxu0 }
 0x429   : > { %v2999_v51 = vmax.f32 %v2411_v43, 0.0  ;;  %v2566_v56 = vpop.f32.mrf.mxu1  ;;  %v6037_v36 = vpop.xlane.xlu1 %3331  ;;  %v2238_v48 = vadd.f32 %v2237_v18, %v7354_v46 }
 0x42a   : > { %7353 = vst [vmem:[#allocation2_spill] sm:$0xff] %v6037_v36  ;;  %v3000_v20 = vmax.f32 %v2740_v37, 0.0  ;;  %v6039_v26 = vpop.xlane.xlu0 %3121  ;;  %v2567_v9 = vadd.f32 %v2566_v56, %v7354_v46 }
 0x42b   : > { %v2861_v57 = vmax.f32 %v2238_v48, 0.0 }
 0x42c   : > { %v3375_v27 = vmax.f32 %v2999_v51, %v3000_v20  ;;  %v2862_v43 = vmax.f32 %v2567_v9, 0.0  ;;  %v7358_v9 = vld [vmem:[#allocation3_spill] sm:$0xff] }
 0x42e   : > { %3376 = vmax.xlane.f32.xlu1 %v3375_v27  ;;  %3166 = vmax.xlane.f32.xlu0 %v3165_v1  ;;  %v2412_v25 = vpop.f32.mrf.mxu2  ;;  %v3168_v20 = vmax.f32 %v2861_v57, %v2862_v43  ;;  %v7357_v27 = vld [vmem:[#allocation44_spill] sm:$0xff] }
 0x42f   : > { %v2413_v54 = vadd.f32 %v2412_v25, %v7355_v62  ;;  %v2741_v35 = vpop.f32.mrf.mxu3 }
 0x430   : > { %v2742_v15 = vadd.f32 %v2741_v35, %v7355_v62  ;;  %v2240_v2 = vpop.f32.mrf.mxu0 }
 0x431   : > { %v3001_v51 = vmax.f32 %v2413_v54, 0.0  ;;  %v2569_v32 = vpop.f32.mrf.mxu1  ;;  %v6048_v18 = vpop.xlane.xlu1 %3124  ;;  %v2241_v46 = vadd.f32 %v2240_v2, %v7357_v27 }
 0x432   : > { %v3002_v56 = vmax.f32 %v2742_v15, 0.0  ;;  %v6050_v37 = vpop.xlane.xlu2 %3334  ;;  %v2570_v25 = vadd.f32 %v2569_v32, %v7357_v27  ;;  %v7360_v32 = vld [vmem:[#allocation43_spill] sm:$0xff] }
 0x433   : > { %7356 = vst [vmem:[#allocation40_spill] sm:$0xff] %v6050_v37  ;;  %2279 = vmatmul.bf16.gmra.mxu0 %v4382_v21  ;;  %v2863_v35 = vmax.f32 %v2241_v46, 0.0  ;;  %v7361_v27 = vld [vmem:[#allocation7_spill] sm:$0xff] }
 0x434   : > { %v3378_v1 = vmax.f32 %v3001_v51, %v3002_v56  ;;  %2608 = vmatmul.bf16.gmra.mxu1 %v4382_v21  ;;  %v2864_v36 = vmax.f32 %v2570_v25, 0.0 }
 0x436   : > { %3169 = vmax.xlane.f32.xlu1 %v3168_v20  ;;  %3379 = vmax.xlane.f32.xlu2 %v3378_v1  ;;  %v2415_v48 = vpop.f32.mrf.mxu2  ;;  %v3171_v51 = vmax.f32 %v2863_v35, %v2864_v36  ;;  %v7364_v35 = vld [vmem:[#allocation45_spill] sm:$0xff] }
 0x437   : > { %v2416_v62 = vadd.f32 %v2415_v48, %v7358_v9  ;;  %v2744_v54 = vpop.f32.mrf.mxu3 }
 0x438   : > { %v2745_v15 = vadd.f32 %v2744_v54, %v7358_v9  ;;  %v2242_v39 = vpop.f32.mrf.mxu0 }
 0x439   : > { %v3003_v37 = vmax.f32 %v2416_v62, 0.0  ;;  %v2571_v34 = vpop.f32.mrf.mxu1  ;;  %v6056_v57 = vpop.xlane.xlu0 %3337  ;;  %v2243_v56 = vadd.f32 %v2242_v39, %v7360_v32 }
 0x43a   : > { %7359 = vst [vmem:[#allocation42_spill] sm:$0xff] %v6056_v57  ;;  %v3004_v43 = vmax.f32 %v2745_v15, 0.0  ;;  %v6058_v2 = vpop.xlane.xlu2 %3127  ;;  %v2572_v20 = vadd.f32 %v2571_v34, %v7360_v32 }
 0x43b   : > { %v2865_v48 = vmax.f32 %v2243_v56, 0.0 }
 0x43c   : > { %v3381_v21 = vmax.f32 %v3003_v37, %v3004_v43  ;;  %v2866_v9 = vmax.f32 %v2572_v20, 0.0 }
 0x43e   : > { %3382 = vmax.xlane.f32.xlu0 %v3381_v21  ;;  %3172 = vmax.xlane.f32.xlu2 %v3171_v51  ;;  %v2417_v1 = vpop.f32.mrf.mxu2  ;;  %v3174_v39 = vmax.f32 %v2865_v48, %v2866_v9 }
 0x43f   : > { %v2418_v46 = vadd.f32 %v2417_v1, %v7361_v27  ;;  %v2746_v25 = vpop.f32.mrf.mxu3 }
 0x440   : > { %v2747_v62 = vadd.f32 %v2746_v25, %v7361_v27  ;;  %v2245_v54 = vpop.f32.mrf.mxu0 }
 0x441   : > { %v3005_v15 = vmax.f32 %v2418_v46, 0.0  ;;  %v2574_v57 = vpop.f32.mrf.mxu1  ;;  %v6064_v44 = vpop.xlane.xlu1 %3340  ;;  %v2246_v43 = vadd.f32 %v2245_v54, %v7364_v35 }
 0x442   : > { %7362 = vst [vmem:[#allocation5_spill] sm:$0xff] %v6064_v44  ;;  %v3006_v36 = vmax.f32 %v2747_v62, 0.0  ;;  %v6066_v37 = vpop.xlane.xlu0 %3130  ;;  %v2575_v51 = vadd.f32 %v2574_v57, %v7364_v35 }
 0x443   : > { %7363 = vst [vmem:[#allocation44_spill] sm:$0xff] %v6066_v37  ;;  %v2867_v20 = vmax.f32 %v2246_v43, 0.0 }
 0x444   : > { %v3384_v34 = vmax.f32 %v3005_v15, %v3006_v36  ;;  %v2868_v1 = vmax.f32 %v2575_v51, 0.0  ;;  %v7367_v15 = vld [vmem:[#allocation47_spill] sm:$0xff] }
 0x446   : > { %3385 = vmax.xlane.f32.xlu1 %v3384_v34  ;;  %3175 = vmax.xlane.f32.xlu0 %v3174_v39  ;;  %v2420_v21 = vpop.f32.mrf.mxu2  ;;  %v3177_v54 = vmax.f32 %v2867_v20, %v2868_v1 }
 0x447   : > { %v2421_v32 = vadd.f32 %v2420_v21, %v5653_v47  ;;  %v2749_v56 = vpop.f32.mrf.mxu3 }
 0x448   : > { %v2750_v27 = vadd.f32 %v2749_v56, %v5653_v47  ;;  %v2247_v46 = vpop.f32.mrf.mxu0  ;;  %v7368_v47 = vld [vmem:[#allocation46_spill] sm:$0xff] }
 0x449   : > { %v3007_v25 = vmax.f32 %v2421_v32, 0.0  ;;  %v2576_v62 = vpop.f32.mrf.mxu1  ;;  %v6072_v44 = vpop.xlane.xlu1 %3133  ;;  %v2248_v36 = vadd.f32 %v2247_v46, %v7367_v15 }
 0x44a   : > { %7365 = vst [vmem:[#allocation3_spill] sm:$0xff] %v6072_v44  ;;  %v3008_v48 = vmax.f32 %v2750_v27, 0.0  ;;  %v6074_v9 = vpop.xlane.xlu2 %3343  ;;  %v2577_v39 = vadd.f32 %v2576_v62, %v7367_v15 }
 0x44b   : > { %7366 = vst [vmem:[#allocation43_spill] sm:$0xff] %v6074_v9  ;;  %v2869_v34 = vmax.f32 %v2248_v36, 0.0 }
 0x44c   : > { %v3387_v57 = vmax.f32 %v3007_v25, %v3008_v48  ;;  %v2870_v35 = vmax.f32 %v2577_v39, 0.0  ;;  %v7371_v48 = vld [vmem:[#allocation48_spill] sm:$0xff] }
 0x44e   : > { %3178 = vmax.xlane.f32.xlu1 %v3177_v54  ;;  %3388 = vmax.xlane.f32.xlu2 %v3387_v57  ;;  %v3180_v1 = vmax.f32 %v2869_v34, %v2870_v35  ;;  %v7374_v34 = vld [vmem:[#allocation50_spill] sm:$0xff]  ;;  %v2422_v17 = vpop.f32.mrf.mxu2 }
 0x450   : > { %v2250_v43 = vpop.f32.mrf.mxu0 }
 0x451   : > { %v2251_v51 = vadd.f32 %v2250_v43, %v7368_v47  ;;  %v2579_v21 = vpop.f32.mrf.mxu1  ;;  %v6079_v32 = vpop.xlane.xlu0 %3346 }
 0x452   : > { %7369 = vst [vmem:[#allocation7_spill] sm:$0xff] %v6079_v32  ;;  %v2580_v56 = vadd.f32 %v2579_v21, %v7368_v47  ;;  %v6082_v27 = vpop.xlane.xlu2 %3136 }
 0x453   : > { %7370 = vst [vmem:[#allocation45_spill] sm:$0xff] %v6082_v27  ;;  %v2871_v20 = vmax.f32 %v2251_v51, 0.0 }
 0x454   : > { %v2872_v25 = vmax.f32 %v2580_v56, 0.0 }
 0x456   : > { %v3183_v46 = vmax.f32 %v2871_v20, %v2872_v25  ;;  %3181 = vmax.xlane.f32.xlu2 %v3180_v1 }
 0x458   : > { %3184 = vmax.xlane.f32.xlu0 %v3183_v46  ;;  %v2252_v62 = vpop.f32.mrf.mxu0 }
 0x459   : > { %v2253_v54 = vadd.f32 %v2252_v62, %v7371_v48  ;;  %v2581_v57 = vpop.f32.mrf.mxu1  ;;  %v6085_v15 = vpop.xlane.xlu1 %3349 }
 0x45a   : > { %7372 = vst [vmem:[#allocation47_spill] sm:$0xff] %v6085_v15  ;;  %v2582_v36 = vadd.f32 %v2581_v57, %v7371_v48  ;;  %v6088_v39 = vpop.xlane.xlu0 %3139  ;;  %v7377_v57 = vld [vmem:[#allocation49_spill] sm:$0xff] }
 0x45b   : > { %7373 = vst [vmem:[#allocation46_spill] sm:$0xff] %v6088_v39  ;;  %v2873_v43 = vmax.f32 %v2253_v54, 0.0 }
 0x45c   : > { %v2874_v47 = vmax.f32 %v2582_v36, 0.0 }
 0x45e   : > { %v3186_v21 = vmax.f32 %v2873_v43, %v2874_v47 }
 0x460   : > { %3187 = vmax.xlane.f32.xlu1 %v3186_v21  ;;  %v2255_v51 = vpop.f32.mrf.mxu0 }
 0x461   : > { %v2256_v35 = vadd.f32 %v2255_v51, %v7374_v34  ;;  %v2584_v56 = vpop.f32.mrf.mxu1  ;;  %v6091_v20 = vpop.xlane.xlu1 %3142 }
 0x462   : > { %7375 = vst [vmem:[#allocation48_spill] sm:$0xff] %v6091_v20  ;;  %v2585_v1 = vadd.f32 %v2584_v56, %v7374_v34  ;;  %v6094_v25 = vpop.xlane.xlu2 %3352  ;;  %v7380_v56 = vld [vmem:[#allocation51_spill] sm:$0xff]  ;;  %v7408_v20 = vld [vmem:[#allocation6_spill] sm:$0xff] }
 0x463   : > { %7376 = vst [vmem:[#allocation50_spill] sm:$0xff] %v6094_v25  ;;  %v2875_v46 = vmax.f32 %v2256_v35, 0.0 }
 0x464   : > { %v2876_v62 = vmax.f32 %v2585_v1, 0.0 }
 0x466   : > { %v3189_v15 = vmax.f32 %v2875_v46, %v2876_v62 }
 0x468   : > { %3190 = vmax.xlane.f32.xlu2 %v3189_v15  ;;  %v2257_v48 = vpop.f32.mrf.mxu0 }
 0x469   : > { %v2258_v54 = vadd.f32 %v2257_v48, %v7377_v57  ;;  %v2586_v36 = vpop.f32.mrf.mxu1  ;;  %v6097_v43 = vpop.xlane.xlu0 %3355 }
 0x46a   : > { %7378 = vst [vmem:[#allocation49_spill] sm:$0xff] %v6097_v43  ;;  %v2587_v47 = vadd.f32 %v2586_v36, %v7377_v57  ;;  %v6100_v21 = vpop.xlane.xlu2 %3145  ;;  %v7383_v36 = vld [vmem:[#allocation53_spill] sm:$0xff] }
 0x46b   : > { %7379 = vst [vmem:[#allocation66_spill] sm:$0xff] %v6100_v21  ;;  %v2877_v51 = vmax.f32 %v2258_v54, 0.0 }
 0x46c   : > { %v2878_v32 = vmax.f32 %v2587_v47, 0.0 }
 0x46e   : > { %v3192_v9 = vmax.f32 %v2877_v51, %v2878_v32 }
 0x470   : > { %3193 = vmax.xlane.f32.xlu0 %v3192_v9  ;;  %v2260_v34 = vpop.f32.mrf.mxu0 }
 0x471   : > { %v2261_v35 = vadd.f32 %v2260_v34, %v7380_v56  ;;  %v2589_v1 = vpop.f32.mrf.mxu1  ;;  %v6103_v46 = vpop.xlane.xlu1 %3358 }
 0x472   : > { %7381 = vst [vmem:[#allocation51_spill] sm:$0xff] %v6103_v46  ;;  %v2590_v15 = vadd.f32 %v2589_v1, %v7380_v56  ;;  %v6106_v62 = vpop.xlane.xlu0 %3148  ;;  %v7386_v1 = vld [vmem:[#allocation52_spill] sm:$0xff] }
 0x473   : > { %7382 = vst [vmem:[#allocation67_spill] sm:$0xff] %v6106_v62  ;;  %v2879_v48 = vmax.f32 %v2261_v35, 0.0 }
 0x474   : > { %v2880_v43 = vmax.f32 %v2590_v15, 0.0 }
 0x476   : > { %v3195_v25 = vmax.f32 %v2879_v48, %v2880_v43 }
 0x478   : > { %3196 = vmax.xlane.f32.xlu1 %v3195_v25  ;;  %v2262_v57 = vpop.f32.mrf.mxu0 }
 0x479   : > { %v2263_v54 = vadd.f32 %v2262_v57, %v7383_v36  ;;  %v2591_v47 = vpop.f32.mrf.mxu1  ;;  %v6109_v32 = vpop.xlane.xlu1 %3151 }
 0x47a   : > { %7384 = vst [vmem:[#allocation53_spill] sm:$0xff] %v6109_v32  ;;  %v2592_v9 = vadd.f32 %v2591_v47, %v7383_v36  ;;  %v6112_v51 = vpop.xlane.xlu2 %3361  ;;  %v7389_v47 = vld [vmem:[#allocation54_spill] sm:$0xff] }
 0x47b   : > { %7385 = vst [vmem:[#allocation68_spill] sm:$0xff] %v6112_v51  ;;  %v2881_v34 = vmax.f32 %v2263_v54, 0.0 }
 0x47c   : > { %v2882_v46 = vmax.f32 %v2592_v9, 0.0 }
 0x47e   : > { %v3198_v24 = vmax.f32 %v2881_v34, %v2882_v46 }
 0x480   : > { %3199 = vmax.xlane.f32.xlu2 %v3198_v24  ;;  %v2265_v56 = vpop.f32.mrf.mxu0 }
 0x481   : > { %v2266_v35 = vadd.f32 %v2265_v56, %v7386_v1  ;;  %v2594_v15 = vpop.f32.mrf.mxu1  ;;  %v6115_v43 = vpop.xlane.xlu0 %3364 }
 0x482   : > { %7387 = vst [vmem:[#allocation52_spill] sm:$0xff] %v6115_v43  ;;  %v2595_v25 = vadd.f32 %v2594_v15, %v7386_v1  ;;  %v6118_v48 = vpop.xlane.xlu2 %3154  ;;  %v7392_v15 = vld [vmem:[#allocation56_spill] sm:$0xff] }
 0x483   : > { %7388 = vst [vmem:[#allocation69_spill] sm:$0xff] %v6118_v48  ;;  %v2883_v57 = vmax.f32 %v2266_v35, 0.0 }
 0x484   : > { %v2884_v31 = vmax.f32 %v2595_v25, 0.0 }
 0x486   : > { %v3201_v22 = vmax.f32 %v2883_v57, %v2884_v31 }
 0x488   : > { %3202 = vmax.xlane.f32.xlu0 %v3201_v22  ;;  %v2267_v36 = vpop.f32.mrf.mxu0 }
 0x489   : > { %v2268_v54 = vadd.f32 %v2267_v36, %v7389_v47  ;;  %v2596_v9 = vpop.f32.mrf.mxu1  ;;  %v6121_v46 = vpop.xlane.xlu1 %3367 }
 0x48a   : > { %7390 = vst [vmem:[#allocation54_spill] sm:$0xff] %v6121_v46  ;;  %v2597_v24 = vadd.f32 %v2596_v9, %v7389_v47  ;;  %v6124_v34 = vpop.xlane.xlu0 %3157  ;;  %v2751_v47 = vpop.f32.mrf.mxu3 }
 0x48b   : > { %7391 = vst [vmem:[#allocation70_spill] sm:$0xff] %v6124_v34  ;;  %v2885_v56 = vmax.f32 %v2268_v54, 0.0  ;;  %v7398_v34 = vld [vmem:[#allocation57_spill] sm:$0xff] }
 0x48c   : > { %v2886_v43 = vmax.f32 %v2597_v24, 0.0  ;;  %v7395_v24 = vld [vmem:[#allocation55_spill] sm:$0xff] }
 0x48e   : > { %v3204_v51 = vmax.f32 %v2885_v56, %v2886_v43 }
 0x490   : > { %3205 = vmax.xlane.f32.xlu1 %v3204_v51  ;;  %v2270_v1 = vpop.f32.mrf.mxu0 }
 0x491   : > { %v2271_v35 = vadd.f32 %v2270_v1, %v7392_v15  ;;  %v2599_v25 = vpop.f32.mrf.mxu1  ;;  %v6127_v31 = vpop.xlane.xlu1 %3160 }
 0x492   : > { %7393 = vst [vmem:[#allocation56_spill] sm:$0xff] %v6127_v31  ;;  %v2600_v22 = vadd.f32 %v2599_v25, %v7392_v15  ;;  %v6130_v57 = vpop.xlane.xlu2 %3370 }
 0x493   : > { %7394 = vst [vmem:[#allocation71_spill] sm:$0xff] %v6130_v57  ;;  %v2887_v36 = vmax.f32 %v2271_v35, 0.0  ;;  %v2425_v57 = vpop.f32.mrf.mxu2  ;;  %v2754_v35 = vpop.f32.mrf.mxu3 }
 0x494   : > { %v2888_v46 = vmax.f32 %v2600_v22, 0.0 }
 0x496   : > { %v3207_v9 = vmax.f32 %v2887_v36, %v2888_v46 }
 0x498   : > { %3208 = vmax.xlane.f32.xlu2 %v3207_v9  ;;  %v2272_v54 = vpop.f32.mrf.mxu0 }
 0x499   : > { %v2273_v43 = vadd.f32 %v2272_v54, %v7395_v24  ;;  %v2601_v51 = vpop.f32.mrf.mxu1  ;;  %v6133_v56 = vpop.xlane.xlu0 %3373 }
 0x49a   : > { %7396 = vst [vmem:[#allocation55_spill] sm:$0xff] %v6133_v56  ;;  %v2602_v1 = vadd.f32 %v2601_v51, %v7395_v24  ;;  %v6136_v38 = vpop.xlane.xlu2 %3163 }
 0x49b   : > { %7397 = vst [vmem:[#allocation72_spill] sm:$0xff] %v6136_v38  ;;  %v2889_v31 = vmax.f32 %v2273_v43, 0.0  ;;  %v2427_v32 = vpop.f32.mrf.mxu2 }
 0x49c   : > { %v2890_v15 = vmax.f32 %v2602_v1, 0.0  ;;  %v7401_v1 = vld [vmem:[#allocation59_spill] sm:$0xff] }
 0x49e   : > { %v3210_v25 = vmax.f32 %v2889_v31, %v2890_v15 }
 0x4a0   : > { %3211 = vmax.xlane.f32.xlu0 %v3210_v25  ;;  %v2275_v22 = vpop.f32.mrf.mxu0 }
 0x4a1   : > { %v2276_v46 = vadd.f32 %v2275_v22, %v7398_v34  ;;  %v2604_v36 = vpop.f32.mrf.mxu1  ;;  %v6139_v9 = vpop.xlane.xlu1 %3376 }
 0x4a2   : > { %7399 = vst [vmem:[#allocation57_spill] sm:$0xff] %v6139_v9  ;;  %v2605_v54 = vadd.f32 %v2604_v36, %v7398_v34  ;;  %v6142_v48 = vpop.xlane.xlu0 %3166  ;;  %v2756_v9 = vpop.f32.mrf.mxu3  ;;  %v7404_v36 = vld [vmem:[#allocation9_spill] sm:$0xff] }
 0x4a3   : > { %7400 = vst [vmem:[#allocation73_spill] sm:$0xff] %v6142_v48  ;;  %v2891_v56 = vmax.f32 %v2276_v46, 0.0  ;;  %v2428_v48 = vadd.f32 %v2427_v32, %v7404_v36  ;;  %v2757_v46 = vadd.f32 %v2756_v9, %v7404_v36  ;;  %v2423_v32 = vadd.f32 %v2422_v17, %v7408_v20 }
 0x4a4   : > { %v2892_v24 = vmax.f32 %v2605_v54, 0.0  ;;  %v2752_v9 = vadd.f32 %v2751_v47, %v7408_v20  ;;  %v7411_v20 = vld [vmem:[#allocation8_spill] sm:$0xff] }
 0x4a5   : > { %v2755_v47 = vadd.f32 %v2754_v35, %v7411_v20 }
 0x4a6   : > { %v3213_v51 = vmax.f32 %v2891_v56, %v2892_v24  ;;  %v7405_v24 = vld [vmem:[#allocation58_spill] sm:$0xff] }
 0x4a8   : > { %3214 = vmax.xlane.f32.xlu1 %v3213_v51  ;;  %v2277_v43 = vpop.f32.mrf.mxu0 }
 0x4a9   : > { %v2278_v31 = vadd.f32 %v2277_v43, %v7401_v1  ;;  %v2606_v15 = vpop.f32.mrf.mxu1  ;;  %v6145_v38 = vpop.xlane.xlu1 %3169 }
 0x4aa   : > { %7402 = vst [vmem:[#allocation59_spill] sm:$0xff] %v6145_v38  ;;  %v2607_v25 = vadd.f32 %v2606_v15, %v7401_v1  ;;  %v6148_v22 = vpop.xlane.xlu2 %3379  ;;  %v3013_v38 = vmax.f32 %v2428_v48, 0.0  ;;  %v3014_v1 = vmax.f32 %v2757_v46, 0.0  ;;  %v3009_v46 = vmax.f32 %v2423_v32, 0.0 }
 0x4ab   : > { %7403 = vst [vmem:[#allocation74_spill] sm:$0xff] %v6148_v22  ;;  %v2893_v62 = vmax.f32 %v2278_v31, 0.0 }
 0x4ac   : > { %v2894_v34 = vmax.f32 %v2607_v25, 0.0 }
 0x4ae   : > { %v3216_v56 = vmax.f32 %v2893_v62, %v2894_v34  ;;  %v3396_v62 = vmax.f32 %v3013_v38, %v3014_v1  ;;  %v2426_v38 = vadd.f32 %v2425_v57, %v7411_v20 }
 0x4b0   : > { %3217 = vmax.xlane.f32.xlu2 %v3216_v56  ;;  %v2280_v54 = vpop.f32.mrf.mxu0  ;;  %v7409_v56 = vld [vmem:[#allocation60_spill] sm:$0xff]  ;;  %v3011_v32 = vmax.f32 %v2426_v38, 0.0 }
 0x4b1   : > { %v2281_v51 = vadd.f32 %v2280_v54, %v7405_v24  ;;  %v2609_v43 = vpop.f32.mrf.mxu1  ;;  %v6153_v21 = vpop.xlane.xlu0 %3382 }
 0x4b2   : > { %7406 = vst [vmem:[#allocation9_spill] sm:$0xff] %v6153_v21  ;;  %v2610_v15 = vadd.f32 %v2609_v43, %v7405_v24  ;;  %v6156_v22 = vpop.xlane.xlu2 %3172  ;;  %v3010_v24 = vmax.f32 %v2752_v9, 0.0  ;;  %v3012_v9 = vmax.f32 %v2755_v47, 0.0 }
 0x4b3   : > { %7407 = vst [vmem:[#allocation58_spill] sm:$0xff] %v6156_v22  ;;  %v2895_v31 = vmax.f32 %v2281_v51, 0.0 }
 0x4b4   : > { %v2896_v25 = vmax.f32 %v2610_v15, 0.0  ;;  %v3390_v22 = vmax.f32 %v3009_v46, %v3010_v24 }
 0x4b6   : > { %v3219_v34 = vmax.f32 %v2895_v31, %v2896_v25 }
 0x4b8   : > { %3220 = vmax.xlane.f32.xlu0 %v3219_v34  ;;  %3397 = vmax.xlane.f32.xlu2 %v3396_v62  ;;  %v2282_v36 = vpop.f32.mrf.mxu0  ;;  %v3393_v62 = vmax.f32 %v3011_v32, %v3012_v9 }
 0x4b9   : > { %v2283_v54 = vadd.f32 %v2282_v36, %v7409_v56  ;;  %v2611_v21 = vpop.f32.mrf.mxu1  ;;  %v6161_v48 = vpop.xlane.xlu1 %3385 }
 0x4ba   : > { %7410 = vst [vmem:[#allocation6_spill] sm:$0xff] %v6161_v48  ;;  %v2612_v43 = vadd.f32 %v2611_v21, %v7409_v56  ;;  %v6164_v51 = vpop.xlane.xlu0 %3175 }
 0x4bb   : > { %v2897_v15 = vmax.f32 %v2283_v54, 0.0 }
 0x4bc   : > { %v2898_v17 = vmax.f32 %v2612_v43, 0.0 }
 0x4be   : > { %v3222_v1 = vmax.f32 %v2897_v15, %v2898_v17 }
 0x4c0   : > { %3223 = vmax.xlane.f32.xlu1 %v3222_v1  ;;  %3391 = vmax.xlane.f32.xlu0 %v3390_v22 }
 0x4c1   : > { %v6168_v31 = vpop.xlane.xlu1 %3178  ;;  %v6170_v25 = vpop.xlane.xlu2 %3388 }
 0x4c2   : > { %7412 = vst [vmem:[#allocation60_spill] sm:$0xff] %v6170_v25 }
 0x4c8   : > { %3394 = vmax.xlane.f32.xlu1 %v3393_v62 }
 0x4c9   : > { %v6172_v21 = vpop.xlane.xlu2 %3181 }
 0x4cb   : > { %v6174_v34 = vpop.xlane.xlu0 %3184 }
 0x4d3   : > { %v6176_v36 = vpop.xlane.xlu1 %3187 }
 0x4db   : > { %v6178_v57 = vpop.xlane.xlu2 %3190 }
 0x4e3   : > { %v6180_v35 = vpop.xlane.xlu0 %3193 }
 0x4eb   : > { %v6182_v56 = vpop.xlane.xlu1 %3196 }
 0x4f3   : > { %v6184_v22 = vpop.xlane.xlu2 %3199 }
 0x4fb   : > { %v6186_v54 = vpop.xlane.xlu0 %3202 }
 0x503   : > { %v6188_v46 = vpop.xlane.xlu1 %3205 }
 0x50b   : > { %v6190_v24 = vpop.xlane.xlu2 %3208 }
 0x513   : > { %v6192_v43 = vpop.xlane.xlu0 %3211 }
 0x51b   : > { %v6194_v15 = vpop.xlane.xlu1 %3214 }
 0x523   : > { %v6196_v17 = vpop.xlane.xlu2 %3217 }
 0x52b   : > { %v6198_v20 = vpop.xlane.xlu0 %3220  ;;  %v6200_v38 = vpop.xlane.xlu2 %3397 }
 0x52c   : > { %7413 = vst [vmem:[#allocation8_spill] sm:$0xff] %v6198_v20 }
 0x52d   : > { %7414 = vst [vmem:[#allocation75_spill] sm:$0xff] %v6200_v38 }
 0x533   : > { %v6202_v47 = vpop.xlane.xlu1 %3223  ;;  %v6204_v1 = vpop.xlane.xlu0 %3391 }
 0x534   : > { %7415 = vst [vmem:[#allocation76_spill] sm:$0xff] %v6202_v47 }
 0x535   : > { %7416 = vst [vmem:[#allocation77_spill] sm:$0xff] %v6204_v1 }
 0x538   : > { %3402 = sbr.rel (%p4331_p7) target bundleno = 1470 (0x5be), region = 52 }
 0x53b   : > { %v6206_v32 = vpop.xlane.xlu1 %3394 }
 0x53c   : > { %7417 = vst [vmem:[#allocation78_spill] sm:$0xff] %v6206_v32 }
 0x53d   : > { %vm3403_vm4 = vcmask 7168   ;;  %v7418_v9 = vld [vmem:[#allocation10_spill] sm:$0xff]  ;;  %v7419_v62 = vld [vmem:[#allocation11_spill] sm:$0xff] }
 0x53e   : > { %3404 = vst.msk [vmem:[%s4600_s20] sm:$0xff] %vm3403_vm4, %v7418_v9  ;;  %v7420_v9 = vld [vmem:[#allocation48_spill] sm:$0xff] }
 0x53f   : > { %3405 = vst.msk [vmem:[%s4600_s20 + $0x8] sm:$0xff] %vm3403_vm4, %v7419_v62  ;;  %v7421_v62 = vld [vmem:[#allocation66_spill] sm:$0xff] }
 0x540   : > { %3406 = vst.msk [vmem:[%s4600_s20 + $0x10] sm:$0xff] %vm3403_vm4, %v5682_v58 }
 0x541   : > { %3407 = vst.msk [vmem:[%s4600_s20 + $0x18] sm:$0xff] %vm3403_vm4, %v5696_v41 }
 0x542   : > { %3408 = vst.msk [vmem:[%s4600_s20 + $0x20] sm:$0xff] %vm3403_vm4, %v5716_v29 }
 0x543   : > { %3409 = vst.msk [vmem:[%s4600_s20 + $0x28] sm:$0xff] %vm3403_vm4, %v5724_v19 }
 0x544   : > { %3410 = vst.msk [vmem:[%s4600_s20 + $0x30] sm:$0xff] %vm3403_vm4, %v5736_v7 }
 0x545   : > { %3411 = vst.msk [vmem:[%s4600_s20 + $0x38] sm:$0xff] %vm3403_vm4, %v5746_v59 }
 0x546   : > { %3412 = vst.msk [vmem:[%s4600_s20 + $0x40] sm:$0xff] %vm3403_vm4, %v5760_v61 }
 0x547   : > { %3413 = vst.msk [vmem:[%s4600_s20 + $0x48] sm:$0xff] %vm3403_vm4, %v5766_v10 }
 0x548   : > { %3414 = vst.msk [vmem:[%s4600_s20 + $0x50] sm:$0xff] %vm3403_vm4, %v5782_v45 }
 0x549   : > { %3415 = vst.msk [vmem:[%s4600_s20 + $0x58] sm:$0xff] %vm3403_vm4, %v5790_v5 }
 0x54a   : > { %3416 = vst.msk [vmem:[%s4600_s20 + $0x60] sm:$0xff] %vm3403_vm4, %v5802_v52 }
 0x54b   : > { %3417 = vst.msk [vmem:[%s4600_s20 + $0x68] sm:$0xff] %vm3403_vm4, %v5812_v13 }
 0x54c   : > { %3418 = vst.msk [vmem:[%s4600_s20 + $0x70] sm:$0xff] %vm3403_vm4, %v5826_v4 }
 0x54d   : > { %3419 = vst.msk [vmem:[%s4600_s20 + $0x78] sm:$0xff] %vm3403_vm4, %v5832_v8 }
 0x54e   : > { %3420 = vst.msk [vmem:[%s4600_s20 + $0x80] sm:$0xff] %vm3403_vm4, %v5848_v50 }
 0x54f   : > { %3421 = vst.msk [vmem:[%s4600_s20 + $0x88] sm:$0xff] %vm3403_vm4, %v5856_v40 }
 0x550   : > { %3422 = vst.msk [vmem:[%s4600_s20 + $0x90] sm:$0xff] %vm3403_vm4, %v5868_v23 }
 0x551   : > { %3423 = vst.msk [vmem:[%s4600_s20 + $0x98] sm:$0xff] %vm3403_vm4, %v5878_v42 }
 0x552   : > { %3424 = vst.msk [vmem:[%s4600_s20 + $0xa0] sm:$0xff] %vm3403_vm4, %v5892_v11 }
 0x553   : > { %3425 = vst.msk [vmem:[%s4600_s20 + $0xa8] sm:$0xff] %vm3403_vm4, %v5898_v0 }
 0x554   : > { %3426 = vst.msk [vmem:[%s4600_s20 + $0xb0] sm:$0xff] %vm3403_vm4, %v5914_v3 }
 0x555   : > { %3427 = vst.msk [vmem:[%s4600_s20 + $0xb8] sm:$0xff] %vm3403_vm4, %v5922_v60 }
 0x556   : > { %3428 = vst.msk [vmem:[%s4600_s20 + $0xc0] sm:$0xff] %vm3403_vm4, %v5934_v53 }
 0x557   : > { %3429 = vst.msk [vmem:[%s4600_s20 + $0xc8] sm:$0xff] %vm3403_vm4, %v5944_v6 }
 0x558   : > { %3430 = vst.msk [vmem:[%s4600_s20 + $0xd0] sm:$0xff] %vm3403_vm4, %v5955_v16 }
 0x559   : > { %3431 = vst.msk [vmem:[%s4600_s20 + $0xd8] sm:$0xff] %vm3403_vm4, %v5961_v12 }
 0x55a   : > { %3432 = vst.msk [vmem:[%s4600_s20 + $0xe0] sm:$0xff] %vm3403_vm4, %v5974_v33 }
 0x55b   : > { %3433 = vst.msk [vmem:[%s4600_s20 + $0xe8] sm:$0xff] %vm3403_vm4, %v5982_v49 }
 0x55c   : > { %3434 = vst.msk [vmem:[%s4600_s20 + $0xf0] sm:$0xff] %vm3403_vm4, %v5991_v30 }
 0x55d   : > { %3435 = vst.msk [vmem:[%s4600_s20 + $0xf8] sm:$0xff] %vm3403_vm4, %v6001_v28 }
 0x55e   : > { %3436 = vst.msk [vmem:[%s4600_s20 + $0x100] sm:$0xff] %vm3403_vm4, %v6012_v55 }
 0x55f   : > { %3437 = vst.msk [vmem:[%s4600_s20 + $0x108] sm:$0xff] %vm3403_vm4, %v6018_v63 }
 0x560   : > { %3438 = vst.msk [vmem:[%s4600_s20 + $0x110] sm:$0xff] %vm3403_vm4, %v6031_v14 }
 0x561   : > { %3439 = vst.msk [vmem:[%s4600_s20 + $0x118] sm:$0xff] %vm3403_vm4, %v6039_v26 }
 0x562   : > { %3440 = vst.msk [vmem:[%s4600_s20 + $0x120] sm:$0xff] %vm3403_vm4, %v6048_v18 }
 0x563   : > { %3441 = vst.msk [vmem:[%s4600_s20 + $0x128] sm:$0xff] %vm3403_vm4, %v6058_v2 }
 0x564   : > { %3442 = vst.msk [vmem:[%s4600_s20 + $0x130] sm:$0xff] %vm3403_vm4, %v6066_v37  ;;  %v7422_v37 = vld [vmem:[#allocation67_spill] sm:$0xff] }
 0x565   : > { %3443 = vst.msk [vmem:[%s4600_s20 + $0x138] sm:$0xff] %vm3403_vm4, %v6072_v44  ;;  %v7423_v44 = vld [vmem:[#allocation53_spill] sm:$0xff] }
 0x566   : > { %3444 = vst.msk [vmem:[%s4600_s20 + $0x140] sm:$0xff] %vm3403_vm4, %v6082_v27  ;;  %v7424_v27 = vld [vmem:[#allocation69_spill] sm:$0xff] }
 0x567   : > { %3445 = vst.msk [vmem:[%s4600_s20 + $0x148] sm:$0xff] %vm3403_vm4, %v6088_v39  ;;  %v7425_v39 = vld [vmem:[#allocation70_spill] sm:$0xff] }
 0x568   : > { %3446 = vst.msk [vmem:[%s4600_s20 + $0x150] sm:$0xff] %vm3403_vm4, %v7420_v9  ;;  %v7426_v9 = vld [vmem:[#allocation56_spill] sm:$0xff] }
 0x569   : > { %3447 = vst.msk [vmem:[%s4600_s20 + $0x158] sm:$0xff] %vm3403_vm4, %v7421_v62  ;;  %v7427_v62 = vld [vmem:[#allocation72_spill] sm:$0xff] }
 0x56a   : > { %3448 = vst.msk [vmem:[%s4600_s20 + $0x160] sm:$0xff] %vm3403_vm4, %v7422_v37  ;;  %v7428_v37 = vld [vmem:[#allocation73_spill] sm:$0xff] }
 0x56b   : > { %3449 = vst.msk [vmem:[%s4600_s20 + $0x168] sm:$0xff] %vm3403_vm4, %v7423_v44  ;;  %v7429_v44 = vld [vmem:[#allocation59_spill] sm:$0xff] }
 0x56c   : > { %3450 = vst.msk [vmem:[%s4600_s20 + $0x170] sm:$0xff] %vm3403_vm4, %v7424_v27  ;;  %v7430_v27 = vld [vmem:[#allocation58_spill] sm:$0xff] }
 0x56d   : > { %3451 = vst.msk [vmem:[%s4600_s20 + $0x178] sm:$0xff] %vm3403_vm4, %v7425_v39  ;;  %v7431_v39 = vld [vmem:[#allocation13_spill] sm:$0xff] }
 0x56e   : > { %3452 = vst.msk [vmem:[%s4600_s20 + $0x180] sm:$0xff] %vm3403_vm4, %v7426_v9  ;;  %v7432_v9 = vld [vmem:[#allocation12_spill] sm:$0xff] }
 0x56f   : > { %3453 = vst.msk [vmem:[%s4600_s20 + $0x188] sm:$0xff] %vm3403_vm4, %v7427_v62  ;;  %v7433_v62 = vld [vmem:[#allocation14_spill] sm:$0xff] }
 0x570   : > { %3454 = vst.msk [vmem:[%s4600_s20 + $0x190] sm:$0xff] %vm3403_vm4, %v7428_v37  ;;  %v7434_v37 = vld [vmem:[#allocation16_spill] sm:$0xff] }
 0x571   : > { %3455 = vst.msk [vmem:[%s4600_s20 + $0x198] sm:$0xff] %vm3403_vm4, %v7429_v44  ;;  %v7435_v44 = vld [vmem:[#allocation15_spill] sm:$0xff] }
 0x572   : > { %3456 = vst.msk [vmem:[%s4600_s20 + $0x1a0] sm:$0xff] %vm3403_vm4, %v7430_v27  ;;  %v7436_v27 = vld [vmem:[#allocation17_spill] sm:$0xff] }
 0x573   : > { %3457 = vst.msk [vmem:[%s4600_s20 + $0x1a8] sm:$0xff] %vm3403_vm4, %v6164_v51 }
 0x574   : > { %3458 = vst.msk [vmem:[%s4600_s20 + $0x1b0] sm:$0xff] %vm3403_vm4, %v6168_v31 }
 0x575   : > { %3459 = vst.msk [vmem:[%s4600_s20 + $0x1b8] sm:$0xff] %vm3403_vm4, %v6172_v21 }
 0x576   : > { %3460 = vst.msk [vmem:[%s4600_s20 + $0x1c0] sm:$0xff] %vm3403_vm4, %v6174_v34 }
 0x577   : > { %3461 = vst.msk [vmem:[%s4600_s20 + $0x1c8] sm:$0xff] %vm3403_vm4, %v6176_v36 }
 0x578   : > { %3462 = vst.msk [vmem:[%s4600_s20 + $0x1d0] sm:$0xff] %vm3403_vm4, %v6178_v57 }
 0x579   : > { %3463 = vst.msk [vmem:[%s4600_s20 + $0x1d8] sm:$0xff] %vm3403_vm4, %v6180_v35 }
 0x57a   : > { %3464 = vst.msk [vmem:[%s4600_s20 + $0x1e0] sm:$0xff] %vm3403_vm4, %v6182_v56 }
 0x57b   : > { %3465 = vst.msk [vmem:[%s4600_s20 + $0x1e8] sm:$0xff] %vm3403_vm4, %v6184_v22 }
 0x57c   : > { %3466 = vst.msk [vmem:[%s4600_s20 + $0x1f0] sm:$0xff] %vm3403_vm4, %v6186_v54 }
 0x57d   : > { %3467 = vst.msk [vmem:[%s4600_s20 + $0x1f8] sm:$0xff] %vm3403_vm4, %v6188_v46 }
 0x57e   : > { %3468 = vst.msk [vmem:[%s4600_s20 + $0x200] sm:$0xff] %vm3403_vm4, %v6190_v24 }
 0x57f   : > { %3469 = vst.msk [vmem:[%s4600_s20 + $0x208] sm:$0xff] %vm3403_vm4, %v6192_v43 }
 0x580   : > { %3470 = vst.msk [vmem:[%s4600_s20 + $0x210] sm:$0xff] %vm3403_vm4, %v6194_v15 }
 0x581   : > { %3471 = vst.msk [vmem:[%s4600_s20 + $0x218] sm:$0xff] %vm3403_vm4, %v6196_v17 }
 0x582   : > { %3472 = vst.msk [vmem:[%s4600_s20 + $0x220] sm:$0xff] %vm3403_vm4, %v6198_v20  ;;  %v7480_v20 = vld [vmem:[#allocation55_spill] sm:$0xff] }
 0x583   : > { %3473 = vst.msk [vmem:[%s4600_s20 + $0x228] sm:$0xff] %vm3403_vm4, %v6202_v47  ;;  %v7476_v47 = vld [vmem:[#allocation68_spill] sm:$0xff] }
 0x584   : > { %3474 = vst.msk [vmem:[%s4600_s20 + $0x230] sm:$0xff] %vm3403_vm4, %v7431_v39  ;;  %v7437_v39 = vld [vmem:[#allocation19_spill] sm:$0xff] }
 0x585   : > { %3475 = vst.msk [vmem:[%s4600_s20 + $0x238] sm:$0xff] %vm3403_vm4, %v7432_v9  ;;  %v7438_v9 = vld [vmem:[#allocation18_spill] sm:$0xff] }
 0x586   : > { %3476 = vst.msk [vmem:[%s4600_s20 + $0x240] sm:$0xff] %vm3403_vm4, %v7433_v62  ;;  %v7439_v62 = vld [vmem:[#allocation20_spill] sm:$0xff] }
 0x587   : > { %3477 = vst.msk [vmem:[%s4600_s20 + $0x248] sm:$0xff] %vm3403_vm4, %v7434_v37  ;;  %v7440_v37 = vld [vmem:[#allocation22_spill] sm:$0xff] }
 0x588   : > { %3478 = vst.msk [vmem:[%s4600_s20 + $0x250] sm:$0xff] %vm3403_vm4, %v7435_v44  ;;  %v7441_v44 = vld [vmem:[#allocation21_spill] sm:$0xff] }
 0x589   : > { %3479 = vst.msk [vmem:[%s4600_s20 + $0x258] sm:$0xff] %vm3403_vm4, %v7436_v27  ;;  %v7442_v27 = vld [vmem:[#allocation23_spill] sm:$0xff] }
 0x58a   : > { %3480 = vst.msk [vmem:[%s4600_s20 + $0x260] sm:$0xff] %vm3403_vm4, %v7437_v39  ;;  %v7443_v39 = vld [vmem:[#allocation25_spill] sm:$0xff] }
 0x58b   : > { %3481 = vst.msk [vmem:[%s4600_s20 + $0x268] sm:$0xff] %vm3403_vm4, %v7438_v9  ;;  %v7444_v9 = vld [vmem:[#allocation24_spill] sm:$0xff] }
 0x58c   : > { %3482 = vst.msk [vmem:[%s4600_s20 + $0x270] sm:$0xff] %vm3403_vm4, %v7439_v62  ;;  %v7445_v62 = vld [vmem:[#allocation26_spill] sm:$0xff] }
 0x58d   : > { %3483 = vst.msk [vmem:[%s4600_s20 + $0x278] sm:$0xff] %vm3403_vm4, %v7440_v37  ;;  %v7446_v37 = vld [vmem:[#allocation28_spill] sm:$0xff] }
 0x58e   : > { %3484 = vst.msk [vmem:[%s4600_s20 + $0x280] sm:$0xff] %vm3403_vm4, %v7441_v44  ;;  %v7447_v44 = vld [vmem:[#allocation27_spill] sm:$0xff] }
 0x58f   : > { %3485 = vst.msk [vmem:[%s4600_s20 + $0x288] sm:$0xff] %vm3403_vm4, %v7442_v27  ;;  %v7448_v27 = vld [vmem:[#allocation29_spill] sm:$0xff] }
 0x590   : > { %3486 = vst.msk [vmem:[%s4600_s20 + $0x290] sm:$0xff] %vm3403_vm4, %v7443_v39  ;;  %v7449_v39 = vld [vmem:[#allocation31_spill] sm:$0xff] }
 0x591   : > { %3487 = vst.msk [vmem:[%s4600_s20 + $0x298] sm:$0xff] %vm3403_vm4, %v7444_v9  ;;  %v7450_v9 = vld [vmem:[#allocation30_spill] sm:$0xff] }
 0x592   : > { %3488 = vst.msk [vmem:[%s4600_s20 + $0x2a0] sm:$0xff] %vm3403_vm4, %v7445_v62  ;;  %v7451_v62 = vld [vmem:[#allocation32_spill] sm:$0xff] }
 0x593   : > { %3489 = vst.msk [vmem:[%s4600_s20 + $0x2a8] sm:$0xff] %vm3403_vm4, %v7446_v37  ;;  %v7452_v37 = vld [vmem:[#allocation34_spill] sm:$0xff] }
 0x594   : > { %3490 = vst.msk [vmem:[%s4600_s20 + $0x2b0] sm:$0xff] %vm3403_vm4, %v7447_v44  ;;  %v7453_v44 = vld [vmem:[#allocation33_spill] sm:$0xff] }
 0x595   : > { %3491 = vst.msk [vmem:[%s4600_s20 + $0x2b8] sm:$0xff] %vm3403_vm4, %v7448_v27  ;;  %v7454_v27 = vld [vmem:[#allocation35_spill] sm:$0xff] }
 0x596   : > { %3492 = vst.msk [vmem:[%s4600_s20 + $0x2c0] sm:$0xff] %vm3403_vm4, %v7449_v39  ;;  %v7455_v39 = vld [vmem:[#allocation37_spill] sm:$0xff] }
 0x597   : > { %3493 = vst.msk [vmem:[%s4600_s20 + $0x2c8] sm:$0xff] %vm3403_vm4, %v7450_v9  ;;  %v7456_v9 = vld [vmem:[#allocation36_spill] sm:$0xff] }
 0x598   : > { %3494 = vst.msk [vmem:[%s4600_s20 + $0x2d0] sm:$0xff] %vm3403_vm4, %v7451_v62  ;;  %v7457_v62 = vld [vmem:[#allocation38_spill] sm:$0xff] }
 0x599   : > { %3495 = vst.msk [vmem:[%s4600_s20 + $0x2d8] sm:$0xff] %vm3403_vm4, %v7452_v37  ;;  %v7458_v37 = vld [vmem:[#allocation39_spill] sm:$0xff] }
 0x59a   : > { %3496 = vst.msk [vmem:[%s4600_s20 + $0x2e0] sm:$0xff] %vm3403_vm4, %v7453_v44  ;;  %v7459_v44 = vld [vmem:[#allocation61_spill] sm:$0xff] }
 0x59b   : > { %3497 = vst.msk [vmem:[%s4600_s20 + $0x2e8] sm:$0xff] %vm3403_vm4, %v7454_v27  ;;  %v7460_v27 = vld [vmem:[#allocation62_spill] sm:$0xff] }
 0x59c   : > { %3498 = vst.msk [vmem:[%s4600_s20 + $0x2f0] sm:$0xff] %vm3403_vm4, %v7455_v39  ;;  %v7461_v39 = vld [vmem:[#allocation63_spill] sm:$0xff] }
 0x59d   : > { %3499 = vst.msk [vmem:[%s4600_s20 + $0x2f8] sm:$0xff] %vm3403_vm4, %v7456_v9  ;;  %v7462_v9 = vld [vmem:[#allocation64_spill] sm:$0xff] }
 0x59e   : > { %3500 = vst.msk [vmem:[%s4600_s20 + $0x300] sm:$0xff] %vm3403_vm4, %v7457_v62  ;;  %v7463_v62 = vld [vmem:[#allocation65_spill] sm:$0xff] }
 0x59f   : > { %3501 = vst.msk [vmem:[%s4600_s20 + $0x308] sm:$0xff] %vm3403_vm4, %v7458_v37  ;;  %v7464_v37 = vld [vmem:[#allocation4_spill] sm:$0xff] }
 0x5a0   : > { %3502 = vst.msk [vmem:[%s4600_s20 + $0x310] sm:$0xff] %vm3403_vm4, %v7459_v44  ;;  %v7465_v44 = vld [vmem:[#allocation41_spill] sm:$0xff] }
 0x5a1   : > { %3503 = vst.msk [vmem:[%s4600_s20 + $0x318] sm:$0xff] %vm3403_vm4, %v7460_v27  ;;  %v7466_v27 = vld [vmem:[#allocation2_spill] sm:$0xff] }
 0x5a2   : > { %3504 = vst.msk [vmem:[%s4600_s20 + $0x320] sm:$0xff] %vm3403_vm4, %v7461_v39  ;;  %v7467_v39 = vld [vmem:[#allocation40_spill] sm:$0xff] }
 0x5a3   : > { %3505 = vst.msk [vmem:[%s4600_s20 + $0x328] sm:$0xff] %vm3403_vm4, %v7462_v9  ;;  %v7468_v9 = vld [vmem:[#allocation42_spill] sm:$0xff] }
 0x5a4   : > { %3506 = vst.msk [vmem:[%s4600_s20 + $0x330] sm:$0xff] %vm3403_vm4, %v7463_v62  ;;  %v7469_v62 = vld [vmem:[#allocation5_spill] sm:$0xff] }
 0x5a5   : > { %3507 = vst.msk [vmem:[%s4600_s20 + $0x338] sm:$0xff] %vm3403_vm4, %v7464_v37  ;;  %v7470_v37 = vld [vmem:[#allocation43_spill] sm:$0xff] }
 0x5a6   : > { %3508 = vst.msk [vmem:[%s4600_s20 + $0x340] sm:$0xff] %vm3403_vm4, %v7465_v44  ;;  %v7471_v44 = vld [vmem:[#allocation7_spill] sm:$0xff] }
 0x5a7   : > { %3509 = vst.msk [vmem:[%s4600_s20 + $0x348] sm:$0xff] %vm3403_vm4, %v7466_v27  ;;  %v7472_v27 = vld [vmem:[#allocation47_spill] sm:$0xff] }
 0x5a8   : > { %3510 = vst.msk [vmem:[%s4600_s20 + $0x350] sm:$0xff] %vm3403_vm4, %v7467_v39  ;;  %v7473_v39 = vld [vmem:[#allocation50_spill] sm:$0xff] }
 0x5a9   : > { %3511 = vst.msk [vmem:[%s4600_s20 + $0x358] sm:$0xff] %vm3403_vm4, %v7468_v9  ;;  %v7474_v9 = vld [vmem:[#allocation49_spill] sm:$0xff] }
 0x5aa   : > { %3512 = vst.msk [vmem:[%s4600_s20 + $0x360] sm:$0xff] %vm3403_vm4, %v7469_v62  ;;  %v7475_v62 = vld [vmem:[#allocation51_spill] sm:$0xff] }
 0x5ab   : > { %3513 = vst.msk [vmem:[%s4600_s20 + $0x368] sm:$0xff] %vm3403_vm4, %v7470_v37  ;;  %v7477_v37 = vld [vmem:[#allocation52_spill] sm:$0xff] }
 0x5ac   : > { %3514 = vst.msk [vmem:[%s4600_s20 + $0x370] sm:$0xff] %vm3403_vm4, %v7471_v44  ;;  %v7478_v44 = vld [vmem:[#allocation54_spill] sm:$0xff] }
 0x5ad   : > { %3515 = vst.msk [vmem:[%s4600_s20 + $0x378] sm:$0xff] %vm3403_vm4, %v7472_v27  ;;  %v7479_v27 = vld [vmem:[#allocation71_spill] sm:$0xff] }
 0x5ae   : > { %3516 = vst.msk [vmem:[%s4600_s20 + $0x380] sm:$0xff] %vm3403_vm4, %v7473_v39  ;;  %v7481_v39 = vld [vmem:[#allocation57_spill] sm:$0xff] }
 0x5af   : > { %3517 = vst.msk [vmem:[%s4600_s20 + $0x388] sm:$0xff] %vm3403_vm4, %v7474_v9  ;;  %v7482_v9 = vld [vmem:[#allocation74_spill] sm:$0xff] }
 0x5b0   : > { %3518 = vst.msk [vmem:[%s4600_s20 + $0x390] sm:$0xff] %vm3403_vm4, %v7475_v62  ;;  %v7483_v62 = vld [vmem:[#allocation9_spill] sm:$0xff] }
 0x5b1   : > { %3519 = vst.msk [vmem:[%s4600_s20 + $0x398] sm:$0xff] %vm3403_vm4, %v7476_v47 }
 0x5b2   : > { %3520 = vst.msk [vmem:[%s4600_s20 + $0x3a0] sm:$0xff] %vm3403_vm4, %v7477_v37 }
 0x5b3   : > { %3521 = vst.msk [vmem:[%s4600_s20 + $0x3a8] sm:$0xff] %vm3403_vm4, %v7478_v44 }
 0x5b4   : > { %3522 = vst.msk [vmem:[%s4600_s20 + $0x3b0] sm:$0xff] %vm3403_vm4, %v7479_v27 }
 0x5b5   : > { %3523 = vst.msk [vmem:[%s4600_s20 + $0x3b8] sm:$0xff] %vm3403_vm4, %v7480_v20 }
 0x5b6   : > { %3524 = vst.msk [vmem:[%s4600_s20 + $0x3c0] sm:$0xff] %vm3403_vm4, %v7481_v39 }
 0x5b7   : > { %3525 = vst.msk [vmem:[%s4600_s20 + $0x3c8] sm:$0xff] %vm3403_vm4, %v7482_v9 }
 0x5b8   : > { %3526 = vst.msk [vmem:[%s4600_s20 + $0x3d0] sm:$0xff] %vm3403_vm4, %v7483_v62 }
 0x5b9   : > { %3527 = vst.msk [vmem:[%s4600_s20 + $0x3d8] sm:$0xff] %vm3403_vm4, %v6161_v48 }
 0x5ba   : > { %3528 = vst.msk [vmem:[%s4600_s20 + $0x3e0] sm:$0xff] %vm3403_vm4, %v6170_v25 }
 0x5bb   : > { %3529 = vst.msk [vmem:[%s4600_s20 + $0x3e8] sm:$0xff] %vm3403_vm4, %v6204_v1 }
 0x5bc   : > { %3530 = vst.msk [vmem:[%s4600_s20 + $0x3f0] sm:$0xff] %vm3403_vm4, %v6206_v32 }
 0x5bd   : > { %3531 = vst.msk [vmem:[%s4600_s20 + $0x3f8] sm:$0xff] %vm3403_vm4, %v6200_v38 }
 0x5be PF: > { %p4332_p8 = scmp.le.s32.totalorder %s4495_s24, 0 }
 0x5c0   : > { %3535 = sbr.rel (%p4332_p8) target bundleno = 1608 (0x648), region = 56 }
 0x5c5   : > { %v3536_v20 = vld [vmem:[%s4600_s20] sm:$0xff]  ;;  %vm3792_vm5 = vcmask 7168   ;;  %v3537_v47 = vld [vmem:[%s4600_s20 + $0x8] sm:$0xff]  ;;  %v3538_v37 = vld [vmem:[%s4600_s20 + $0x10] sm:$0xff] }
 0x5c6   : > { %v7484_v44 = vld [vmem:[#allocation10_spill] sm:$0xff]  ;;  %v7485_v39 = vld [vmem:[#allocation11_spill] sm:$0xff]  ;;  %v3666_v62 = vmax.f32 %v3538_v37, %v5682_v58  ;;  %v3539_v38 = vld [vmem:[%s4600_s20 + $0x18] sm:$0xff] }
 0x5c7   : > { %v3664_v27 = vmax.f32 %v3536_v20, %v7484_v44  ;;  %v3665_v9 = vmax.f32 %v3537_v47, %v7485_v39  ;;  %v3540_v32 = vld [vmem:[%s4600_s20 + $0x20] sm:$0xff]  ;;  %v3541_v1 = vld [vmem:[%s4600_s20 + $0x28] sm:$0xff]  ;;  %v3667_v25 = vmax.f32 %v3539_v38, %v5696_v41  ;;  %v3542_v48 = vld [vmem:[%s4600_s20 + $0x30] sm:$0xff] }
 0x5c8   : > { %v3668_v20 = vmax.f32 %v3540_v32, %v5716_v29  ;;  %v3543_v44 = vld [vmem:[%s4600_s20 + $0x38] sm:$0xff]  ;;  %v3669_v58 = vmax.f32 %v3541_v1, %v5724_v19  ;;  %v3544_v47 = vld [vmem:[%s4600_s20 + $0x40] sm:$0xff]  ;;  %3795 = vst.msk [vmem:[%s4600_s20 + $0x10] sm:$0xff] %vm3792_vm5, %v3666_v62  ;;  %v3670_v41 = vmax.f32 %v3542_v48, %v5736_v7  ;;  %v3545_v38 = vld [vmem:[%s4600_s20 + $0x48] sm:$0xff] }
 0x5c9   : > { %3793 = vst.msk [vmem:[%s4600_s20] sm:$0xff] %vm3792_vm5, %v3664_v27  ;;  %v3671_v29 = vmax.f32 %v3543_v44, %v5746_v59  ;;  %v3546_v32 = vld [vmem:[%s4600_s20 + $0x50] sm:$0xff]  ;;  %v3672_v19 = vmax.f32 %v3544_v47, %v5760_v61  ;;  %v3547_v1 = vld [vmem:[%s4600_s20 + $0x58] sm:$0xff]  ;;  %v3673_v7 = vmax.f32 %v3545_v38, %v5766_v10  ;;  %v3548_v48 = vld [vmem:[%s4600_s20 + $0x60] sm:$0xff] }
 0x5ca   : > { %3794 = vst.msk [vmem:[%s4600_s20 + $0x8] sm:$0xff] %vm3792_vm5, %v3665_v9  ;;  %v3674_v59 = vmax.f32 %v3546_v32, %v5782_v45  ;;  %v3675_v61 = vmax.f32 %v3547_v1, %v5790_v5  ;;  %v3550_v37 = vld [vmem:[%s4600_s20 + $0x70] sm:$0xff]  ;;  %v3676_v10 = vmax.f32 %v3548_v48, %v5802_v52  ;;  %v3551_v27 = vld [vmem:[%s4600_s20 + $0x78] sm:$0xff]  ;;  %v3552_v39 = vld [vmem:[%s4600_s20 + $0x80] sm:$0xff] }
 0x5cb   : > { %3796 = vst.msk [vmem:[%s4600_s20 + $0x18] sm:$0xff] %vm3792_vm5, %v3667_v25  ;;  %v3549_v25 = vld [vmem:[%s4600_s20 + $0x68] sm:$0xff]  ;;  %v3678_v5 = vmax.f32 %v3550_v37, %v5826_v4  ;;  %v3679_v52 = vmax.f32 %v3551_v27, %v5832_v8  ;;  %v3554_v62 = vld [vmem:[%s4600_s20 + $0x90] sm:$0xff]  ;;  %v3556_v44 = vld [vmem:[%s4600_s20 + $0xa0] sm:$0xff] }
 0x5cc   : > { %3797 = vst.msk [vmem:[%s4600_s20 + $0x20] sm:$0xff] %vm3792_vm5, %v3668_v20  ;;  %v3677_v45 = vmax.f32 %v3549_v25, %v5812_v13  ;;  %v3553_v9 = vld [vmem:[%s4600_s20 + $0x88] sm:$0xff]  ;;  %v3680_v13 = vmax.f32 %v3552_v39, %v5848_v50  ;;  %v3555_v20 = vld [vmem:[%s4600_s20 + $0x98] sm:$0xff]  ;;  %v3682_v8 = vmax.f32 %v3554_v62, %v5868_v23  ;;  %v3558_v47 = vld [vmem:[%s4600_s20 + $0xb0] sm:$0xff] }
 0x5cd   : > { %3798 = vst.msk [vmem:[%s4600_s20 + $0x28] sm:$0xff] %vm3792_vm5, %v3669_v58  ;;  %v3681_v4 = vmax.f32 %v3553_v9, %v5856_v40  ;;  %v3557_v58 = vld [vmem:[%s4600_s20 + $0xa8] sm:$0xff]  ;;  %v3683_v50 = vmax.f32 %v3555_v20, %v5878_v42  ;;  %v3684_v40 = vmax.f32 %v3556_v44, %v5892_v11  ;;  %v3560_v38 = vld [vmem:[%s4600_s20 + $0xc0] sm:$0xff]  ;;  %v3686_v42 = vmax.f32 %v3558_v47, %v5914_v3  ;;  %v3562_v32 = vld [vmem:[%s4600_s20 + $0xd0] sm:$0xff] }
 0x5ce   : > { %3799 = vst.msk [vmem:[%s4600_s20 + $0x30] sm:$0xff] %vm3792_vm5, %v3670_v41  ;;  %v3559_v41 = vld [vmem:[%s4600_s20 + $0xb8] sm:$0xff]  ;;  %v3685_v23 = vmax.f32 %v3557_v58, %v5898_v0  ;;  %v3688_v0 = vmax.f32 %v3560_v38, %v5934_v53  ;;  %v3564_v1 = vld [vmem:[%s4600_s20 + $0xe0] sm:$0xff]  ;;  %v3566_v48 = vld [vmem:[%s4600_s20 + $0xf0] sm:$0xff] }
 0x5cf   : > { %3800 = vst.msk [vmem:[%s4600_s20 + $0x38] sm:$0xff] %vm3792_vm5, %v3671_v29  ;;  %v3561_v29 = vld [vmem:[%s4600_s20 + $0xc8] sm:$0xff]  ;;  %v3687_v11 = vmax.f32 %v3559_v41, %v5922_v60  ;;  %v3690_v60 = vmax.f32 %v3562_v32, %v5955_v16  ;;  %v3568_v25 = vld [vmem:[%s4600_s20 + $0x100] sm:$0xff]  ;;  %v3570_v37 = vld [vmem:[%s4600_s20 + $0x110] sm:$0xff] }
 0x5d0   : > { %3801 = vst.msk [vmem:[%s4600_s20 + $0x40] sm:$0xff] %vm3792_vm5, %v3672_v19  ;;  %v3563_v19 = vld [vmem:[%s4600_s20 + $0xd8] sm:$0xff]  ;;  %v3689_v3 = vmax.f32 %v3561_v29, %v5944_v6  ;;  %v3692_v6 = vmax.f32 %v3564_v1, %v5974_v33  ;;  %v3572_v27 = vld [vmem:[%s4600_s20 + $0x120] sm:$0xff]  ;;  %v3574_v39 = vld [vmem:[%s4600_s20 + $0x130] sm:$0xff] }
 0x5d1   : > { %3802 = vst.msk [vmem:[%s4600_s20 + $0x48] sm:$0xff] %vm3792_vm5, %v3673_v7  ;;  %v3565_v7 = vld [vmem:[%s4600_s20 + $0xe8] sm:$0xff]  ;;  %v3691_v53 = vmax.f32 %v3563_v19, %v5961_v12  ;;  %v3694_v12 = vmax.f32 %v3566_v48, %v5991_v30  ;;  %v3576_v9 = vld [vmem:[%s4600_s20 + $0x140] sm:$0xff]  ;;  %v3578_v20 = vld [vmem:[%s4600_s20 + $0x150] sm:$0xff] }
 0x5d2   : > { %3803 = vst.msk [vmem:[%s4600_s20 + $0x50] sm:$0xff] %vm3792_vm5, %v3674_v59  ;;  %v3567_v59 = vld [vmem:[%s4600_s20 + $0xf8] sm:$0xff]  ;;  %v3693_v16 = vmax.f32 %v3565_v7, %v5982_v49  ;;  %v3696_v49 = vmax.f32 %v3568_v25, %v6012_v55  ;;  %v3577_v62 = vld [vmem:[%s4600_s20 + $0x148] sm:$0xff]  ;;  %v7492_v29 = vld [vmem:[#allocation67_spill] sm:$0xff] }
 0x5d3   : > { %3804 = vst.msk [vmem:[%s4600_s20 + $0x58] sm:$0xff] %vm3792_vm5, %v3675_v61  ;;  %v3569_v61 = vld [vmem:[%s4600_s20 + $0x108] sm:$0xff]  ;;  %v3695_v33 = vmax.f32 %v3567_v59, %v6001_v28  ;;  %v3698_v28 = vmax.f32 %v3570_v37, %v6031_v14  ;;  %v3579_v44 = vld [vmem:[%s4600_s20 + $0x158] sm:$0xff]  ;;  %v7494_v1 = vld [vmem:[#allocation69_spill] sm:$0xff] }
 0x5d4   : > { %3805 = vst.msk [vmem:[%s4600_s20 + $0x60] sm:$0xff] %vm3792_vm5, %v3676_v10  ;;  %v3571_v10 = vld [vmem:[%s4600_s20 + $0x118] sm:$0xff]  ;;  %v3697_v30 = vmax.f32 %v3569_v61, %v6018_v63  ;;  %v3700_v63 = vmax.f32 %v3572_v27, %v6048_v18  ;;  %v7487_v18 = vld [vmem:[#allocation3_spill] sm:$0xff]  ;;  %v3581_v41 = vld [vmem:[%s4600_s20 + $0x168] sm:$0xff] }
 0x5d5   : > { %3806 = vst.msk [vmem:[%s4600_s20 + $0x68] sm:$0xff] %vm3792_vm5, %v3677_v45  ;;  %v3573_v45 = vld [vmem:[%s4600_s20 + $0x128] sm:$0xff]  ;;  %v3699_v55 = vmax.f32 %v3571_v10, %v6039_v26  ;;  %v7486_v26 = vld [vmem:[#allocation44_spill] sm:$0xff]  ;;  %v7498_v37 = vld [vmem:[#allocation73_spill] sm:$0xff] }
 0x5d6   : > { %3807 = vst.msk [vmem:[%s4600_s20 + $0x70] sm:$0xff] %vm3792_vm5, %v3678_v5  ;;  %v3575_v5 = vld [vmem:[%s4600_s20 + $0x138] sm:$0xff]  ;;  %v3701_v14 = vmax.f32 %v3573_v45, %v6058_v2  ;;  %v7488_v2 = vld [vmem:[#allocation45_spill] sm:$0xff]  ;;  %v3585_v7 = vld [vmem:[%s4600_s20 + $0x188] sm:$0xff] }
 0x5d7   : > { %3808 = vst.msk [vmem:[%s4600_s20 + $0x78] sm:$0xff] %vm3792_vm5, %v3679_v52  ;;  %v3702_v52 = vmax.f32 %v3574_v39, %v7486_v26  ;;  %v7490_v47 = vld [vmem:[#allocation48_spill] sm:$0xff]  ;;  %v3589_v10 = vld [vmem:[%s4600_s20 + $0x1a8] sm:$0xff] }
 0x5d8   : > { %3809 = vst.msk [vmem:[%s4600_s20 + $0x80] sm:$0xff] %vm3792_vm5, %v3680_v13  ;;  %v3703_v13 = vmax.f32 %v3575_v5, %v7487_v18  ;;  %v3583_v32 = vld [vmem:[%s4600_s20 + $0x178] sm:$0xff]  ;;  %v7500_v45 = vld [vmem:[#allocation58_spill] sm:$0xff]  ;;  %v3592_v5 = vld [vmem:[%s4600_s20 + $0x1c0] sm:$0xff] }
 0x5d9   : > { %3810 = vst.msk [vmem:[%s4600_s20 + $0x88] sm:$0xff] %vm3792_vm5, %v3681_v4  ;;  %v3704_v4 = vmax.f32 %v3576_v9, %v7488_v2  ;;  %v7496_v59 = vld [vmem:[#allocation56_spill] sm:$0xff]  ;;  %v3593_v9 = vld [vmem:[%s4600_s20 + $0x1c8] sm:$0xff]  ;;  %v3596_v18 = vld [vmem:[%s4600_s20 + $0x1e0] sm:$0xff] }
 0x5da   : > { %3811 = vst.msk [vmem:[%s4600_s20 + $0x90] sm:$0xff] %vm3792_vm5, %v3682_v8  ;;  %v7489_v8 = vld [vmem:[#allocation46_spill] sm:$0xff]  ;;  %v3587_v25 = vld [vmem:[%s4600_s20 + $0x198] sm:$0xff] }
 0x5db   : > { %3812 = vst.msk [vmem:[%s4600_s20 + $0x98] sm:$0xff] %vm3792_vm5, %v3683_v50  ;;  %v3705_v58 = vmax.f32 %v3577_v62, %v7489_v8  ;;  %v3580_v50 = vld [vmem:[%s4600_s20 + $0x160] sm:$0xff]  ;;  %v3591_v39 = vld [vmem:[%s4600_s20 + $0x1b8] sm:$0xff]  ;;  %v3602_v8 = vld [vmem:[%s4600_s20 + $0x210] sm:$0xff] }
 0x5dc   : > { %3813 = vst.msk [vmem:[%s4600_s20 + $0xa0] sm:$0xff] %vm3792_vm5, %v3684_v40  ;;  %v3706_v40 = vmax.f32 %v3578_v20, %v7490_v47  ;;  %v3719_v26 = vmax.f32 %v3591_v39, %v6172_v21  ;;  %v3595_v62 = vld [vmem:[%s4600_s20 + $0x1d8] sm:$0xff]  ;;  %v3598_v20 = vld [vmem:[%s4600_s20 + $0x1f0] sm:$0xff]  ;;  %v3605_v47 = vld [vmem:[%s4600_s20 + $0x228] sm:$0xff] }
 0x5dd   : > { %3814 = vst.msk [vmem:[%s4600_s20 + $0xa8] sm:$0xff] %vm3792_vm5, %v3685_v23  ;;  %v7491_v23 = vld [vmem:[#allocation66_spill] sm:$0xff]  ;;  %v3599_v2 = vld [vmem:[%s4600_s20 + $0x1f8] sm:$0xff] }
 0x5de   : > { %3815 = vst.msk [vmem:[%s4600_s20 + $0xb0] sm:$0xff] %vm3792_vm5, %v3686_v42  ;;  %v3707_v38 = vmax.f32 %v3579_v44, %v7491_v23  ;;  %v3582_v42 = vld [vmem:[%s4600_s20 + $0x170] sm:$0xff]  ;;  %v3601_v44 = vld [vmem:[%s4600_s20 + $0x208] sm:$0xff]  ;;  %v3607_v23 = vld [vmem:[%s4600_s20 + $0x238] sm:$0xff] }
 0x5df   : > { %3816 = vst.msk [vmem:[%s4600_s20 + $0xb8] sm:$0xff] %vm3792_vm5, %v3687_v11  ;;  %v3708_v11 = vmax.f32 %v3580_v50, %v7492_v29  ;;  %v3604_v50 = vld [vmem:[%s4600_s20 + $0x220] sm:$0xff]  ;;  %v7512_v39 = vld [vmem:[#allocation22_spill] sm:$0xff] }
 0x5e0   : > { %3817 = vst.msk [vmem:[%s4600_s20 + $0xc0] sm:$0xff] %vm3792_vm5, %v3688_v0  ;;  %v7493_v0 = vld [vmem:[#allocation53_spill] sm:$0xff] }
 0x5e1   : > { %3818 = vst.msk [vmem:[%s4600_s20 + $0xc8] sm:$0xff] %vm3792_vm5, %v3689_v3  ;;  %v3709_v19 = vmax.f32 %v3581_v41, %v7493_v0  ;;  %v3584_v3 = vld [vmem:[%s4600_s20 + $0x180] sm:$0xff] }
 0x5e2   : > { %3819 = vst.msk [vmem:[%s4600_s20 + $0xd0] sm:$0xff] %vm3792_vm5, %v3690_v60  ;;  %v3710_v60 = vmax.f32 %v3582_v42, %v7494_v1  ;;  %v3608_v42 = vld [vmem:[%s4600_s20 + $0x240] sm:$0xff] }
 0x5e3   : > { %3820 = vst.msk [vmem:[%s4600_s20 + $0xd8] sm:$0xff] %vm3792_vm5, %v3691_v53  ;;  %v7495_v53 = vld [vmem:[#allocation70_spill] sm:$0xff] }
 0x5e4   : > { %3821 = vst.msk [vmem:[%s4600_s20 + $0xe0] sm:$0xff] %vm3792_vm5, %v3692_v6  ;;  %v3711_v48 = vmax.f32 %v3583_v32, %v7495_v53  ;;  %v3586_v6 = vld [vmem:[%s4600_s20 + $0x190] sm:$0xff]  ;;  %v7504_v32 = vld [vmem:[#allocation12_spill] sm:$0xff] }
 0x5e5   : > { %3822 = vst.msk [vmem:[%s4600_s20 + $0xe8] sm:$0xff] %vm3792_vm5, %v3693_v16  ;;  %v3712_v16 = vmax.f32 %v3584_v3, %v7496_v59  ;;  %v3735_v0 = vmax.f32 %v3607_v23, %v7504_v32  ;;  %v7505_v3 = vld [vmem:[#allocation14_spill] sm:$0xff]  ;;  %v7523_v23 = vld [vmem:[#allocation32_spill] sm:$0xff] }
 0x5e6   : > { %3823 = vst.msk [vmem:[%s4600_s20 + $0xf0] sm:$0xff] %vm3792_vm5, %v3694_v12  ;;  %v7497_v12 = vld [vmem:[#allocation72_spill] sm:$0xff]  ;;  %v3736_v1 = vmax.f32 %v3608_v42, %v7505_v3  ;;  %v7524_v42 = vld [vmem:[#allocation34_spill] sm:$0xff] }
 0x5e7   : > { %3824 = vst.msk [vmem:[%s4600_s20 + $0xf8] sm:$0xff] %vm3792_vm5, %v3695_v33  ;;  %v3713_v61 = vmax.f32 %v3585_v7, %v7497_v12  ;;  %v3588_v33 = vld [vmem:[%s4600_s20 + $0x1a0] sm:$0xff]  ;;  %v7506_v7 = vld [vmem:[#allocation16_spill] sm:$0xff] }
 0x5e8   : > { %3825 = vst.msk [vmem:[%s4600_s20 + $0x100] sm:$0xff] %vm3792_vm5, %v3696_v49  ;;  %v3714_v49 = vmax.f32 %v3586_v6, %v7498_v37  ;;  %v7507_v6 = vld [vmem:[#allocation15_spill] sm:$0xff] }
 0x5e9   : > { %3826 = vst.msk [vmem:[%s4600_s20 + $0x108] sm:$0xff] %vm3792_vm5, %v3697_v30  ;;  %v7499_v30 = vld [vmem:[#allocation59_spill] sm:$0xff] }
 0x5ea   : > { %3827 = vst.msk [vmem:[%s4600_s20 + $0x110] sm:$0xff] %vm3792_vm5, %v3698_v28  ;;  %v3715_v27 = vmax.f32 %v3587_v25, %v7499_v30  ;;  %v3590_v28 = vld [vmem:[%s4600_s20 + $0x1b0] sm:$0xff]  ;;  %v7508_v25 = vld [vmem:[#allocation17_spill] sm:$0xff] }
 0x5eb   : > { %3828 = vst.msk [vmem:[%s4600_s20 + $0x118] sm:$0xff] %vm3792_vm5, %v3699_v55  ;;  %v3716_v55 = vmax.f32 %v3588_v33, %v7500_v45  ;;  %v7509_v33 = vld [vmem:[#allocation19_spill] sm:$0xff] }
 0x5ec   : > { %3829 = vst.msk [vmem:[%s4600_s20 + $0x120] sm:$0xff] %vm3792_vm5, %v3700_v63  ;;  %v3717_v63 = vmax.f32 %v3589_v10, %v6164_v51  ;;  %v3720_v51 = vmax.f32 %v3592_v5, %v6174_v34  ;;  %v3723_v34 = vmax.f32 %v3595_v62, %v6180_v35  ;;  %v3726_v35 = vmax.f32 %v3598_v20, %v6186_v54  ;;  %v7510_v10 = vld [vmem:[#allocation18_spill] sm:$0xff]  ;;  %v3618_v5 = vld [vmem:[%s4600_s20 + $0x290] sm:$0xff]  ;;  %v3620_v62 = vld [vmem:[%s4600_s20 + $0x2a0] sm:$0xff] }
 0x5ed   : > { %3830 = vst.msk [vmem:[%s4600_s20 + $0x128] sm:$0xff] %vm3792_vm5, %v3701_v14  ;;  %v3718_v14 = vmax.f32 %v3590_v28, %v6168_v31  ;;  %v3721_v31 = vmax.f32 %v3593_v9, %v6176_v36  ;;  %v3724_v36 = vmax.f32 %v3596_v18, %v6182_v56  ;;  %v3727_v56 = vmax.f32 %v3599_v2, %v6188_v46  ;;  %v7511_v28 = vld [vmem:[#allocation20_spill] sm:$0xff]  ;;  %v3622_v20 = vld [vmem:[%s4600_s20 + $0x2b0] sm:$0xff] }
 0x5ee   : > { %3831 = vst.msk [vmem:[%s4600_s20 + $0x130] sm:$0xff] %vm3792_vm5, %v3702_v52  ;;  %v3594_v52 = vld [vmem:[%s4600_s20 + $0x1d0] sm:$0xff]  ;;  %v3729_v54 = vmax.f32 %v3601_v44, %v6192_v43  ;;  %v3730_v46 = vmax.f32 %v3602_v8, %v6194_v15  ;;  %v7501_v43 = vld [vmem:[#allocation8_spill] sm:$0xff]  ;;  %v3624_v44 = vld [vmem:[%s4600_s20 + $0x2c0] sm:$0xff] }
 0x5ef   : > { %3832 = vst.msk [vmem:[%s4600_s20 + $0x138] sm:$0xff] %vm3792_vm5, %v3703_v13  ;;  %v3722_v21 = vmax.f32 %v3594_v52, %v6178_v57  ;;  %v3597_v13 = vld [vmem:[%s4600_s20 + $0x1e8] sm:$0xff]  ;;  %v3732_v41 = vmax.f32 %v3604_v50, %v7501_v43  ;;  %v7502_v15 = vld [vmem:[#allocation76_spill] sm:$0xff]  ;;  %v7514_v52 = vld [vmem:[#allocation23_spill] sm:$0xff] }
 0x5f0   : > { %3833 = vst.msk [vmem:[%s4600_s20 + $0x140] sm:$0xff] %vm3792_vm5, %v3704_v4  ;;  %v3725_v57 = vmax.f32 %v3597_v13, %v6184_v22  ;;  %v3600_v4 = vld [vmem:[%s4600_s20 + $0x200] sm:$0xff]  ;;  %v7516_v13 = vld [vmem:[#allocation24_spill] sm:$0xff]  ;;  %v3626_v50 = vld [vmem:[%s4600_s20 + $0x2d0] sm:$0xff] }
 0x5f1   : > { %3834 = vst.msk [vmem:[%s4600_s20 + $0x148] sm:$0xff] %vm3792_vm5, %v3705_v58  ;;  %v3728_v22 = vmax.f32 %v3600_v4, %v6190_v24  ;;  %v3603_v58 = vld [vmem:[%s4600_s20 + $0x218] sm:$0xff] }
 0x5f2   : > { %3835 = vst.msk [vmem:[%s4600_s20 + $0x150] sm:$0xff] %vm3792_vm5, %v3706_v40  ;;  %v3731_v24 = vmax.f32 %v3603_v58, %v6196_v17  ;;  %v3606_v40 = vld [vmem:[%s4600_s20 + $0x230] sm:$0xff]  ;;  %v7503_v17 = vld [vmem:[#allocation13_spill] sm:$0xff]  ;;  %v7518_v4 = vld [vmem:[#allocation28_spill] sm:$0xff] }
 0x5f3   : > { %3836 = vst.msk [vmem:[%s4600_s20 + $0x158] sm:$0xff] %vm3792_vm5, %v3707_v38  ;;  %v3733_v38 = vmax.f32 %v3605_v47, %v7502_v15  ;;  %v3734_v29 = vmax.f32 %v3606_v40, %v7503_v17  ;;  %v7520_v58 = vld [vmem:[#allocation29_spill] sm:$0xff]  ;;  %v7522_v40 = vld [vmem:[#allocation30_spill] sm:$0xff]  ;;  %v3754_v15 = vmax.f32 %v3626_v50, %v7523_v23  ;;  %v7542_v50 = vld [vmem:[#allocation43_spill] sm:$0xff] }
 0x5f4   : > { %3837 = vst.msk [vmem:[%s4600_s20 + $0x160] sm:$0xff] %vm3792_vm5, %v3708_v11  ;;  %v3609_v11 = vld [vmem:[%s4600_s20 + $0x248] sm:$0xff] }
 0x5f5   : > { %3838 = vst.msk [vmem:[%s4600_s20 + $0x168] sm:$0xff] %vm3792_vm5, %v3709_v19  ;;  %v3610_v19 = vld [vmem:[%s4600_s20 + $0x250] sm:$0xff]  ;;  %v3737_v53 = vmax.f32 %v3609_v11, %v7506_v7  ;;  %v7525_v11 = vld [vmem:[#allocation33_spill] sm:$0xff] }
 0x5f6   : > { %3839 = vst.msk [vmem:[%s4600_s20 + $0x170] sm:$0xff] %vm3792_vm5, %v3710_v60  ;;  %v3611_v60 = vld [vmem:[%s4600_s20 + $0x258] sm:$0xff]  ;;  %v3738_v59 = vmax.f32 %v3610_v19, %v7507_v6  ;;  %v7526_v19 = vld [vmem:[#allocation35_spill] sm:$0xff] }
 0x5f7   : > { %3840 = vst.msk [vmem:[%s4600_s20 + $0x178] sm:$0xff] %vm3792_vm5, %v3711_v48  ;;  %v3612_v48 = vld [vmem:[%s4600_s20 + $0x260] sm:$0xff]  ;;  %v3739_v12 = vmax.f32 %v3611_v60, %v7508_v25 }
 0x5f8   : > { %3841 = vst.msk [vmem:[%s4600_s20 + $0x180] sm:$0xff] %vm3792_vm5, %v3712_v16  ;;  %v3613_v16 = vld [vmem:[%s4600_s20 + $0x268] sm:$0xff]  ;;  %v3740_v37 = vmax.f32 %v3612_v48, %v7509_v33  ;;  %v7527_v60 = vld [vmem:[#allocation37_spill] sm:$0xff]  ;;  %v7528_v48 = vld [vmem:[#allocation36_spill] sm:$0xff] }
 0x5f9   : > { %3842 = vst.msk [vmem:[%s4600_s20 + $0x188] sm:$0xff] %vm3792_vm5, %v3713_v61  ;;  %v3614_v61 = vld [vmem:[%s4600_s20 + $0x270] sm:$0xff]  ;;  %v3741_v30 = vmax.f32 %v3613_v16, %v7510_v10  ;;  %v7529_v16 = vld [vmem:[#allocation38_spill] sm:$0xff] }
 0x5fa   : > { %3843 = vst.msk [vmem:[%s4600_s20 + $0x190] sm:$0xff] %vm3792_vm5, %v3714_v49  ;;  %v3615_v49 = vld [vmem:[%s4600_s20 + $0x278] sm:$0xff]  ;;  %v3742_v45 = vmax.f32 %v3614_v61, %v7511_v28  ;;  %v7530_v61 = vld [vmem:[#allocation39_spill] sm:$0xff] }
 0x5fb   : > { %3844 = vst.msk [vmem:[%s4600_s20 + $0x198] sm:$0xff] %vm3792_vm5, %v3715_v27  ;;  %v3616_v27 = vld [vmem:[%s4600_s20 + $0x280] sm:$0xff] }
 0x5fc   : > { %3845 = vst.msk [vmem:[%s4600_s20 + $0x1a0] sm:$0xff] %vm3792_vm5, %v3716_v55  ;;  %v3617_v55 = vld [vmem:[%s4600_s20 + $0x288] sm:$0xff] }
 0x5fd   : > { %3846 = vst.msk [vmem:[%s4600_s20 + $0x1a8] sm:$0xff] %vm3792_vm5, %v3717_v63  ;;  %v3743_v63 = vmax.f32 %v3615_v49, %v7512_v39  ;;  %v7531_v49 = vld [vmem:[#allocation61_spill] sm:$0xff] }
 0x5fe   : > { %3847 = vst.msk [vmem:[%s4600_s20 + $0x1b0] sm:$0xff] %vm3792_vm5, %v3718_v14  ;;  %v7513_v14 = vld [vmem:[#allocation21_spill] sm:$0xff] }
 0x5ff   : > { %3848 = vst.msk [vmem:[%s4600_s20 + $0x1b8] sm:$0xff] %vm3792_vm5, %v3719_v26  ;;  %v3744_v9 = vmax.f32 %v3616_v27, %v7513_v14  ;;  %v3619_v26 = vld [vmem:[%s4600_s20 + $0x298] sm:$0xff]  ;;  %v7532_v27 = vld [vmem:[#allocation62_spill] sm:$0xff] }
 0x600   : > { %3849 = vst.msk [vmem:[%s4600_s20 + $0x1c0] sm:$0xff] %vm3792_vm5, %v3720_v51  ;;  %v3745_v51 = vmax.f32 %v3617_v55, %v7514_v52  ;;  %v7533_v55 = vld [vmem:[#allocation63_spill] sm:$0xff] }
 0x601   : > { %3850 = vst.msk [vmem:[%s4600_s20 + $0x1c8] sm:$0xff] %vm3792_vm5, %v3721_v31  ;;  %v7515_v31 = vld [vmem:[#allocation25_spill] sm:$0xff] }
 0x602   : > { %3851 = vst.msk [vmem:[%s4600_s20 + $0x1d0] sm:$0xff] %vm3792_vm5, %v3722_v21  ;;  %v3746_v18 = vmax.f32 %v3618_v5, %v7515_v31  ;;  %v3621_v21 = vld [vmem:[%s4600_s20 + $0x2a8] sm:$0xff]  ;;  %v7534_v5 = vld [vmem:[#allocation64_spill] sm:$0xff] }
 0x603   : > { %3852 = vst.msk [vmem:[%s4600_s20 + $0x1d8] sm:$0xff] %vm3792_vm5, %v3723_v34  ;;  %v3747_v34 = vmax.f32 %v3619_v26, %v7516_v13  ;;  %v7535_v26 = vld [vmem:[#allocation65_spill] sm:$0xff] }
 0x604   : > { %3853 = vst.msk [vmem:[%s4600_s20 + $0x1e0] sm:$0xff] %vm3792_vm5, %v3724_v36  ;;  %v7517_v36 = vld [vmem:[#allocation26_spill] sm:$0xff] }
 0x605   : > { %3854 = vst.msk [vmem:[%s4600_s20 + $0x1e8] sm:$0xff] %vm3792_vm5, %v3725_v57  ;;  %v3748_v2 = vmax.f32 %v3620_v62, %v7517_v36  ;;  %v3623_v57 = vld [vmem:[%s4600_s20 + $0x2b8] sm:$0xff] }
 0x606   : > { %3855 = vst.msk [vmem:[%s4600_s20 + $0x1f0] sm:$0xff] %vm3792_vm5, %v3726_v35  ;;  %v3749_v35 = vmax.f32 %v3621_v21, %v7518_v4  ;;  %v7536_v62 = vld [vmem:[#allocation4_spill] sm:$0xff]  ;;  %v7537_v21 = vld [vmem:[#allocation41_spill] sm:$0xff] }
 0x607   : > { %3856 = vst.msk [vmem:[%s4600_s20 + $0x1f8] sm:$0xff] %vm3792_vm5, %v3727_v56  ;;  %v7519_v56 = vld [vmem:[#allocation27_spill] sm:$0xff] }
 0x608   : > { %3857 = vst.msk [vmem:[%s4600_s20 + $0x200] sm:$0xff] %vm3792_vm5, %v3728_v22  ;;  %v3750_v8 = vmax.f32 %v3622_v20, %v7519_v56  ;;  %v3625_v22 = vld [vmem:[%s4600_s20 + $0x2c8] sm:$0xff] }
 0x609   : > { %3858 = vst.msk [vmem:[%s4600_s20 + $0x208] sm:$0xff] %vm3792_vm5, %v3729_v54  ;;  %v3751_v54 = vmax.f32 %v3623_v57, %v7520_v58  ;;  %v3753_v43 = vmax.f32 %v3625_v22, %v7522_v40  ;;  %v7538_v20 = vld [vmem:[#allocation2_spill] sm:$0xff]  ;;  %v7539_v57 = vld [vmem:[#allocation40_spill] sm:$0xff]  ;;  %v7541_v22 = vld [vmem:[#allocation5_spill] sm:$0xff] }
 0x60a   : > { %3859 = vst.msk [vmem:[%s4600_s20 + $0x210] sm:$0xff] %vm3792_vm5, %v3730_v46  ;;  %v7521_v46 = vld [vmem:[#allocation31_spill] sm:$0xff] }
 0x60b   : > { %3860 = vst.msk [vmem:[%s4600_s20 + $0x218] sm:$0xff] %vm3792_vm5, %v3731_v24  ;;  %v3752_v47 = vmax.f32 %v3624_v44, %v7521_v46  ;;  %v3627_v24 = vld [vmem:[%s4600_s20 + $0x2d8] sm:$0xff]  ;;  %v7540_v44 = vld [vmem:[#allocation42_spill] sm:$0xff] }
 0x60c   : > { %3861 = vst.msk [vmem:[%s4600_s20 + $0x220] sm:$0xff] %vm3792_vm5, %v3732_v41  ;;  %v3628_v41 = vld [vmem:[%s4600_s20 + $0x2e0] sm:$0xff]  ;;  %v3755_v17 = vmax.f32 %v3627_v24, %v7524_v42  ;;  %v7543_v24 = vld [vmem:[#allocation7_spill] sm:$0xff] }
 0x60d   : > { %3862 = vst.msk [vmem:[%s4600_s20 + $0x228] sm:$0xff] %vm3792_vm5, %v3733_v38  ;;  %v3629_v38 = vld [vmem:[%s4600_s20 + $0x2e8] sm:$0xff]  ;;  %v3756_v32 = vmax.f32 %v3628_v41, %v7525_v11  ;;  %v7544_v41 = vld [vmem:[#allocation47_spill] sm:$0xff] }
 0x60e   : > { %3863 = vst.msk [vmem:[%s4600_s20 + $0x230] sm:$0xff] %vm3792_vm5, %v3734_v29  ;;  %v3630_v29 = vld [vmem:[%s4600_s20 + $0x2f0] sm:$0xff]  ;;  %v3757_v3 = vmax.f32 %v3629_v38, %v7526_v19  ;;  %v7545_v38 = vld [vmem:[#allocation50_spill] sm:$0xff] }
 0x60f   : > { %3864 = vst.msk [vmem:[%s4600_s20 + $0x238] sm:$0xff] %vm3792_vm5, %v3735_v0  ;;  %v3631_v0 = vld [vmem:[%s4600_s20 + $0x2f8] sm:$0xff]  ;;  %v3758_v7 = vmax.f32 %v3630_v29, %v7527_v60  ;;  %v7546_v29 = vld [vmem:[#allocation49_spill] sm:$0xff] }
 0x610   : > { %3865 = vst.msk [vmem:[%s4600_s20 + $0x240] sm:$0xff] %vm3792_vm5, %v3736_v1  ;;  %v3632_v1 = vld [vmem:[%s4600_s20 + $0x300] sm:$0xff]  ;;  %v3759_v6 = vmax.f32 %v3631_v0, %v7528_v48  ;;  %v7547_v0 = vld [vmem:[#allocation51_spill] sm:$0xff] }
 0x611   : > { %3866 = vst.msk [vmem:[%s4600_s20 + $0x248] sm:$0xff] %vm3792_vm5, %v3737_v53  ;;  %v3633_v53 = vld [vmem:[%s4600_s20 + $0x308] sm:$0xff]  ;;  %v3760_v25 = vmax.f32 %v3632_v1, %v7529_v16  ;;  %v7548_v1 = vld [vmem:[#allocation68_spill] sm:$0xff] }
 0x612   : > { %3867 = vst.msk [vmem:[%s4600_s20 + $0x250] sm:$0xff] %vm3792_vm5, %v3738_v59  ;;  %v3634_v59 = vld [vmem:[%s4600_s20 + $0x310] sm:$0xff]  ;;  %v3761_v33 = vmax.f32 %v3633_v53, %v7530_v61  ;;  %v7549_v53 = vld [vmem:[#allocation52_spill] sm:$0xff] }
 0x613   : > { %3868 = vst.msk [vmem:[%s4600_s20 + $0x258] sm:$0xff] %vm3792_vm5, %v3739_v12  ;;  %v3635_v12 = vld [vmem:[%s4600_s20 + $0x318] sm:$0xff]  ;;  %v3762_v10 = vmax.f32 %v3634_v59, %v7531_v49  ;;  %v7550_v59 = vld [vmem:[#allocation54_spill] sm:$0xff] }
 0x614   : > { %3869 = vst.msk [vmem:[%s4600_s20 + $0x260] sm:$0xff] %vm3792_vm5, %v3740_v37  ;;  %v3636_v37 = vld [vmem:[%s4600_s20 + $0x320] sm:$0xff]  ;;  %v3763_v28 = vmax.f32 %v3635_v12, %v7532_v27  ;;  %v7551_v12 = vld [vmem:[#allocation71_spill] sm:$0xff] }
 0x615   : > { %3870 = vst.msk [vmem:[%s4600_s20 + $0x268] sm:$0xff] %vm3792_vm5, %v3741_v30  ;;  %v3637_v30 = vld [vmem:[%s4600_s20 + $0x328] sm:$0xff]  ;;  %v3764_v39 = vmax.f32 %v3636_v37, %v7533_v55  ;;  %v7552_v37 = vld [vmem:[#allocation55_spill] sm:$0xff] }
 0x616   : > { %3871 = vst.msk [vmem:[%s4600_s20 + $0x270] sm:$0xff] %vm3792_vm5, %v3742_v45  ;;  %v3638_v45 = vld [vmem:[%s4600_s20 + $0x330] sm:$0xff]  ;;  %v3765_v14 = vmax.f32 %v3637_v30, %v7534_v5  ;;  %v7553_v30 = vld [vmem:[#allocation57_spill] sm:$0xff] }
 0x617   : > { %3872 = vst.msk [vmem:[%s4600_s20 + $0x278] sm:$0xff] %vm3792_vm5, %v3743_v63  ;;  %v3639_v63 = vld [vmem:[%s4600_s20 + $0x338] sm:$0xff]  ;;  %v3766_v52 = vmax.f32 %v3638_v45, %v7535_v26  ;;  %v7554_v45 = vld [vmem:[#allocation74_spill] sm:$0xff] }
 0x618   : > { %3873 = vst.msk [vmem:[%s4600_s20 + $0x280] sm:$0xff] %vm3792_vm5, %v3744_v9  ;;  %v3640_v9 = vld [vmem:[%s4600_s20 + $0x340] sm:$0xff]  ;;  %v3767_v31 = vmax.f32 %v3639_v63, %v7536_v62 }
 0x619   : > { %3874 = vst.msk [vmem:[%s4600_s20 + $0x288] sm:$0xff] %vm3792_vm5, %v3745_v51  ;;  %v3641_v51 = vld [vmem:[%s4600_s20 + $0x348] sm:$0xff]  ;;  %v3768_v13 = vmax.f32 %v3640_v9, %v7537_v21  ;;  %v7555_v63 = vld [vmem:[#allocation9_spill] sm:$0xff] }
 0x61a   : > { %3875 = vst.msk [vmem:[%s4600_s20 + $0x290] sm:$0xff] %vm3792_vm5, %v3746_v18  ;;  %v3642_v18 = vld [vmem:[%s4600_s20 + $0x350] sm:$0xff]  ;;  %v3769_v36 = vmax.f32 %v3641_v51, %v7538_v20  ;;  %v7556_v9 = vld [vmem:[#allocation6_spill] sm:$0xff]  ;;  %v7557_v51 = vld [vmem:[#allocation60_spill] sm:$0xff] }
 0x61b   : > { %3876 = vst.msk [vmem:[%s4600_s20 + $0x298] sm:$0xff] %vm3792_vm5, %v3747_v34  ;;  %v3643_v34 = vld [vmem:[%s4600_s20 + $0x358] sm:$0xff]  ;;  %v3770_v4 = vmax.f32 %v3642_v18, %v7539_v57  ;;  %v7558_v18 = vld [vmem:[#allocation77_spill] sm:$0xff]  ;;  %v7560_v20 = vld [vmem:[#allocation75_spill] sm:$0xff] }
 0x61c   : > { %3877 = vst.msk [vmem:[%s4600_s20 + $0x2a0] sm:$0xff] %vm3792_vm5, %v3748_v2  ;;  %v3644_v2 = vld [vmem:[%s4600_s20 + $0x360] sm:$0xff]  ;;  %v3771_v56 = vmax.f32 %v3643_v34, %v7540_v44 }
 0x61d   : > { %3878 = vst.msk [vmem:[%s4600_s20 + $0x2a8] sm:$0xff] %vm3792_vm5, %v3749_v35  ;;  %v3645_v35 = vld [vmem:[%s4600_s20 + $0x368] sm:$0xff]  ;;  %v3772_v58 = vmax.f32 %v3644_v2, %v7541_v22 }
 0x61e   : > { %3879 = vst.msk [vmem:[%s4600_s20 + $0x2b0] sm:$0xff] %vm3792_vm5, %v3750_v8  ;;  %v3646_v8 = vld [vmem:[%s4600_s20 + $0x370] sm:$0xff]  ;;  %v3773_v46 = vmax.f32 %v3645_v35, %v7542_v50 }
 0x61f   : > { %3880 = vst.msk [vmem:[%s4600_s20 + $0x2b8] sm:$0xff] %vm3792_vm5, %v3751_v54  ;;  %v3647_v54 = vld [vmem:[%s4600_s20 + $0x378] sm:$0xff]  ;;  %v3774_v40 = vmax.f32 %v3646_v8, %v7543_v24 }
 0x620   : > { %3881 = vst.msk [vmem:[%s4600_s20 + $0x2c0] sm:$0xff] %vm3792_vm5, %v3752_v47  ;;  %v3648_v47 = vld [vmem:[%s4600_s20 + $0x380] sm:$0xff]  ;;  %v3775_v23 = vmax.f32 %v3647_v54, %v7544_v41 }
 0x621   : > { %3882 = vst.msk [vmem:[%s4600_s20 + $0x2c8] sm:$0xff] %vm3792_vm5, %v3753_v43  ;;  %v3649_v43 = vld [vmem:[%s4600_s20 + $0x388] sm:$0xff]  ;;  %v3776_v42 = vmax.f32 %v3648_v47, %v7545_v38 }
 0x622   : > { %3883 = vst.msk [vmem:[%s4600_s20 + $0x2d0] sm:$0xff] %vm3792_vm5, %v3754_v15  ;;  %v3650_v15 = vld [vmem:[%s4600_s20 + $0x390] sm:$0xff]  ;;  %v3777_v11 = vmax.f32 %v3649_v43, %v7546_v29 }
 0x623   : > { %3884 = vst.msk [vmem:[%s4600_s20 + $0x2d8] sm:$0xff] %vm3792_vm5, %v3755_v17  ;;  %v3651_v17 = vld [vmem:[%s4600_s20 + $0x398] sm:$0xff]  ;;  %v3778_v19 = vmax.f32 %v3650_v15, %v7547_v0 }
 0x624   : > { %3885 = vst.msk [vmem:[%s4600_s20 + $0x2e0] sm:$0xff] %vm3792_vm5, %v3756_v32  ;;  %v3652_v32 = vld [vmem:[%s4600_s20 + $0x3a0] sm:$0xff]  ;;  %v3779_v60 = vmax.f32 %v3651_v17, %v7548_v1 }
 0x625   : > { %3886 = vst.msk [vmem:[%s4600_s20 + $0x2e8] sm:$0xff] %vm3792_vm5, %v3757_v3  ;;  %v3653_v3 = vld [vmem:[%s4600_s20 + $0x3a8] sm:$0xff]  ;;  %v3780_v48 = vmax.f32 %v3652_v32, %v7549_v53 }
 0x626   : > { %3887 = vst.msk [vmem:[%s4600_s20 + $0x2f0] sm:$0xff] %vm3792_vm5, %v3758_v7  ;;  %v3654_v7 = vld [vmem:[%s4600_s20 + $0x3b0] sm:$0xff]  ;;  %v3781_v16 = vmax.f32 %v3653_v3, %v7550_v59 }
 0x627   : > { %3888 = vst.msk [vmem:[%s4600_s20 + $0x2f8] sm:$0xff] %vm3792_vm5, %v3759_v6  ;;  %v3655_v6 = vld [vmem:[%s4600_s20 + $0x3b8] sm:$0xff]  ;;  %v3782_v61 = vmax.f32 %v3654_v7, %v7551_v12 }
 0x628   : > { %3889 = vst.msk [vmem:[%s4600_s20 + $0x300] sm:$0xff] %vm3792_vm5, %v3760_v25  ;;  %v3656_v25 = vld [vmem:[%s4600_s20 + $0x3c0] sm:$0xff]  ;;  %v3783_v49 = vmax.f32 %v3655_v6, %v7552_v37 }
 0x629   : > { %3890 = vst.msk [vmem:[%s4600_s20 + $0x308] sm:$0xff] %vm3792_vm5, %v3761_v33  ;;  %v3657_v33 = vld [vmem:[%s4600_s20 + $0x3c8] sm:$0xff]  ;;  %v3784_v27 = vmax.f32 %v3656_v25, %v7553_v30 }
 0x62a   : > { %3891 = vst.msk [vmem:[%s4600_s20 + $0x310] sm:$0xff] %vm3792_vm5, %v3762_v10  ;;  %v3658_v10 = vld [vmem:[%s4600_s20 + $0x3d0] sm:$0xff]  ;;  %v3785_v55 = vmax.f32 %v3657_v33, %v7554_v45 }
 0x62b   : > { %3892 = vst.msk [vmem:[%s4600_s20 + $0x318] sm:$0xff] %vm3792_vm5, %v3763_v28  ;;  %v3659_v28 = vld [vmem:[%s4600_s20 + $0x3d8] sm:$0xff]  ;;  %v3786_v5 = vmax.f32 %v3658_v10, %v7555_v63 }
 0x62c   : > { %3893 = vst.msk [vmem:[%s4600_s20 + $0x320] sm:$0xff] %vm3792_vm5, %v3764_v39  ;;  %v3660_v39 = vld [vmem:[%s4600_s20 + $0x3e0] sm:$0xff]  ;;  %v3787_v26 = vmax.f32 %v3659_v28, %v7556_v9 }
 0x62d   : > { %3894 = vst.msk [vmem:[%s4600_s20 + $0x328] sm:$0xff] %vm3792_vm5, %v3765_v14  ;;  %v3661_v14 = vld [vmem:[%s4600_s20 + $0x3e8] sm:$0xff]  ;;  %v3788_v62 = vmax.f32 %v3660_v39, %v7557_v51 }
 0x62e   : > { %3895 = vst.msk [vmem:[%s4600_s20 + $0x330] sm:$0xff] %vm3792_vm5, %v3766_v52  ;;  %v3662_v52 = vld [vmem:[%s4600_s20 + $0x3f0] sm:$0xff]  ;;  %v3789_v21 = vmax.f32 %v3661_v14, %v7558_v18 }
 0x62f   : > { %3896 = vst.msk [vmem:[%s4600_s20 + $0x338] sm:$0xff] %vm3792_vm5, %v3767_v31  ;;  %v3663_v31 = vld [vmem:[%s4600_s20 + $0x3f8] sm:$0xff] }
 0x630   : > { %3897 = vst.msk [vmem:[%s4600_s20 + $0x340] sm:$0xff] %vm3792_vm5, %v3768_v13  ;;  %v7559_v13 = vld [vmem:[#allocation78_spill] sm:$0xff] }
 0x631   : > { %3898 = vst.msk [vmem:[%s4600_s20 + $0x348] sm:$0xff] %vm3792_vm5, %v3769_v36  ;;  %v3790_v34 = vmax.f32 %v3662_v52, %v7559_v13  ;;  %v3791_v36 = vmax.f32 %v3663_v31, %v7560_v20 }
 0x632   : > { %3899 = vst.msk [vmem:[%s4600_s20 + $0x350] sm:$0xff] %vm3792_vm5, %v3770_v4 }
 0x633   : > { %3900 = vst.msk [vmem:[%s4600_s20 + $0x358] sm:$0xff] %vm3792_vm5, %v3771_v56 }
 0x634   : > { %3901 = vst.msk [vmem:[%s4600_s20 + $0x360] sm:$0xff] %vm3792_vm5, %v3772_v58 }
 0x635   : > { %3902 = vst.msk [vmem:[%s4600_s20 + $0x368] sm:$0xff] %vm3792_vm5, %v3773_v46 }
 0x636   : > { %3903 = vst.msk [vmem:[%s4600_s20 + $0x370] sm:$0xff] %vm3792_vm5, %v3774_v40 }
 0x637   : > { %3904 = vst.msk [vmem:[%s4600_s20 + $0x378] sm:$0xff] %vm3792_vm5, %v3775_v23 }
 0x638   : > { %3905 = vst.msk [vmem:[%s4600_s20 + $0x380] sm:$0xff] %vm3792_vm5, %v3776_v42 }
 0x639   : > { %3906 = vst.msk [vmem:[%s4600_s20 + $0x388] sm:$0xff] %vm3792_vm5, %v3777_v11 }
 0x63a   : > { %3907 = vst.msk [vmem:[%s4600_s20 + $0x390] sm:$0xff] %vm3792_vm5, %v3778_v19 }
 0x63b   : > { %3908 = vst.msk [vmem:[%s4600_s20 + $0x398] sm:$0xff] %vm3792_vm5, %v3779_v60 }
 0x63c   : > { %3909 = vst.msk [vmem:[%s4600_s20 + $0x3a0] sm:$0xff] %vm3792_vm5, %v3780_v48 }
 0x63d   : > { %3910 = vst.msk [vmem:[%s4600_s20 + $0x3a8] sm:$0xff] %vm3792_vm5, %v3781_v16 }
 0x63e   : > { %3911 = vst.msk [vmem:[%s4600_s20 + $0x3b0] sm:$0xff] %vm3792_vm5, %v3782_v61 }
 0x63f   : > { %3912 = vst.msk [vmem:[%s4600_s20 + $0x3b8] sm:$0xff] %vm3792_vm5, %v3783_v49 }
 0x640   : > { %3913 = vst.msk [vmem:[%s4600_s20 + $0x3c0] sm:$0xff] %vm3792_vm5, %v3784_v27 }
 0x641   : > { %3914 = vst.msk [vmem:[%s4600_s20 + $0x3c8] sm:$0xff] %vm3792_vm5, %v3785_v55 }
 0x642   : > { %3915 = vst.msk [vmem:[%s4600_s20 + $0x3d0] sm:$0xff] %vm3792_vm5, %v3786_v5 }
 0x643   : > { %3916 = vst.msk [vmem:[%s4600_s20 + $0x3d8] sm:$0xff] %vm3792_vm5, %v3787_v26 }
 0x644   : > { %3917 = vst.msk [vmem:[%s4600_s20 + $0x3e0] sm:$0xff] %vm3792_vm5, %v3788_v62 }
 0x645   : > { %3918 = vst.msk [vmem:[%s4600_s20 + $0x3e8] sm:$0xff] %vm3792_vm5, %v3789_v21 }
 0x646   : > { %3919 = vst.msk [vmem:[%s4600_s20 + $0x3f0] sm:$0xff] %vm3792_vm5, %v3790_v34 }
 0x647   : > { %3920 = vst.msk [vmem:[%s4600_s20 + $0x3f8] sm:$0xff] %vm3792_vm5, %v3791_v36 }
 0x648 PF: > { %s17_s28 = sadd.s32 1, %s4511_s28   ;;  %s7561_s24 = smov %s4503_s26 }
 0x649   : > { %p14_p9 = scmp.ge.s32.totalorder %s17_s28, 6   ;;  %s7562_s25 = smov %s4507_s27 }
 0x64a   : > { %s7563_s26 = smov %s7566_s29  ;;  %s7564_s27 = smov %s7570_s30 }
 0x64b   :  { %16 = sbr.rel (!%p14_p9) target bundleno = 3 (0x3), region = 86 }

</bundles_post_ra>
